<compile_context>
chip_gen: v5e
topology: v5e:2x2
jax: 0.10.0
libtpu: 0.0.40
codegen_flags: <defaults>
</compile_context>

<pallas_src>
import functools

import jax
import jax.numpy as jnp
from jax.experimental import pallas as pl
from jax.experimental.pallas import tpu as pltpu


def _attn_pool_kernel(x_ref, pos0_ref, posr_ref,
                      wq_ref, wk_ref, wv_ref,
                      bq_ref, bk_ref, bv_ref,
                      wc_ref, bc_ref,
                      hmask_ref, hmask_t_ref,
                      o_ref, *, scale):
    bt, hw, c = x_ref.shape
    nh = hmask_ref.shape[1]

    x = x_ref[...].astype(jnp.float32)                        # (Bt, HW, C)

    # --- tokens: mean token kept as its own aligned (Bt, C) block -----------
    mean_tok = jnp.mean(x, axis=1) + pos0_ref[...]            # (Bt, C)      f32
    sp_tok = x + posr_ref[...][None, :, :]                    # (Bt, HW, C)  f32

    mean_bf = mean_tok.astype(jnp.bfloat16)                   # (Bt, C)
    sp_bf = sp_tok.astype(jnp.bfloat16).reshape(bt * hw, c)   # (Bt*HW, C)

    # --- q/k/v projections: bf16 operands, f32 MXU accumulation -------------
    q = (jnp.dot(mean_bf, wq_ref[...],
                 preferred_element_type=jnp.float32) + bq_ref[...]) * scale   # (Bt, C)
    k0 = jnp.dot(mean_bf, wk_ref[...],
                 preferred_element_type=jnp.float32) + bk_ref[...]            # (Bt, C)
    v0 = jnp.dot(mean_bf, wv_ref[...],
                 preferred_element_type=jnp.float32) + bv_ref[...]            # (Bt, C)
    k_sp = (jnp.dot(sp_bf, wk_ref[...],
                    preferred_element_type=jnp.float32)
            + bk_ref[...]).reshape(bt, hw, c)                                 # (Bt, HW, C)
    v_sp = (jnp.dot(sp_bf, wv_ref[...],
                    preferred_element_type=jnp.float32)
            + bv_ref[...]).reshape(bt, hw, c)                                 # (Bt, HW, C)

    # --- per-head scores via head-membership indicator matmuls --------------
    s0 = jnp.dot(q * k0, hmask_ref[...],
                 preferred_element_type=jnp.float32)                          # (Bt, H)
    qk_sp = (k_sp * q[:, None, :]).reshape(bt * hw, c)
    s_sp = jnp.dot(qk_sp, hmask_ref[...],
                   preferred_element_type=jnp.float32).reshape(bt, hw, nh)    # (Bt, HW, H)

    # --- softmax over the L = HW + 1 tokens (mean row folded in explicitly) -
    m = jnp.maximum(s0, jnp.max(s_sp, axis=1))                # (Bt, H)
    p0 = jnp.exp(s0 - m)                                      # (Bt, H)
    p_sp = jnp.exp(s_sp - m[:, None, :])                      # (Bt, HW, H)
    denom = p0 + jnp.sum(p_sp, axis=1)                        # (Bt, H)

    # broadcast per-head weights back to channels and reduce over tokens
    o0 = jnp.dot(p0, hmask_t_ref[...],
                 preferred_element_type=jnp.float32) * v0                     # (Bt, C)
    a_sp = jnp.dot(p_sp.reshape(bt * hw, nh), hmask_t_ref[...],
                   preferred_element_type=jnp.float32).reshape(bt, hw, c)
    o_sp = jnp.sum(a_sp * v_sp, axis=1)                                       # (Bt, C)
    denom_full = jnp.dot(denom, hmask_t_ref[...],
                         preferred_element_type=jnp.float32)                  # (Bt, C)
    o = (o0 + o_sp) * pl.reciprocal(denom_full, approx=True)                  # (Bt, C)

    # --- output projection ----------------------------------------------------
    out = jnp.dot(o.astype(jnp.bfloat16), wc_ref[...],
                  preferred_element_type=jnp.float32) + bc_ref[...]           # (Bt, Dout)
    o_ref[...] = out.astype(o_ref.dtype)


def _invariant_spec(shape, single_buffer):
    index_map = lambda n: (0,) * len(shape)
    if single_buffer:
        # grid-invariant operand: never re-DMA'd, so a second pipeline buffer
        # is pure VMEM waste (matters at CLIP scale / on v7x's 64 MiB VMEM).
        return pl.BlockSpec(shape, index_map,
                            pipeline_mode=pl.Buffered(buffer_count=1))
    return pl.BlockSpec(shape, index_map)


def attention_pool_2d(x_nchw, params, num_heads, *, block_batch=8):
    N, C, H, W = x_nchw.shape
    HW = H * W
    L = HW + 1
    head_dim = C // num_heads
    scale = float(head_dim) ** -0.5
    Dout = params["wc"].shape[0]

    bt = int(block_batch)
    n_pad = int(pl.cdiv(N, bt)) * bt
    grid = (n_pad // bt,)   # multiple parallel steps when N > bt (v7x megacore)

    # glue: NCHW -> (N, HW, C) channel-last token layout.
    # NOTE: this transpose is an extra HBM pass over the activations; if the
    # producer can emit channel-last (NHWC) directly, feed that in instead.
    x_tok = jnp.transpose(x_nchw.reshape(N, C, HW), (0, 2, 1))
    if n_pad != N:
        # padded rows are computed independently and discarded after the call.
        x_tok = jnp.pad(x_tok, ((0, n_pad - N), (0, 0), (0, 0)))
    x_tok = x_tok.astype(jnp.bfloat16)

    pos = params["pos"].astype(jnp.float32)
    pos0, posr = pos[:1], pos[1:]                         # (1, C), (HW, C)

    # head-membership indicator (0/1, exactly representable in bf16)
    hmask = (jnp.arange(C)[:, None] // head_dim
             == jnp.arange(num_heads)[None, :]).astype(jnp.bfloat16)

    wq_t = params["wq"].T.astype(jnp.bfloat16)
    wk_t = params["wk"].T.astype(jnp.bfloat16)
    wv_t = params["wv"].T.astype(jnp.bfloat16)
    wc_t = params["wc"].T.astype(jnp.bfloat16)
    bq = params["bq"][None, :].astype(jnp.float32)
    bk = params["bk"][None, :].astype(jnp.float32)
    bv = params["bv"][None, :].astype(jnp.float32)
    bc = params["bc"][None, :].astype(jnp.float32)

    kernel = functools.partial(_attn_pool_kernel, scale=scale)

    # advisory cost estimate so XLA can overlap the surrounding transpose etc.
    flops = n_pad * (4 * L * C * C + 2 * C * C
                     + 6 * L * C * num_heads + 2 * C * Dout)
    bytes_accessed = (n_pad * HW * C * 2
                      + (3 * C * C + C * Dout + 2 * C * num_heads) * 2
                      + (L * C + 3 * C + Dout) * 4
                      + n_pad * Dout * 4)
    cost = pl.CostEstimate(flops=int(flops),
                           transcendentals=int(n_pad * L * num_heads),
                           bytes_accessed=int(bytes_accessed))

    # explicit VMEM budget: invariant weights + double-buffered x/out blocks
    # + slack, clamped to stay below v7x's 64 MiB physical VMEM.
    weight_bytes = (3 * C * C + C * Dout + 2 * C * num_heads) * 2
    small_bytes = (L * C + 3 * C + Dout) * 4
    stream_bytes = 2 * (bt * HW * C * 2 + bt * Dout * 4)
    vmem_limit = int(min(max(16 * 2 ** 20,
                             2 * (2 * weight_bytes + small_bytes + stream_bytes)),
                         56 * 2 ** 20))

    compiler_params = pltpu.CompilerParams(
        dimension_semantics=("parallel",), vmem_limit_bytes=vmem_limit)

    def build(single_buffer):
        in_specs = [
            pl.BlockSpec((bt, HW, C), lambda n: (n, 0, 0)),        # x tokens
            _invariant_spec((1, C), single_buffer),                # pos[0]
            _invariant_spec((HW, C), single_buffer),               # pos[1:]
            _invariant_spec((C, C), single_buffer),                # Wq^T
            _invariant_spec((C, C), single_buffer),                # Wk^T
            _invariant_spec((C, C), single_buffer),                # Wv^T
            _invariant_spec((1, C), single_buffer),                # bq
            _invariant_spec((1, C), single_buffer),                # bk
            _invariant_spec((1, C), single_buffer),                # bv
            _invariant_spec((C, Dout), single_buffer),             # Wc^T
            _invariant_spec((1, Dout), single_buffer),             # bc
            _invariant_spec((C, num_heads), single_buffer),        # head mask
            _invariant_spec((num_heads, C), single_buffer),        # head mask^T
        ]
        return pl.pallas_call(
            kernel,
            out_shape=jax.ShapeDtypeStruct((n_pad, Dout), jnp.float32),
            grid_spec=pltpu.PrefetchScalarGridSpec(
                num_scalar_prefetch=0,
                grid=grid,
                in_specs=in_specs,
                out_specs=pl.BlockSpec((bt, Dout), lambda n: (n, 0)),
            ),
            compiler_params=compiler_params,
            cost_estimate=cost,
        )

    args = (x_tok, pos0, posr, wq_t, wk_t, wv_t, bq, bk, bv, wc_t, bc,
            hmask, hmask.T)
    try:
        out = build(single_buffer=True)(*args)
    except Exception:
        # This Pallas build rejects per-operand pipeline_mode; fall back to
        # default double-buffering (correct, just ~2x weight VMEM).
        out = build(single_buffer=False)(*args)
    return out[:N]


def attention_pool_2d_reference(x_nchw, params, num_heads):
    """Pure-JAX (f32) mirror of the torch F.multi_head_attention_forward path."""
    N, C, H, W = x_nchw.shape
    HW = H * W
    L = HW + 1
    head_dim = C // num_heads
    scale = float(head_dim) ** -0.5

    x = jnp.transpose(x_nchw.reshape(N, C, HW), (2, 0, 1))          # (HW, N, C)
    x = jnp.concatenate([x.mean(axis=0, keepdims=True), x], axis=0)  # (L, N, C)
    x = x + params["pos"][:, None, :]

    q = (x[:1] @ params["wq"].T + params["bq"]) * scale              # (1, N, C)
    k = x @ params["wk"].T + params["bk"]                            # (L, N, C)
    v = x @ params["wv"].T + params["bv"]                            # (L, N, C)

    qh = q.reshape(1, N, num_heads, head_dim)
    kh = k.reshape(L, N, num_heads, head_dim)
    vh = v.reshape(L, N, num_heads, head_dim)
    scores = jnp.einsum("qnhd,lnhd->nhql", qh, kh)                   # (N, H, 1, L)
    attn = jax.nn.softmax(scores, axis=-1)
    o = jnp.einsum("nhql,lnhd->qnhd", attn, vh).reshape(1, N, C)
    out = o @ params["wc"].T + params["bc"]
    return out[0]                                                    # (N, Dout)


def init_params(key, spacial_dim, embed_dim, output_dim):
    ks = jax.random.split(key, 9)
    L = spacial_dim ** 2 + 1
    return {
        "pos": jax.random.normal(ks[0], (L, embed_dim), jnp.float32) / embed_dim ** 0.5,
        "wq": 0.1 * jax.random.normal(ks[1], (embed_dim, embed_dim), jnp.float32),
        "wk": 0.1 * jax.random.normal(ks[2], (embed_dim, embed_dim), jnp.float32),
        "wv": 0.1 * jax.random.normal(ks[3], (embed_dim, embed_dim), jnp.float32),
        "wc": 0.1 * jax.random.normal(ks[4], (output_dim, embed_dim), jnp.float32),
        "bq": 0.1 * jax.random.normal(ks[5], (embed_dim,), jnp.float32),
        "bk": 0.1 * jax.random.normal(ks[6], (embed_dim,), jnp.float32),
        "bv": 0.1 * jax.random.normal(ks[7], (embed_dim,), jnp.float32),
        "bc": 0.1 * jax.random.normal(ks[8], (output_dim,), jnp.float32),
    }


def _bf16_roundtrip(a):
    return a.astype(jnp.bfloat16).astype(jnp.float32)


if __name__ == "__main__":
    # small, module-consistent shapes; N chosen so the grid has 2 steps and the
    # batch-padding path (N -> multiple of block_batch) is exercised.
    N = 12
    spacial_dim = 4            # -> H = W = 4, 16 spatial tokens (+1 mean token)
    embed_dim = 32
    num_heads = 4
    output_dim = 16

    key = jax.random.PRNGKey(0)
    k_x, k_p = jax.random.split(key)
    x = jax.random.normal(k_x, (N, embed_dim, spacial_dim, spacial_dim), jnp.float32)
    params = init_params(k_p, spacial_dim, embed_dim, output_dim)

    out = attention_pool_2d(x, params, num_heads, block_batch=8)
    out = jax.block_until_ready(out)

    # reference uses the same bf16 operand quantization the kernel applies
    # (kernel does bf16 matmul inputs with f32 accumulation / f32 softmax).
    params_q = dict(params)
    for name in ("wq", "wk", "wv", "wc"):
        params_q[name] = _bf16_roundtrip(params[name])
    x_q = _bf16_roundtrip(x)
    ref = jax.block_until_ready(attention_pool_2d_reference(x_q, params_q, num_heads))

    assert out.shape == (N, output_dim)
    if not jnp.allclose(out, ref, atol=2e-2, rtol=2e-2):
        raise AssertionError("Pallas kernel output does not match JAX reference")

    print("KERNEL_OK")
</pallas_src>

<mosaic_0001>
module attributes {stable_mosaic.version = 11 : i64} {
  func.func @_attn_pool_kernel(%arg0: i32, %arg1: memref<8x16x32xbf16, #tpu.memory_space<vmem>>, %arg2: memref<1x32xf32, #tpu.memory_space<vmem>>, %arg3: memref<16x32xf32, #tpu.memory_space<vmem>>, %arg4: memref<32x32xbf16, #tpu.memory_space<vmem>>, %arg5: memref<32x32xbf16, #tpu.memory_space<vmem>>, %arg6: memref<32x32xbf16, #tpu.memory_space<vmem>>, %arg7: memref<1x32xf32, #tpu.memory_space<vmem>>, %arg8: memref<1x32xf32, #tpu.memory_space<vmem>>, %arg9: memref<1x32xf32, #tpu.memory_space<vmem>>, %arg10: memref<32x16xbf16, #tpu.memory_space<vmem>>, %arg11: memref<1x16xf32, #tpu.memory_space<vmem>>, %arg12: memref<32x4xbf16, #tpu.memory_space<vmem>>, %arg13: memref<4x32xbf16, #tpu.memory_space<vmem>>, %arg14: memref<8x16xf32, #tpu.memory_space<vmem>>) attributes {dimension_semantics = [#tpu.dimension_semantics<parallel>], iteration_bounds = array<i64: 2>, scalar_prefetch = 0 : i64, scratch_operands = 0 : i64, tpu.core_type = #tpu.core_type<tc>, window_params = [{transform_indices = @transform_0, window_bounds = array<i64: 8, 16, 32>}, {pipeline_mode = #tpu.pipeline_mode<synchronous>, transform_indices = @transform_1, window_bounds = array<i64: 1, 32>}, {pipeline_mode = #tpu.pipeline_mode<synchronous>, transform_indices = @transform_2, window_bounds = array<i64: 16, 32>}, {pipeline_mode = #tpu.pipeline_mode<synchronous>, transform_indices = @transform_3, window_bounds = array<i64: 32, 32>}, {pipeline_mode = #tpu.pipeline_mode<synchronous>, transform_indices = @transform_4, window_bounds = array<i64: 32, 32>}, {pipeline_mode = #tpu.pipeline_mode<synchronous>, transform_indices = @transform_5, window_bounds = array<i64: 32, 32>}, {pipeline_mode = #tpu.pipeline_mode<synchronous>, transform_indices = @transform_6, window_bounds = array<i64: 1, 32>}, {pipeline_mode = #tpu.pipeline_mode<synchronous>, transform_indices = @transform_7, window_bounds = array<i64: 1, 32>}, {pipeline_mode = #tpu.pipeline_mode<synchronous>, transform_indices = @transform_8, window_bounds = array<i64: 1, 32>}, {pipeline_mode = #tpu.pipeline_mode<synchronous>, transform_indices = @transform_9, window_bounds = array<i64: 32, 16>}, {pipeline_mode = #tpu.pipeline_mode<synchronous>, transform_indices = @transform_10, window_bounds = array<i64: 1, 16>}, {pipeline_mode = #tpu.pipeline_mode<synchronous>, transform_indices = @transform_11, window_bounds = array<i64: 32, 4>}, {pipeline_mode = #tpu.pipeline_mode<synchronous>, transform_indices = @transform_12, window_bounds = array<i64: 4, 32>}, {transform_indices = @transform_13, window_bounds = array<i64: 8, 16>}]} {
    %c0 = arith.constant 0 : index
    %c0_0 = arith.constant 0 : index
    %c0_1 = arith.constant 0 : index
    %0 = vector.load %arg1[%c0, %c0_0, %c0_1] : memref<8x16x32xbf16, #tpu.memory_space<vmem>>, vector<8x16x32xbf16>
    %1 = arith.extf %0 : vector<8x16x32xbf16> to vector<8x16x32xf32>
    %cst = arith.constant dense<0.000000e+00> : vector<8x32xf32>
    %2 = vector.multi_reduction <add>, %1, %cst [1] : vector<8x16x32xf32> to vector<8x32xf32>
    %cst_2 = arith.constant 1.600000e+01 : f32
    %3 = vector.broadcast %cst_2 : f32 to vector<8x32xf32>
    %4 = arith.divf %2, %3 : vector<8x32xf32>
    %c0_3 = arith.constant 0 : index
    %c0_4 = arith.constant 0 : index
    %5 = vector.load %arg2[%c0_3, %c0_4] : memref<1x32xf32, #tpu.memory_space<vmem>>, vector<1x32xf32>
    %6 = vector.broadcast %5 : vector<1x32xf32> to vector<8x32xf32>
    %7 = arith.addf %4, %6 : vector<8x32xf32>
    %c0_5 = arith.constant 0 : index
    %c0_6 = arith.constant 0 : index
    %8 = vector.load %arg3[%c0_5, %c0_6] : memref<16x32xf32, #tpu.memory_space<vmem>>, vector<16x32xf32>
    %9 = vector.shape_cast %8 : vector<16x32xf32> to vector<1x16x32xf32>
    %10 = vector.broadcast %9 : vector<1x16x32xf32> to vector<8x16x32xf32>
    %11 = arith.addf %1, %10 : vector<8x16x32xf32>
    %12 = arith.truncf %7 : vector<8x32xf32> to vector<8x32xbf16>
    %13 = arith.truncf %11 : vector<8x16x32xf32> to vector<8x16x32xbf16>
    %14 = vector.shape_cast %13 : vector<8x16x32xbf16> to vector<128x32xbf16>
    %c0_7 = arith.constant 0 : index
    %c0_8 = arith.constant 0 : index
    %15 = vector.load %arg4[%c0_7, %c0_8] : memref<32x32xbf16, #tpu.memory_space<vmem>>, vector<32x32xbf16>
    %cst_9 = arith.constant dense<0.000000e+00> : vector<8x32xf32>
    %16 = tpu.matmul %12, %15, %cst_9 {dimension_numbers = #tpu.dot_dimension_numbers<[1], [0], [0], [1], [0, 0, 1, 1], [], []>} : vector<8x32xbf16>, vector<32x32xbf16>, vector<8x32xf32> -> vector<8x32xf32>
    %c0_10 = arith.constant 0 : index
    %c0_11 = arith.constant 0 : index
    %17 = vector.load %arg7[%c0_10, %c0_11] : memref<1x32xf32, #tpu.memory_space<vmem>>, vector<1x32xf32>
    %18 = vector.broadcast %17 : vector<1x32xf32> to vector<8x32xf32>
    %19 = arith.addf %16, %18 : vector<8x32xf32>
    %cst_12 = arith.constant 0.353553385 : f32
    %20 = vector.broadcast %cst_12 : f32 to vector<8x32xf32>
    %21 = arith.mulf %19, %20 : vector<8x32xf32>
    %c0_13 = arith.constant 0 : index
    %c0_14 = arith.constant 0 : index
    %22 = vector.load %arg5[%c0_13, %c0_14] : memref<32x32xbf16, #tpu.memory_space<vmem>>, vector<32x32xbf16>
    %cst_15 = arith.constant dense<0.000000e+00> : vector<8x32xf32>
    %23 = tpu.matmul %12, %22, %cst_15 {dimension_numbers = #tpu.dot_dimension_numbers<[1], [0], [0], [1], [0, 0, 1, 1], [], []>} : vector<8x32xbf16>, vector<32x32xbf16>, vector<8x32xf32> -> vector<8x32xf32>
    %c0_16 = arith.constant 0 : index
    %c0_17 = arith.constant 0 : index
    %24 = vector.load %arg8[%c0_16, %c0_17] : memref<1x32xf32, #tpu.memory_space<vmem>>, vector<1x32xf32>
    %25 = vector.broadcast %24 : vector<1x32xf32> to vector<8x32xf32>
    %26 = arith.addf %23, %25 : vector<8x32xf32>
    %c0_18 = arith.constant 0 : index
    %c0_19 = arith.constant 0 : index
    %27 = vector.load %arg6[%c0_18, %c0_19] : memref<32x32xbf16, #tpu.memory_space<vmem>>, vector<32x32xbf16>
    %cst_20 = arith.constant dense<0.000000e+00> : vector<8x32xf32>
    %28 = tpu.matmul %12, %27, %cst_20 {dimension_numbers = #tpu.dot_dimension_numbers<[1], [0], [0], [1], [0, 0, 1, 1], [], []>} : vector<8x32xbf16>, vector<32x32xbf16>, vector<8x32xf32> -> vector<8x32xf32>
    %c0_21 = arith.constant 0 : index
    %c0_22 = arith.constant 0 : index
    %29 = vector.load %arg9[%c0_21, %c0_22] : memref<1x32xf32, #tpu.memory_space<vmem>>, vector<1x32xf32>
    %30 = vector.broadcast %29 : vector<1x32xf32> to vector<8x32xf32>
    %31 = arith.addf %28, %30 : vector<8x32xf32>
    %c0_23 = arith.constant 0 : index
    %c0_24 = arith.constant 0 : index
    %32 = vector.load %arg5[%c0_23, %c0_24] : memref<32x32xbf16, #tpu.memory_space<vmem>>, vector<32x32xbf16>
    %cst_25 = arith.constant dense<0.000000e+00> : vector<128x32xf32>
    %33 = tpu.matmul %14, %32, %cst_25 {dimension_numbers = #tpu.dot_dimension_numbers<[1], [0], [0], [1], [0, 0, 1, 1], [], []>} : vector<128x32xbf16>, vector<32x32xbf16>, vector<128x32xf32> -> vector<128x32xf32>
    %c0_26 = arith.constant 0 : index
    %c0_27 = arith.constant 0 : index
    %34 = vector.load %arg8[%c0_26, %c0_27] : memref<1x32xf32, #tpu.memory_space<vmem>>, vector<1x32xf32>
    %35 = vector.broadcast %34 : vector<1x32xf32> to vector<128x32xf32>
    %36 = arith.addf %33, %35 : vector<128x32xf32>
    %37 = vector.shape_cast %36 : vector<128x32xf32> to vector<8x16x32xf32>
    %c0_28 = arith.constant 0 : index
    %c0_29 = arith.constant 0 : index
    %38 = vector.load %arg6[%c0_28, %c0_29] : memref<32x32xbf16, #tpu.memory_space<vmem>>, vector<32x32xbf16>
    %cst_30 = arith.constant dense<0.000000e+00> : vector<128x32xf32>
    %39 = tpu.matmul %14, %38, %cst_30 {dimension_numbers = #tpu.dot_dimension_numbers<[1], [0], [0], [1], [0, 0, 1, 1], [], []>} : vector<128x32xbf16>, vector<32x32xbf16>, vector<128x32xf32> -> vector<128x32xf32>
    %c0_31 = arith.constant 0 : index
    %c0_32 = arith.constant 0 : index
    %40 = vector.load %arg9[%c0_31, %c0_32] : memref<1x32xf32, #tpu.memory_space<vmem>>, vector<1x32xf32>
    %41 = vector.broadcast %40 : vector<1x32xf32> to vector<128x32xf32>
    %42 = arith.addf %39, %41 : vector<128x32xf32>
    %43 = vector.shape_cast %42 : vector<128x32xf32> to vector<8x16x32xf32>
    %44 = arith.mulf %21, %26 : vector<8x32xf32>
    %c0_33 = arith.constant 0 : index
    %c0_34 = arith.constant 0 : index
    %45 = vector.load %arg12[%c0_33, %c0_34] : memref<32x4xbf16, #tpu.memory_space<vmem>>, vector<32x4xbf16>
    %cst_35 = arith.constant dense<0.000000e+00> : vector<8x4xf32>
    %46 = tpu.matmul %44, %45, %cst_35 {dimension_numbers = #tpu.dot_dimension_numbers<[1], [0], [0], [1], [0, 0, 1, 1], [], []>} : vector<8x32xf32>, vector<32x4xbf16>, vector<8x4xf32> -> vector<8x4xf32>
    %47 = vector.shape_cast %21 : vector<8x32xf32> to vector<8x1x32xf32>
    %48 = vector.broadcast %47 : vector<8x1x32xf32> to vector<8x16x32xf32>
    %49 = arith.mulf %37, %48 : vector<8x16x32xf32>
    %50 = vector.shape_cast %49 : vector<8x16x32xf32> to vector<128x32xf32>
    %c0_36 = arith.constant 0 : index
    %c0_37 = arith.constant 0 : index
    %51 = vector.load %arg12[%c0_36, %c0_37] : memref<32x4xbf16, #tpu.memory_space<vmem>>, vector<32x4xbf16>
    %cst_38 = arith.constant dense<0.000000e+00> : vector<128x4xf32>
    %52 = tpu.matmul %50, %51, %cst_38 {dimension_numbers = #tpu.dot_dimension_numbers<[1], [0], [0], [1], [0, 0, 1, 1], [], []>} : vector<128x32xf32>, vector<32x4xbf16>, vector<128x4xf32> -> vector<128x4xf32>
    %53 = vector.shape_cast %52 : vector<128x4xf32> to vector<8x16x4xf32>
    %cst_39 = arith.constant dense<0xFF800000> : vector<8x4xf32>
    %54 = vector.multi_reduction <maximumf>, %53, %cst_39 [1] : vector<8x16x4xf32> to vector<8x4xf32>
    %55 = arith.maximumf %46, %54 : vector<8x4xf32>
    %56 = arith.subf %46, %55 : vector<8x4xf32>
    %57 = math.exp %56 : vector<8x4xf32>
    %58 = vector.shape_cast %55 : vector<8x4xf32> to vector<8x1x4xf32>
    %59 = vector.broadcast %58 : vector<8x1x4xf32> to vector<8x16x4xf32>
    %60 = arith.subf %53, %59 : vector<8x16x4xf32>
    %61 = math.exp %60 : vector<8x16x4xf32>
    %cst_40 = arith.constant dense<0.000000e+00> : vector<8x4xf32>
    %62 = vector.multi_reduction <add>, %61, %cst_40 [1] : vector<8x16x4xf32> to vector<8x4xf32>
    %63 = arith.addf %57, %62 : vector<8x4xf32>
    %c0_41 = arith.constant 0 : index
    %c0_42 = arith.constant 0 : index
    %64 = vector.load %arg13[%c0_41, %c0_42] : memref<4x32xbf16, #tpu.memory_space<vmem>>, vector<4x32xbf16>
    %cst_43 = arith.constant dense<0.000000e+00> : vector<8x32xf32>
    %65 = tpu.matmul %57, %64, %cst_43 {dimension_numbers = #tpu.dot_dimension_numbers<[1], [0], [0], [1], [0, 0, 1, 1], [], []>} : vector<8x4xf32>, vector<4x32xbf16>, vector<8x32xf32> -> vector<8x32xf32>
    %66 = arith.mulf %65, %31 : vector<8x32xf32>
    %67 = vector.shape_cast %61 : vector<8x16x4xf32> to vector<128x4xf32>
    %c0_44 = arith.constant 0 : index
    %c0_45 = arith.constant 0 : index
    %68 = vector.load %arg13[%c0_44, %c0_45] : memref<4x32xbf16, #tpu.memory_space<vmem>>, vector<4x32xbf16>
    %cst_46 = arith.constant dense<0.000000e+00> : vector<128x32xf32>
    %69 = tpu.matmul %67, %68, %cst_46 {dimension_numbers = #tpu.dot_dimension_numbers<[1], [0], [0], [1], [0, 0, 1, 1], [], []>} : vector<128x4xf32>, vector<4x32xbf16>, vector<128x32xf32> -> vector<128x32xf32>
    %70 = vector.shape_cast %69 : vector<128x32xf32> to vector<8x16x32xf32>
    %71 = arith.mulf %70, %43 : vector<8x16x32xf32>
    %cst_47 = arith.constant dense<0.000000e+00> : vector<8x32xf32>
    %72 = vector.multi_reduction <add>, %71, %cst_47 [1] : vector<8x16x32xf32> to vector<8x32xf32>
    %c0_48 = arith.constant 0 : index
    %c0_49 = arith.constant 0 : index
    %73 = vector.load %arg13[%c0_48, %c0_49] : memref<4x32xbf16, #tpu.memory_space<vmem>>, vector<4x32xbf16>
    %cst_50 = arith.constant dense<0.000000e+00> : vector<8x32xf32>
    %74 = tpu.matmul %63, %73, %cst_50 {dimension_numbers = #tpu.dot_dimension_numbers<[1], [0], [0], [1], [0, 0, 1, 1], [], []>} : vector<8x4xf32>, vector<4x32xbf16>, vector<8x32xf32> -> vector<8x32xf32>
    %75 = arith.addf %66, %72 : vector<8x32xf32>
    %76 = tpu.reciprocal %74 {approx = true} : vector<8x32xf32> -> vector<8x32xf32>
    %77 = arith.mulf %75, %76 : vector<8x32xf32>
    %78 = arith.truncf %77 : vector<8x32xf32> to vector<8x32xbf16>
    %c0_51 = arith.constant 0 : index
    %c0_52 = arith.constant 0 : index
    %79 = vector.load %arg10[%c0_51, %c0_52] : memref<32x16xbf16, #tpu.memory_space<vmem>>, vector<32x16xbf16>
    %cst_53 = arith.constant dense<0.000000e+00> : vector<8x16xf32>
    %80 = tpu.matmul %78, %79, %cst_53 {dimension_numbers = #tpu.dot_dimension_numbers<[1], [0], [0], [1], [0, 0, 1, 1], [], []>} : vector<8x32xbf16>, vector<32x16xbf16>, vector<8x16xf32> -> vector<8x16xf32>
    %c0_54 = arith.constant 0 : index
    %c0_55 = arith.constant 0 : index
    %81 = vector.load %arg11[%c0_54, %c0_55] : memref<1x16xf32, #tpu.memory_space<vmem>>, vector<1x16xf32>
    %82 = vector.broadcast %81 : vector<1x16xf32> to vector<8x16xf32>
    %83 = arith.addf %80, %82 : vector<8x16xf32>
    %c0_56 = arith.constant 0 : index
    %c0_57 = arith.constant 0 : index
    %84 = vector.load %arg14[%c0_56, %c0_57] : memref<8x16xf32, #tpu.memory_space<vmem>>, vector<8x16xf32>
    tpu.vector_store %arg14[%c0_56, %c0_57], %83 {strides = array<i32>} : memref<8x16xf32, #tpu.memory_space<vmem>>, vector<8x16xf32>,
    return
  }
  func.func @transform_0(%arg0: i32) -> (i32, i32, i32) {
    %c0_i32 = arith.constant 0 : i32
    %c0_i32_0 = arith.constant 0 : i32
    %c0_i32_1 = arith.constant 0 : i32
    return %arg0, %c0_i32, %c0_i32_0 : i32, i32, i32
  }
  func.func @transform_1(%arg0: i32) -> (i32, i32) {
    %c0_i32 = arith.constant 0 : i32
    %c0_i32_0 = arith.constant 0 : i32
    %c0_i32_1 = arith.constant 0 : i32
    return %c0_i32, %c0_i32_0 : i32, i32
  }
  func.func @transform_2(%arg0: i32) -> (i32, i32) {
    %c0_i32 = arith.constant 0 : i32
    %c0_i32_0 = arith.constant 0 : i32
    %c0_i32_1 = arith.constant 0 : i32
    return %c0_i32, %c0_i32_0 : i32, i32
  }
  func.func @transform_3(%arg0: i32) -> (i32, i32) {
    %c0_i32 = arith.constant 0 : i32
    %c0_i32_0 = arith.constant 0 : i32
    %c0_i32_1 = arith.constant 0 : i32
    return %c0_i32, %c0_i32_0 : i32, i32
  }
  func.func @transform_4(%arg0: i32) -> (i32, i32) {
    %c0_i32 = arith.constant 0 : i32
    %c0_i32_0 = arith.constant 0 : i32
    %c0_i32_1 = arith.constant 0 : i32
    return %c0_i32, %c0_i32_0 : i32, i32
  }
  func.func @transform_5(%arg0: i32) -> (i32, i32) {
    %c0_i32 = arith.constant 0 : i32
    %c0_i32_0 = arith.constant 0 : i32
    %c0_i32_1 = arith.constant 0 : i32
    return %c0_i32, %c0_i32_0 : i32, i32
  }
  func.func @transform_6(%arg0: i32) -> (i32, i32) {
    %c0_i32 = arith.constant 0 : i32
    %c0_i32_0 = arith.constant 0 : i32
    %c0_i32_1 = arith.constant 0 : i32
    return %c0_i32, %c0_i32_0 : i32, i32
  }
  func.func @transform_7(%arg0: i32) -> (i32, i32) {
    %c0_i32 = arith.constant 0 : i32
    %c0_i32_0 = arith.constant 0 : i32
    %c0_i32_1 = arith.constant 0 : i32
    return %c0_i32, %c0_i32_0 : i32, i32
  }
  func.func @transform_8(%arg0: i32) -> (i32, i32) {
    %c0_i32 = arith.constant 0 : i32
    %c0_i32_0 = arith.constant 0 : i32
    %c0_i32_1 = arith.constant 0 : i32
    return %c0_i32, %c0_i32_0 : i32, i32
  }
  func.func @transform_9(%arg0: i32) -> (i32, i32) {
    %c0_i32 = arith.constant 0 : i32
    %c0_i32_0 = arith.constant 0 : i32
    %c0_i32_1 = arith.constant 0 : i32
    return %c0_i32, %c0_i32_0 : i32, i32
  }
  func.func @transform_10(%arg0: i32) -> (i32, i32) {
    %c0_i32 = arith.constant 0 : i32
    %c0_i32_0 = arith.constant 0 : i32
    %c0_i32_1 = arith.constant 0 : i32
    return %c0_i32, %c0_i32_0 : i32, i32
  }
  func.func @transform_11(%arg0: i32) -> (i32, i32) {
    %c0_i32 = arith.constant 0 : i32
    %c0_i32_0 = arith.constant 0 : i32
    %c0_i32_1 = arith.constant 0 : i32
    return %c0_i32, %c0_i32_0 : i32, i32
  }
  func.func @transform_12(%arg0: i32) -> (i32, i32) {
    %c0_i32 = arith.constant 0 : i32
    %c0_i32_0 = arith.constant 0 : i32
    %c0_i32_1 = arith.constant 0 : i32
    return %c0_i32, %c0_i32_0 : i32, i32
  }
  func.func @transform_13(%arg0: i32) -> (i32, i32) {
    %c0_i32 = arith.constant 0 : i32
    %c0_i32_0 = arith.constant 0 : i32
    return %arg0, %c0_i32 : i32, i32
  }
}

module attributes {stable_mosaic.version = 11 : i64} {
  func.func @_attn_pool_kernel(%arg0: i32, %arg1: memref<8x16x32xbf16, #tpu.memory_space<vmem>>, %arg2: memref<1x32xf32, #tpu.memory_space<vmem>>, %arg3: memref<16x32xf32, #tpu.memory_space<vmem>>, %arg4: memref<32x32xbf16, #tpu.memory_space<vmem>>, %arg5: memref<32x32xbf16, #tpu.memory_space<vmem>>, %arg6: memref<32x32xbf16, #tpu.memory_space<vmem>>, %arg7: memref<1x32xf32, #tpu.memory_space<vmem>>, %arg8: memref<1x32xf32, #tpu.memory_space<vmem>>, %arg9: memref<1x32xf32, #tpu.memory_space<vmem>>, %arg10: memref<32x16xbf16, #tpu.memory_space<vmem>>, %arg11: memref<1x16xf32, #tpu.memory_space<vmem>>, %arg12: memref<32x4xbf16, #tpu.memory_space<vmem>>, %arg13: memref<4x32xbf16, #tpu.memory_space<vmem>>, %arg14: memref<8x16xf32, #tpu.memory_space<vmem>>) attributes {dimension_semantics = [#tpu.dimension_semantics<parallel>], iteration_bounds = array<i64: 2>, scalar_prefetch = 0 : i64, scratch_operands = 0 : i64, tpu.core_type = #tpu.core_type<tc>, window_params = [{transform_indices = @transform_0, window_bounds = array<i64: 8, 16, 32>}, {pipeline_mode = #tpu.pipeline_mode<synchronous>, transform_indices = @transform_1, window_bounds = array<i64: 1, 32>}, {pipeline_mode = #tpu.pipeline_mode<synchronous>, transform_indices = @transform_2, window_bounds = array<i64: 16, 32>}, {pipeline_mode = #tpu.pipeline_mode<synchronous>, transform_indices = @transform_3, window_bounds = array<i64: 32, 32>}, {pipeline_mode = #tpu.pipeline_mode<synchronous>, transform_indices = @transform_4, window_bounds = array<i64: 32, 32>}, {pipeline_mode = #tpu.pipeline_mode<synchronous>, transform_indices = @transform_5, window_bounds = array<i64: 32, 32>}, {pipeline_mode = #tpu.pipeline_mode<synchronous>, transform_indices = @transform_6, window_bounds = array<i64: 1, 32>}, {pipeline_mode = #tpu.pipeline_mode<synchronous>, transform_indices = @transform_7, window_bounds = array<i64: 1, 32>}, {pipeline_mode = #tpu.pipeline_mode<synchronous>, transform_indices = @transform_8, window_bounds = array<i64: 1, 32>}, {pipeline_mode = #tpu.pipeline_mode<synchronous>, transform_indices = @transform_9, window_bounds = array<i64: 32, 16>}, {pipeline_mode = #tpu.pipeline_mode<synchronous>, transform_indices = @transform_10, window_bounds = array<i64: 1, 16>}, {pipeline_mode = #tpu.pipeline_mode<synchronous>, transform_indices = @transform_11, window_bounds = array<i64: 32, 4>}, {pipeline_mode = #tpu.pipeline_mode<synchronous>, transform_indices = @transform_12, window_bounds = array<i64: 4, 32>}, {transform_indices = @transform_13, window_bounds = array<i64: 8, 16>}]} {
    %c0 = arith.constant 0 : index
    %c0_0 = arith.constant 0 : index
    %c0_1 = arith.constant 0 : index
    %0 = vector.load %arg1[%c0, %c0_0, %c0_1] : memref<8x16x32xbf16, #tpu.memory_space<vmem>>, vector<8x16x32xbf16>
    %1 = arith.extf %0 : vector<8x16x32xbf16> to vector<8x16x32xf32>
    %cst = arith.constant dense<0.000000e+00> : vector<8x32xf32>
    %2 = vector.multi_reduction <add>, %1, %cst [1] : vector<8x16x32xf32> to vector<8x32xf32>
    %cst_2 = arith.constant 1.600000e+01 : f32
    %3 = vector.broadcast %cst_2 : f32 to vector<8x32xf32>
    %4 = arith.divf %2, %3 : vector<8x32xf32>
    %c0_3 = arith.constant 0 : index
    %c0_4 = arith.constant 0 : index
    %5 = vector.load %arg2[%c0_3, %c0_4] : memref<1x32xf32, #tpu.memory_space<vmem>>, vector<1x32xf32>
    %6 = vector.broadcast %5 : vector<1x32xf32> to vector<8x32xf32>
    %7 = arith.addf %4, %6 : vector<8x32xf32>
    %c0_5 = arith.constant 0 : index
    %c0_6 = arith.constant 0 : index
    %8 = vector.load %arg3[%c0_5, %c0_6] : memref<16x32xf32, #tpu.memory_space<vmem>>, vector<16x32xf32>
    %9 = vector.shape_cast %8 : vector<16x32xf32> to vector<1x16x32xf32>
    %10 = vector.broadcast %9 : vector<1x16x32xf32> to vector<8x16x32xf32>
    %11 = arith.addf %1, %10 : vector<8x16x32xf32>
    %12 = arith.truncf %7 : vector<8x32xf32> to vector<8x32xbf16>
    %13 = arith.truncf %11 : vector<8x16x32xf32> to vector<8x16x32xbf16>
    %14 = vector.shape_cast %13 : vector<8x16x32xbf16> to vector<128x32xbf16>
    %c0_7 = arith.constant 0 : index
    %c0_8 = arith.constant 0 : index
    %15 = vector.load %arg4[%c0_7, %c0_8] : memref<32x32xbf16, #tpu.memory_space<vmem>>, vector<32x32xbf16>
    %cst_9 = arith.constant dense<0.000000e+00> : vector<8x32xf32>
    %16 = tpu.matmul %12, %15, %cst_9 {dimension_numbers = #tpu.dot_dimension_numbers<[1], [0], [0], [1], [0, 0, 1, 1], [], []>} : vector<8x32xbf16>, vector<32x32xbf16>, vector<8x32xf32> -> vector<8x32xf32>
    %c0_10 = arith.constant 0 : index
    %c0_11 = arith.constant 0 : index
    %17 = vector.load %arg7[%c0_10, %c0_11] : memref<1x32xf32, #tpu.memory_space<vmem>>, vector<1x32xf32>
    %18 = vector.broadcast %17 : vector<1x32xf32> to vector<8x32xf32>
    %19 = arith.addf %16, %18 : vector<8x32xf32>
    %cst_12 = arith.constant 0.353553385 : f32
    %20 = vector.broadcast %cst_12 : f32 to vector<8x32xf32>
    %21 = arith.mulf %19, %20 : vector<8x32xf32>
    %c0_13 = arith.constant 0 : index
    %c0_14 = arith.constant 0 : index
    %22 = vector.load %arg5[%c0_13, %c0_14] : memref<32x32xbf16, #tpu.memory_space<vmem>>, vector<32x32xbf16>
    %cst_15 = arith.constant dense<0.000000e+00> : vector<8x32xf32>
    %23 = tpu.matmul %12, %22, %cst_15 {dimension_numbers = #tpu.dot_dimension_numbers<[1], [0], [0], [1], [0, 0, 1, 1], [], []>} : vector<8x32xbf16>, vector<32x32xbf16>, vector<8x32xf32> -> vector<8x32xf32>
    %c0_16 = arith.constant 0 : index
    %c0_17 = arith.constant 0 : index
    %24 = vector.load %arg8[%c0_16, %c0_17] : memref<1x32xf32, #tpu.memory_space<vmem>>, vector<1x32xf32>
    %25 = vector.broadcast %24 : vector<1x32xf32> to vector<8x32xf32>
    %26 = arith.addf %23, %25 : vector<8x32xf32>
    %c0_18 = arith.constant 0 : index
    %c0_19 = arith.constant 0 : index
    %27 = vector.load %arg6[%c0_18, %c0_19] : memref<32x32xbf16, #tpu.memory_space<vmem>>, vector<32x32xbf16>
    %cst_20 = arith.constant dense<0.000000e+00> : vector<8x32xf32>
    %28 = tpu.matmul %12, %27, %cst_20 {dimension_numbers = #tpu.dot_dimension_numbers<[1], [0], [0], [1], [0, 0, 1, 1], [], []>} : vector<8x32xbf16>, vector<32x32xbf16>, vector<8x32xf32> -> vector<8x32xf32>
    %c0_21 = arith.constant 0 : index
    %c0_22 = arith.constant 0 : index
    %29 = vector.load %arg9[%c0_21, %c0_22] : memref<1x32xf32, #tpu.memory_space<vmem>>, vector<1x32xf32>
    %30 = vector.broadcast %29 : vector<1x32xf32> to vector<8x32xf32>
    %31 = arith.addf %28, %30 : vector<8x32xf32>
    %c0_23 = arith.constant 0 : index
    %c0_24 = arith.constant 0 : index
    %32 = vector.load %arg5[%c0_23, %c0_24] : memref<32x32xbf16, #tpu.memory_space<vmem>>, vector<32x32xbf16>
    %cst_25 = arith.constant dense<0.000000e+00> : vector<128x32xf32>
    %33 = tpu.matmul %14, %32, %cst_25 {dimension_numbers = #tpu.dot_dimension_numbers<[1], [0], [0], [1], [0, 0, 1, 1], [], []>} : vector<128x32xbf16>, vector<32x32xbf16>, vector<128x32xf32> -> vector<128x32xf32>
    %c0_26 = arith.constant 0 : index
    %c0_27 = arith.constant 0 : index
    %34 = vector.load %arg8[%c0_26, %c0_27] : memref<1x32xf32, #tpu.memory_space<vmem>>, vector<1x32xf32>
    %35 = vector.broadcast %34 : vector<1x32xf32> to vector<128x32xf32>
    %36 = arith.addf %33, %35 : vector<128x32xf32>
    %37 = vector.shape_cast %36 : vector<128x32xf32> to vector<8x16x32xf32>
    %c0_28 = arith.constant 0 : index
    %c0_29 = arith.constant 0 : index
    %38 = vector.load %arg6[%c0_28, %c0_29] : memref<32x32xbf16, #tpu.memory_space<vmem>>, vector<32x32xbf16>
    %cst_30 = arith.constant dense<0.000000e+00> : vector<128x32xf32>
    %39 = tpu.matmul %14, %38, %cst_30 {dimension_numbers = #tpu.dot_dimension_numbers<[1], [0], [0], [1], [0, 0, 1, 1], [], []>} : vector<128x32xbf16>, vector<32x32xbf16>, vector<128x32xf32> -> vector<128x32xf32>
    %c0_31 = arith.constant 0 : index
    %c0_32 = arith.constant 0 : index
    %40 = vector.load %arg9[%c0_31, %c0_32] : memref<1x32xf32, #tpu.memory_space<vmem>>, vector<1x32xf32>
    %41 = vector.broadcast %40 : vector<1x32xf32> to vector<128x32xf32>
    %42 = arith.addf %39, %41 : vector<128x32xf32>
    %43 = vector.shape_cast %42 : vector<128x32xf32> to vector<8x16x32xf32>
    %44 = arith.mulf %21, %26 : vector<8x32xf32>
    %c0_33 = arith.constant 0 : index
    %c0_34 = arith.constant 0 : index
    %45 = vector.load %arg12[%c0_33, %c0_34] : memref<32x4xbf16, #tpu.memory_space<vmem>>, vector<32x4xbf16>
    %cst_35 = arith.constant dense<0.000000e+00> : vector<8x4xf32>
    %46 = tpu.matmul %44, %45, %cst_35 {dimension_numbers = #tpu.dot_dimension_numbers<[1], [0], [0], [1], [0, 0, 1, 1], [], []>} : vector<8x32xf32>, vector<32x4xbf16>, vector<8x4xf32> -> vector<8x4xf32>
    %47 = vector.shape_cast %21 : vector<8x32xf32> to vector<8x1x32xf32>
    %48 = vector.broadcast %47 : vector<8x1x32xf32> to vector<8x16x32xf32>
    %49 = arith.mulf %37, %48 : vector<8x16x32xf32>
    %50 = vector.shape_cast %49 : vector<8x16x32xf32> to vector<128x32xf32>
    %c0_36 = arith.constant 0 : index
    %c0_37 = arith.constant 0 : index
    %51 = vector.load %arg12[%c0_36, %c0_37] : memref<32x4xbf16, #tpu.memory_space<vmem>>, vector<32x4xbf16>
    %cst_38 = arith.constant dense<0.000000e+00> : vector<128x4xf32>
    %52 = tpu.matmul %50, %51, %cst_38 {dimension_numbers = #tpu.dot_dimension_numbers<[1], [0], [0], [1], [0, 0, 1, 1], [], []>} : vector<128x32xf32>, vector<32x4xbf16>, vector<128x4xf32> -> vector<128x4xf32>
    %53 = vector.shape_cast %52 : vector<128x4xf32> to vector<8x16x4xf32>
    %cst_39 = arith.constant dense<0xFF800000> : vector<8x4xf32>
    %54 = vector.multi_reduction <maximumf>, %53, %cst_39 [1] : vector<8x16x4xf32> to vector<8x4xf32>
    %55 = arith.maximumf %46, %54 : vector<8x4xf32>
    %56 = arith.subf %46, %55 : vector<8x4xf32>
    %57 = math.exp %56 : vector<8x4xf32>
    %58 = vector.shape_cast %55 : vector<8x4xf32> to vector<8x1x4xf32>
    %59 = vector.broadcast %58 : vector<8x1x4xf32> to vector<8x16x4xf32>
    %60 = arith.subf %53, %59 : vector<8x16x4xf32>
    %61 = math.exp %60 : vector<8x16x4xf32>
    %cst_40 = arith.constant dense<0.000000e+00> : vector<8x4xf32>
    %62 = vector.multi_reduction <add>, %61, %cst_40 [1] : vector<8x16x4xf32> to vector<8x4xf32>
    %63 = arith.addf %57, %62 : vector<8x4xf32>
    %c0_41 = arith.constant 0 : index
    %c0_42 = arith.constant 0 : index
    %64 = vector.load %arg13[%c0_41, %c0_42] : memref<4x32xbf16, #tpu.memory_space<vmem>>, vector<4x32xbf16>
    %cst_43 = arith.constant dense<0.000000e+00> : vector<8x32xf32>
    %65 = tpu.matmul %57, %64, %cst_43 {dimension_numbers = #tpu.dot_dimension_numbers<[1], [0], [0], [1], [0, 0, 1, 1], [], []>} : vector<8x4xf32>, vector<4x32xbf16>, vector<8x32xf32> -> vector<8x32xf32>
    %66 = arith.mulf %65, %31 : vector<8x32xf32>
    %67 = vector.shape_cast %61 : vector<8x16x4xf32> to vector<128x4xf32>
    %c0_44 = arith.constant 0 : index
    %c0_45 = arith.constant 0 : index
    %68 = vector.load %arg13[%c0_44, %c0_45] : memref<4x32xbf16, #tpu.memory_space<vmem>>, vector<4x32xbf16>
    %cst_46 = arith.constant dense<0.000000e+00> : vector<128x32xf32>
    %69 = tpu.matmul %67, %68, %cst_46 {dimension_numbers = #tpu.dot_dimension_numbers<[1], [0], [0], [1], [0, 0, 1, 1], [], []>} : vector<128x4xf32>, vector<4x32xbf16>, vector<128x32xf32> -> vector<128x32xf32>
    %70 = vector.shape_cast %69 : vector<128x32xf32> to vector<8x16x32xf32>
    %71 = arith.mulf %70, %43 : vector<8x16x32xf32>
    %cst_47 = arith.constant dense<0.000000e+00> : vector<8x32xf32>
    %72 = vector.multi_reduction <add>, %71, %cst_47 [1] : vector<8x16x32xf32> to vector<8x32xf32>
    %c0_48 = arith.constant 0 : index
    %c0_49 = arith.constant 0 : index
    %73 = vector.load %arg13[%c0_48, %c0_49] : memref<4x32xbf16, #tpu.memory_space<vmem>>, vector<4x32xbf16>
    %cst_50 = arith.constant dense<0.000000e+00> : vector<8x32xf32>
    %74 = tpu.matmul %63, %73, %cst_50 {dimension_numbers = #tpu.dot_dimension_numbers<[1], [0], [0], [1], [0, 0, 1, 1], [], []>} : vector<8x4xf32>, vector<4x32xbf16>, vector<8x32xf32> -> vector<8x32xf32>
    %75 = arith.addf %66, %72 : vector<8x32xf32>
    %76 = tpu.reciprocal %74 {approx = true} : vector<8x32xf32> -> vector<8x32xf32>
    %77 = arith.mulf %75, %76 : vector<8x32xf32>
    %78 = arith.truncf %77 : vector<8x32xf32> to vector<8x32xbf16>
    %c0_51 = arith.constant 0 : index
    %c0_52 = arith.constant 0 : index
    %79 = vector.load %arg10[%c0_51, %c0_52] : memref<32x16xbf16, #tpu.memory_space<vmem>>, vector<32x16xbf16>
    %cst_53 = arith.constant dense<0.000000e+00> : vector<8x16xf32>
    %80 = tpu.matmul %78, %79, %cst_53 {dimension_numbers = #tpu.dot_dimension_numbers<[1], [0], [0], [1], [0, 0, 1, 1], [], []>} : vector<8x32xbf16>, vector<32x16xbf16>, vector<8x16xf32> -> vector<8x16xf32>
    %c0_54 = arith.constant 0 : index
    %c0_55 = arith.constant 0 : index
    %81 = vector.load %arg11[%c0_54, %c0_55] : memref<1x16xf32, #tpu.memory_space<vmem>>, vector<1x16xf32>
    %82 = vector.broadcast %81 : vector<1x16xf32> to vector<8x16xf32>
    %83 = arith.addf %80, %82 : vector<8x16xf32>
    %c0_56 = arith.constant 0 : index
    %c0_57 = arith.constant 0 : index
    %84 = vector.load %arg14[%c0_56, %c0_57] : memref<8x16xf32, #tpu.memory_space<vmem>>, vector<8x16xf32>
    tpu.vector_store %arg14[%c0_56, %c0_57], %83 {strides = array<i32>} : memref<8x16xf32, #tpu.memory_space<vmem>>, vector<8x16xf32>,
    return
  }
  func.func @transform_0(%arg0: i32) -> (i32, i32, i32) {
    %c0_i32 = arith.constant 0 : i32
    %c0_i32_0 = arith.constant 0 : i32
    %c0_i32_1 = arith.constant 0 : i32
    return %arg0, %c0_i32, %c0_i32_0 : i32, i32, i32
  }
  func.func @transform_1(%arg0: i32) -> (i32, i32) {
    %c0_i32 = arith.constant 0 : i32
    %c0_i32_0 = arith.constant 0 : i32
    %c0_i32_1 = arith.constant 0 : i32
    return %c0_i32, %c0_i32_0 : i32, i32
  }
  func.func @transform_2(%arg0: i32) -> (i32, i32) {
    %c0_i32 = arith.constant 0 : i32
    %c0_i32_0 = arith.constant 0 : i32
    %c0_i32_1 = arith.constant 0 : i32
    return %c0_i32, %c0_i32_0 : i32, i32
  }
  func.func @transform_3(%arg0: i32) -> (i32, i32) {
    %c0_i32 = arith.constant 0 : i32
    %c0_i32_0 = arith.constant 0 : i32
    %c0_i32_1 = arith.constant 0 : i32
    return %c0_i32, %c0_i32_0 : i32, i32
  }
  func.func @transform_4(%arg0: i32) -> (i32, i32) {
    %c0_i32 = arith.constant 0 : i32
    %c0_i32_0 = arith.constant 0 : i32
    %c0_i32_1 = arith.constant 0 : i32
    return %c0_i32, %c0_i32_0 : i32, i32
  }
  func.func @transform_5(%arg0: i32) -> (i32, i32) {
    %c0_i32 = arith.constant 0 : i32
    %c0_i32_0 = arith.constant 0 : i32
    %c0_i32_1 = arith.constant 0 : i32
    return %c0_i32, %c0_i32_0 : i32, i32
  }
  func.func @transform_6(%arg0: i32) -> (i32, i32) {
    %c0_i32 = arith.constant 0 : i32
    %c0_i32_0 = arith.constant 0 : i32
    %c0_i32_1 = arith.constant 0 : i32
    return %c0_i32, %c0_i32_0 : i32, i32
  }
  func.func @transform_7(%arg0: i32) -> (i32, i32) {
    %c0_i32 = arith.constant 0 : i32
    %c0_i32_0 = arith.constant 0 : i32
    %c0_i32_1 = arith.constant 0 : i32
    return %c0_i32, %c0_i32_0 : i32, i32
  }
  func.func @transform_8(%arg0: i32) -> (i32, i32) {
    %c0_i32 = arith.constant 0 : i32
    %c0_i32_0 = arith.constant 0 : i32
    %c0_i32_1 = arith.constant 0 : i32
    return %c0_i32, %c0_i32_0 : i32, i32
  }
  func.func @transform_9(%arg0: i32) -> (i32, i32) {
    %c0_i32 = arith.constant 0 : i32
    %c0_i32_0 = arith.constant 0 : i32
    %c0_i32_1 = arith.constant 0 : i32
    return %c0_i32, %c0_i32_0 : i32, i32
  }
  func.func @transform_10(%arg0: i32) -> (i32, i32) {
    %c0_i32 = arith.constant 0 : i32
    %c0_i32_0 = arith.constant 0 : i32
    %c0_i32_1 = arith.constant 0 : i32
    return %c0_i32, %c0_i32_0 : i32, i32
  }
  func.func @transform_11(%arg0: i32) -> (i32, i32) {
    %c0_i32 = arith.constant 0 : i32
    %c0_i32_0 = arith.constant 0 : i32
    %c0_i32_1 = arith.constant 0 : i32
    return %c0_i32, %c0_i32_0 : i32, i32
  }
  func.func @transform_12(%arg0: i32) -> (i32, i32) {
    %c0_i32 = arith.constant 0 : i32
    %c0_i32_0 = arith.constant 0 : i32
    %c0_i32_1 = arith.constant 0 : i32
    return %c0_i32, %c0_i32_0 : i32, i32
  }
  func.func @transform_13(%arg0: i32) -> (i32, i32) {
    %c0_i32 = arith.constant 0 : i32
    %c0_i32_0 = arith.constant 0 : i32
    return %arg0, %c0_i32 : i32, i32
  }
}

</mosaic_0001>

<bundles_post_ra>
// kernel: tpu_custom_call.1
= control target key start
LH: loop header
LB: loop body
LE: loop exit
PB: predicated region body
PF: predicated region fallthrough
CT: control target
= control target key end

     0   :  { %s3005_s0 = inlined_call_operand.hbm [shape: bf16[16,16,32], index: 0, kind: input, shape index: {}]   ;;  %s3006_s1 = inlined_call_operand.vmem [shape: f32[1,32], index: 1, kind: input, shape index: {}]   ;;  %s3007_s2 = inlined_call_operand.vmem [shape: f32[16,32], index: 2, kind: input, shape index: {}]   ;;  %s3008_s3 = inlined_call_operand.vmem [shape: bf16[32,32], index: 3, kind: input, shape index: {}]   ;;  %s3009_s4 = inlined_call_operand.hbm [shape: bf16[32,32], index: 4, kind: input, shape index: {}]   ;;  %s3010_s5 = inlined_call_operand.hbm [shape: bf16[32,32], index: 5, kind: input, shape index: {}]   ;;  %s3011_s6 = inlined_call_operand.vmem [shape: f32[1,32], index: 6, kind: input, shape index: {}]   ;;  %s3012_s7 = inlined_call_operand.vmem [shape: f32[1,32], index: 7, kind: input, shape index: {}]   ;;  %s3013_s8 = inlined_call_operand.vmem [shape: f32[1,32], index: 8, kind: input, shape index: {}]   ;;  %s3014_s9 = inlined_call_operand.vmem [shape: bf16[32,16], index: 9, kind: input, shape index: {}]   ;;  %s3015_s10 = inlined_call_operand.vmem [shape: f32[1,16], index: 10, kind: input, shape index: {}]   ;;  %s3016_s11 = inlined_call_operand.vmem [shape: bf16[32,4], index: 11, kind: input, shape index: {}]   ;;  %s3017_s12 = inlined_call_operand.vmem [shape: bf16[4,32], index: 12, kind: input, shape index: {}]   ;;  %s3018_s13 = inlined_call_operand.hbm [shape: f32[16,16], index: 13, kind: output, shape index: {}]  }
   0x1   :  { %3026 = sst [smem:[#allocation17_spill]] %s3009_s4 }
   0x2   :  { %3027 = sst [smem:[#allocation18_spill]] %s3010_s5 }
   0x3   :  { %18 = vsyncpa [#allocation3], 0 }
   0x4   :  { %20 = vsyncpa [#allocation3 + $0x1], 0 }
   0x5   :  { %21 = vsyncpa [#allocation6], 0 }
   0x6   :  { %22 = vsyncpa [#allocation4], 0 }
   0x7   :  { %24 = vsyncpa [#allocation4 + $0x1], 0  ;;  %s2311_s25 = smov 0   ;;  %s2313_s26 = smov 0  }
   0x8   :  { %s2315_s27 = smov 0   ;;  %s2317_s28 = smov 0  }
   0x9 LB: > { %3028 = sst [smem:[#allocation12_spill]] %s2222_s25  ;;  %s2332_s29 = sadd.s32 4294967295, %s2234_s28   ;;  %s2234_s28 = sphi %s2317_s28, %s3045_s28   ;;  %s2230_s27 = sphi %s2315_s27, %s3047_s27   ;;  %s2226_s26 = sphi %s2313_s26, %s3049_s26   ;;  %s2222_s25 = sphi %s2311_s25, %s3048_s25  }
   0xa   : > { %3029 = sst [smem:[#allocation13_spill]] %s2230_s27  ;;  %s1797_s30 = sadd.s32 4294967294, %s2234_s28  }
   0xb   : > { %p50_p0 = scmp.ne.s32.totalorder %s2226_s26, %s2222_s25  ;;  %p51_p1 = scmp.eq.s32.totalorder %s2332_s29, 0 }
   0xc   : > { %p326_p2 = scmp.eq.s32.totalorder %s2332_s29, 1  ;;  %p332_p3 = scmp.eq.s32.totalorder %s1797_s30, 1 }
   0xd   : > { %p2341_p4 = por %p51_p1, %p50_p0  ;;  %p1798_p5 = scmp.ge.s32.totalorder %s2234_s28, 1 }
   0xe   : > { %p2346_p6 = por %p332_p3, %p50_p0  ;;  %p339_p7 = scmp.lt.s32.totalorder %s2234_s28, 3 }
   0xf   : > { %s3033_s4 = sld [smem:[#allocation17_spill]]  ;;  %s2236_s20 = smov [#allocation5]  }
  0x10   : > { %s3031_s15 = scalar_select %p2346_p6, 1, 0 }
  0x11   : > { %p2354_p8 = pnand %p1798_p5, %p339_p7  ;;  %s361_s21 = sshll.u32 %s2236_s20, 4  ;;  %s362_s21 = int_to_ptr.vmem [resolvable:$true] %s361_s21 }
  0x12   : > { %3032 = sst [smem:[#allocation14_spill]] %s3031_s15  ;;  %s3019_s30 = smov 64  }
  0x13   : > { %p1973_p9 = pneg %p2354_p8  ;;  %s3035_s5 = sld [smem:[#allocation18_spill]] }
  0x14   : > { %s3020_s16 = smov 4   ;;  %s2239_s17 = smov [#allocation7]  }
  0x15   : > { %s359_s18 = sshll.u32 %s3033_s4, 4  ;;  %p1974_p10 = pnand %p1973_p9, %p51_p1  ;;  %s360_s18 = int_to_ptr.hbm [resolvable:$true] %s359_s18 }
  0x16   : > { %s375_s20 = sshll.u32 %s2239_s17, 4  ;;  %s2373_s22 = sadd.s32 1, %s2234_s28   ;;  %s376_s20 = int_to_ptr.vmem [resolvable:$true] %s375_s20 }
  0x17   : > { %1976 = dma.hbm_to_vmem [thread:$0]  (!%p1974_p10), %s360_s18, 256, %s362_s21, [#allocation6], %s3019_s30, %s3019_s30, %s3020_s16  }
  0x18   : > { %3036 = sst [smem:[#allocation15_spill]] %s2373_s22  ;;  %s37_s23 = sadd.s32 1, %s2230_s27 }
  0x19   : > { %s373_s24 = sshll.u32 %s3035_s5, 4  ;;  %s34_s4 = ssub.s32 %s2234_s28, %s2373_s22  ;;  %s374_s24 = int_to_ptr.hbm [resolvable:$true] %s373_s24 }
  0x1a   : > { %1979 = dma.hbm_to_vmem [thread:$0]  (!%p1974_p10), %s374_s24, 256, %s376_s20, [#allocation6], %s3019_s30, %s3019_s30, %s3020_s16  }
  0x1b   : > { %p44_p12 = scmp.ne.s32.totalorder %s2230_s27, %s2226_s26  ;;  %p35_p13 = scmp.eq.s32.totalorder %s34_s4, 0 }
  0x1c   : > { %p45_p0 = scmp.eq.s32.totalorder %s2234_s28, 0  ;;  %p1990_p5 = scmp.lt.s32.totalorder %s2234_s28, 2 }
  0x1d   : > { %p2383_p3 = por %p326_p2, %p44_p12  ;;  %s410_s21 = sand.u32 1, %s2230_s27  }
  0x1e   : > { %s2389_s18 = scalar_select %p35_p13, %s2230_s27, %s37_s23  }
  0x1f   : > { %p46_p7 = por %p45_p0, %p44_p12  ;;  %s1802_s17 = sshll.u32 %s410_s21, 6 }
  0x20   : > { %3038 = sst [smem:[#allocation16_spill]] %s2389_s18  ;;  %s1911_s24 = sshll.u32 %s2234_s28, 6 }
  0x21   : > { %s420_s16 = scalar_lea.hbm %s3005_s0, %s1911_s24  ;;  %s414_s22 = scalar_lea.vmem [#allocation2], %s1802_s17 }
  0x22   : > { %s423_s15 = sshll.u32 %s414_s22, 4  ;;  %s421_s4 = sshll.u32 %s420_s16, 4  ;;  %s424_s15 = int_to_ptr.vmem [resolvable:$true] %s423_s15  ;;  %s422_s4 = int_to_ptr.hbm [resolvable:$true] %s421_s4 }
  0x23   : > { %p2396_p2 = pnand %p1990_p5, %p46_p7  ;;  %s411_s23 = scalar_lea.sflag [#allocation3], %s410_s21 }
  0x24   : > { %s2134_s18 = sshra.s32 %s422_s4, 4  ;;  %s2141_s16 = scalar_lea.hbm %s3005_s0, 128  ;;  %s2135_s18 = int_to_ptr.hbm [resolvable:$true] %s2134_s18 }
  0x25   : > { %s2136_s27 = scalar_lea.hbm %s2135_s18, 64  ;;  %p2138_p10 = pneg %p2396_p2 }
  0x26   : > { %p2137_p9 = scmp.ne.s32.totalorder %s2135_s18, %s2136_s27  ;;  %p2142_p0 = scmp.lt.s32.totalorder %s2135_s18, %s3005_s0 }
  0x27   : > { %p2143_p5 = scmp.lt.s32.totalorder %s2141_s16, %s2136_s27 }
  0x28   : > { %p2139_p12 = pnand %p2138_p10, %p2137_p9 }
  0x29   : > { %p2144_p7 = por %p2143_p5, %p2142_p0 }
  0x2a   : > { %p2140_p13 = pneg %p2139_p12 }
  0x2c   : > { %p2145_p11 = pnand %p2144_p7, %p2140_p13 }
  0x2e   : > { %2148 = shalt.err (!%p2145_p11)
}
  0x2f   : > { %s3040_s21 = smov 4   ;;  %s3041_s20 = smov 64  }
  0x30   : > { %1983 = dma.hbm_to_vmem [thread:$0]  (!%p2396_p2), %s422_s4, 1024, %s424_s15, %s411_s23, %s3041_s20, %s3041_s20, %s3040_s21  }
  0x31   : > { %435 = sbr.rel (%p2354_p8) target bundleno = 941 (0x3ad), region = 72  ;;  %s2416_s30 = sand.u32 (!%p2354_p8), 1, %s2226_s26  }
  0x32   : > { %s1807_s18 = sshll.u32 (!%p2354_p8), %s2416_s30, 6  ;;  %s438_s27 = scalar_lea.sflag (!%p2354_p8), [#allocation3], %s2416_s30 }
  0x33   : > { %s2420_s17 = scalar_lea.vmem (!%p2354_p8), [#allocation2], %s1807_s18 }
  0x36   : > { %2209 = dma.done.wait (%p2341_p4), %s438_s27, 1024  }
  0x37   : > { %2211 = vsyncadd (%p2341_p4), %s438_s27, 4294966272 }
  0x38   : > { %2213 = dma.done.wait (%p51_p1), [#allocation6], 512  }
  0x39   : > { %2215 = vsyncadd (%p51_p1), [#allocation6], 4294966784  ;;  %v2240_v0 = vmov 16.0   ;;  %v1915_v2 = vld [vmem:[#allocation5 + $0x8] sm:$0xff]  ;;  %v1923_v3 = vld [vmem:[%s2420_s17] sm:$0xff]   ;;  %vm529_vm0 = vcmask 261120  }
  0x3a   : > { %2036 = vrcp.f32 %v2240_v0  ;;  %v1914_v4 = vld [vmem:[#allocation5] sm:$0xff]  ;;  %v1924_v5 = vunpack.c.l.bf16 %v1923_v3  ;;  %v1925_v6 = vunpack.c.h.bf16 %v1923_v3  ;;  %882 = vmatpush.bf16.msra.mxu3 %v1915_v2  ;;  %v2439_v9 = vld [vmem:[%s3007_s2 + $0x8] sm:$0xff]  ;;  %772 = vmatpush.bf16.msra.mxu1 %v1915_v2  ;;  %v2449_v16 = vld [vmem:[%s2420_s17 + $0x10] sm:$0xff]   ;;  %vm696_vm2 = vcmask 1041409   ;;  %s1907_s27 = sshll.u32 %s2332_s29, 3  ;;  %s1693_s29 = scalar_lea.sflag [#allocation4], %s2416_s30 }
  0x3b   : > { %v2434_v8 = vld [vmem:[%s3007_s2] sm:$0xff]  ;;  %v1954_v10 = vld [vmem:[%s2420_s17 + $0x8] sm:$0xff]   ;;  %v1932_v24 = vunpack.c.l.bf16 %v2449_v16  ;;  %v2459_v29 = vld [vmem:[%s2420_s17 + $0x18] sm:$0xff]   ;;  %v1933_v37 = vunpack.c.h.bf16 %v2449_v16  ;;  %vm699_vm3 = vcmask 1042434   ;;  %vm702_vm4 = vcmask 1043459   ;;  %s1703_s15 = scalar_lea.hbm %s3018_s13, %s1907_s27  ;;  %s2184_s27 = scalar_lea.hbm %s3018_s13, 16 }
  0x3c   : > { %v1913_v11 = vld [vmem:[%s3008_s3 + $0x8] sm:$0xff]  ;;  %v530_v12 = vsel %vm529_vm0, %v1924_v5, 0.0  ;;  %v531_v13 = vsel %vm529_vm0, %v1925_v6, 0.0  ;;  %v631_v15 = vadd.f32 %v1924_v5, %v2434_v8  ;;  %v632_v18 = vadd.f32 %v1925_v6, %v2439_v9  ;;  %v1912_v21 = vld [vmem:[%s3008_s3] sm:$0xff]  ;;  %v2478_v48 = vld [vmem:[%s2420_s17 + $0x30] sm:$0xff]   ;;  %s1707_s22 = sshll.u32 %s1703_s15, 4  ;;  %s1708_s22 = int_to_ptr.hbm [resolvable:$true] %s1707_s22 }
  0x3d   : > { %v532_v17 = vadd.f32 %v531_v13, %v530_v12  ;;  %v1928_v19 = vunpack.c.l.bf16 %v1954_v10  ;;  %v1929_v20 = vunpack.c.h.bf16 %v1954_v10  ;;  %738 = vmatpush.bf16.msra.mxu0 %v1913_v11  ;;  %v2465_v38 = vld [vmem:[%s2420_s17 + $0x20] sm:$0xff]   ;;  %v1936_v42 = vunpack.c.l.bf16 %v2459_v29  ;;  %v2472_v43 = vld [vmem:[%s2420_s17 + $0x28] sm:$0xff]   ;;  %v2481_v49 = vld [vmem:[%s2420_s17 + $0x38] sm:$0xff]   ;;  %s1810_s17 = sshll.u32 %s2416_s30, 3  ;;  %s2178_s24 = sshra.s32 %s1708_s22, 4  ;;  %s2179_s24 = int_to_ptr.hbm [resolvable:$true] %s2178_s24 }
  0x3e   : > { %v655_v23 = vpack.c.bf16 %v631_v15, %v631_v15  ;;  %883 = vmatpush.bf16.msra.mxu3 %v1914_v4  ;;  %v656_v26 = vpack.c.bf16 %v632_v18, %v632_v18  ;;  %773 = vmatpush.bf16.msra.mxu1 %v1914_v4  ;;  %v1937_v47 = vunpack.c.h.bf16 %v2459_v29  ;;  %v1940_v52 = vunpack.c.l.bf16 %v2465_v38  ;;  %v2518_v18 = vld [vmem:[%s3006_s1] ss:$0 sm:$0xff]  ;;  %s494_s23 = scalar_lea.vmem [#allocation8], %s1810_s17  ;;  %s2180_s21 = scalar_lea.hbm %s2179_s24, 8 }
  0x3f   : > { %v533_v25 = vrot.slane %v532_v17, 4  ;;  %v539_v27 = vsel %vm529_vm0, %v1928_v19, 0.0  ;;  %v540_v28 = vsel %vm529_vm0, %v1929_v20, 0.0  ;;  %v633_v33 = vadd.f32 %v1928_v19, %v2434_v8  ;;  %s1705_s16 = sshll.u32 %s494_s23, 4  ;;  %p2181_p1 = scmp.ne.s32.totalorder %s2179_s24, %s2180_s21  ;;  %s1706_s16 = int_to_ptr.vmem [resolvable:$true] %s1705_s16 }
  0x40   : > { %v2037_v1 = vpop.eup %2036  ;;  %v828_v31 = vunpack.c.l.b16 %v655_v23  ;;  %v541_v32 = vadd.f32 %v540_v28, %v539_v27  ;;  %v829_v35 = vunpack.c.l.b16 %v656_v26  ;;  %v634_v36 = vadd.f32 %v1929_v20, %v2439_v9  ;;  %v1917_v27 = vld [vmem:[#allocation7 + $0x8] sm:$0xff]  ;;  %p2185_p11 = scmp.lt.s32.totalorder %s2179_s24, %s3018_s13  ;;  %p2186_p2 = scmp.lt.s32.totalorder %s2184_s27, %s2180_s21 }
  0x41   : > { %v603_v7 = vmul.f32 16.0, %v2037_v1  ;;  %vm607_vm1 = vweird.f32 %v2037_v1  ;;  %v534_v34 = vadd.f32 %v533_v25, %v532_v17  ;;  %739 = vmatpush.bf16.msra.mxu0 %v1912_v21  ;;  %v657_v41 = vpack.c.bf16 %v633_v33, %v633_v33  ;;  %805 = vmatpush.bf16.msra.mxu2 %v1917_v27  ;;  %p2182_p4 = pnand %p2181_p1, %p2383_p3 }
  0x42   : > { %v542_v40 = vrot.slane %v541_v32, 4  ;;  %v2474_v45 = vpack.c.b16 %v829_v35, %v828_v31  ;;  %v658_v46 = vpack.c.bf16 %v634_v36, %v634_v36  ;;  %v1941_v53 = vunpack.c.h.bf16 %v2465_v38  ;;  %p2187_p9 = por %p2186_p2, %p2185_p11 }
  0x43   : > { %v604_v14 = vsub.f32 1.0, %v603_v7  ;;  %v535_v44 = vrot.slane %v534_v34, 2  ;;  %v830_v51 = vunpack.c.l.b16 %v657_v41  ;;  %v1944_v56 = vunpack.c.l.bf16 %v2472_v43  ;;  %p2183_p8 = pneg %p2182_p4 }
  0x44   : > { %v543_v50 = vadd.f32 %v542_v40, %v541_v32  ;;  %1838 = vmatmul.msk.bf16.vlgmr.msra.gmra.mxu3 %vm529_vm0, %v2474_v45  ;;  %v831_v55 = vunpack.c.l.b16 %v658_v46  ;;  %v1945_v57 = vunpack.c.h.bf16 %v2472_v43  ;;  %v1948_v59 = vunpack.c.l.bf16 %v2478_v48  ;;  %v1916_v40 = vld [vmem:[#allocation7] sm:$0xff] }
  0x45   : > { %v605_v22 = vmul.f32 %v2037_v1, %v604_v14  ;;  %v536_v54 = vadd.f32 %v535_v44, %v534_v34  ;;  %v1949_v60 = vunpack.c.h.bf16 %v2478_v48  ;;  %v1952_v61 = vunpack.c.l.bf16 %v2481_v49  ;;  %931 = vmatpush.bf16.msrb.mxu0 %v1917_v27  ;;  %806 = vmatpush.bf16.msra.mxu2 %v1916_v40  ;;  %p2188_p10 = pnand %p2187_p9, %p2183_p8 }
  0x46   : > { %v544_v58 = vrot.slane %v543_v50, 2  ;;  %v1953_v63 = vunpack.c.h.bf16 %v2481_v49  ;;  %v548_v0 = vsel %vm529_vm0, %v1932_v24, 0.0  ;;  %v557_v4 = vsel %vm529_vm0, %v1936_v42, 0.0 }
  0x47   : > { %v606_v30 = vadd.f32 %v2037_v1, %v605_v22  ;;  %v537_v62 = vrot.slane %v536_v54, 1  ;;  %v558_v5 = vsel %vm529_vm0, %v1937_v47, 0.0  ;;  %v566_v10 = vsel %vm529_vm0, %v1940_v52, 0.0 }
  0x48   : > { %v545_v2 = vadd.f32 %v544_v58, %v543_v50  ;;  %v559_v7 = vadd.f32 %v558_v5, %v557_v4  ;;  %v567_v11 = vsel %vm529_vm0, %v1941_v53, 0.0  ;;  %v575_v15 = vsel %vm529_vm0, %v1944_v56, 0.0 }
  0x49   : > { %v2468_v39 = vsel %vm607_vm1, %v2037_v1, %v606_v30  ;;  %v549_v1 = vsel %vm529_vm0, %v1933_v37, 0.0  ;;  %v538_v6 = vadd.f32 %v537_v62, %v536_v54  ;;  %v568_v14 = vadd.f32 %v567_v11, %v566_v10  ;;  %932 = vmatpush.bf16.msrb.mxu0 %v1916_v40 }
  0x4a   : > { %v550_v3 = vadd.f32 %v549_v1, %v548_v0  ;;  %v546_v12 = vrot.slane %v545_v2, 1  ;;  %v560_v19 = vrot.slane %v559_v7, 4  ;;  %v576_v20 = vsel %vm529_vm0, %v1945_v57, 0.0 }
  0x4b   : > { %v609_v17 = vmul.f32 %v2468_v39, %v538_v6  ;;  %v584_v21 = vsel %vm529_vm0, %v1948_v59, 0.0  ;;  %v569_v25 = vrot.slane %v568_v14, 4  ;;  %v577_v26 = vadd.f32 %v576_v20, %v575_v15 }
  0x4c   : > { %v551_v13 = vrot.slane %v550_v3, 4  ;;  %v547_v22 = vadd.f32 %v546_v12, %v545_v2  ;;  %v561_v30 = vadd.f32 %v560_v19, %v559_v7  ;;  %v585_v31 = vsel %vm529_vm0, %v1949_v60, 0.0 }
  0x4d   : > { %v621_v28 = vadd.f32 %v2518_v18, %v609_v17  ;;  %v593_v32 = vsel %vm529_vm0, %v1952_v61, 0.0  ;;  %v570_v35 = vadd.f32 %v569_v25, %v568_v14  ;;  %v578_v36 = vrot.slane %v577_v26, 4 }
  0x4e   : > { %v552_v23 = vadd.f32 %v551_v13, %v550_v3  ;;  %v610_v33 = vmul.f32 %v2468_v39, %v547_v22  ;;  %v2534_v41 = vpack.c.b16 %v831_v55, %v830_v51  ;;  %v562_v44 = vrot.slane %v561_v30, 2 }
  0x4f   : > { %v586_v46 = vadd.f32 %v585_v31, %v584_v21  ;;  %v594_v50 = vsel %vm529_vm0, %v1953_v63, 0.0  ;;  %v571_v62 = vrot.slane %v570_v35, 2  ;;  %v579_v0 = vadd.f32 %v578_v36, %v577_v26 }
  0x50   : > { %v553_v34 = vrot.slane %v552_v23, 2  ;;  %v622_v54 = vadd.f32 %v2518_v18, %v610_v33  ;;  %v647_v1 = vpack.c.bf16 %v621_v28, %v621_v28  ;;  %v563_v2 = vadd.f32 %v562_v44, %v561_v30 }
  0x51   : > { %v587_v3 = vrot.slane %v586_v46, 4  ;;  %v595_v4 = vadd.f32 %v594_v50, %v593_v32  ;;  %v572_v7 = vadd.f32 %v571_v62, %v570_v35  ;;  %v580_v51 = vrot.slane %v579_v0, 2 }
  0x52   : > { %v554_v58 = vadd.f32 %v553_v34, %v552_v23  ;;  %v648_v5 = vpack.c.bf16 %v622_v54, %v622_v54  ;;  %v564_v55 = vrot.slane %v563_v2, 1  ;;  %v687_v21 = vunpack.c.l.b16 %v647_v1 }
  0x53   : > { %v588_v10 = vadd.f32 %v587_v3, %v586_v46  ;;  %v596_v11 = vrot.slane %v595_v4, 4  ;;  %v573_v13 = vrot.slane %v572_v7, 1  ;;  %v581_v14 = vadd.f32 %v580_v51, %v579_v0 }
  0x54   : > { %v555_v6 = vrot.slane %v554_v58, 1  ;;  %v688_v15 = vunpack.c.l.b16 %v648_v5  ;;  %1839 = vmatmul.msk.bf16.gmra.mxu3 %vm529_vm0, %v2534_v41  ;;  %v565_v17 = vadd.f32 %v564_v55, %v563_v2  ;;  %vm705_vm5 = vcmask 1044484  }
  0x55   : > { %v589_v19 = vrot.slane %v588_v10, 2  ;;  %v597_v20 = vadd.f32 %v596_v11, %v595_v4  ;;  %v574_v22 = vadd.f32 %v573_v13, %v572_v7  ;;  %v582_v23 = vrot.slane %v581_v14, 1 }
  0x56   : > { %v556_v12 = vadd.f32 %v555_v6, %v554_v58  ;;  %v695_v26 = vrot.slane %v688_v15, 7  ;;  %v612_v30 = vmul.f32 %v2468_v39, %v565_v17  ;;  %vm708_vm6 = vcmask 1045509  }
  0x57   : > { %v590_v27 = vadd.f32 %v589_v19, %v588_v10  ;;  %v598_v28 = vrot.slane %v597_v20, 2  ;;  %v583_v31 = vadd.f32 %v582_v23, %v581_v14  ;;  %v613_v32 = vmul.f32 %v2468_v39, %v574_v22 }
  0x58   : > { %v611_v25 = vmul.f32 %v2468_v39, %v556_v12  ;;  %v624_v36 = vadd.f32 %v2518_v18, %v612_v30  ;;  %v697_v50 = vsel %vm696_vm2, %v695_v26, %v687_v21  ;;  %v635_v6 = vadd.f32 %v1932_v24, %v2434_v8 }
  0x59   : > { %v591_v34 = vrot.slane %v590_v27, 1  ;;  %v599_v35 = vadd.f32 %v598_v28, %v597_v20  ;;  %v614_v40 = vmul.f32 %v2468_v39, %v583_v31  ;;  %v625_v44 = vadd.f32 %v2518_v18, %v613_v32 }
  0x5a   : > { %v623_v33 = vadd.f32 %v2518_v18, %v611_v25  ;;  %v650_v62 = vpack.c.bf16 %v624_v36, %v624_v36  ;;  %v636_v10 = vadd.f32 %v1933_v37, %v2439_v9  ;;  %v659_v14 = vpack.c.bf16 %v635_v6, %v635_v6 }
  0x5b   : > { %v592_v54 = vadd.f32 %v591_v34, %v590_v27  ;;  %v600_v58 = vrot.slane %v599_v35, 1  ;;  %v626_v0 = vadd.f32 %v2518_v18, %v614_v40  ;;  %v651_v1 = vpack.c.bf16 %v625_v44, %v625_v44 }
  0x5c   : > { %v649_v46 = vpack.c.bf16 %v623_v33, %v623_v33  ;;  %v690_v5 = vunpack.c.l.b16 %v650_v62  ;;  %v660_v20 = vpack.c.bf16 %v636_v10, %v636_v10  ;;  %v832_v23 = vunpack.c.l.b16 %v659_v14 }
  0x5d   : > { %v601_v3 = vadd.f32 %v600_v58, %v599_v35  ;;  %v615_v4 = vmul.f32 %v2468_v39, %v592_v54  ;;  %v652_v7 = vpack.c.bf16 %v626_v0, %v626_v0  ;;  %v691_v51 = vunpack.c.l.b16 %v651_v1 }
  0x5e   : > { %v689_v2 = vunpack.c.l.b16 %v649_v46  ;;  %v701_v13 = vrot.slane %v690_v5, 5  ;;  %v833_v25 = vunpack.c.l.b16 %v660_v20  ;;  %vm711_vm7 = vcmask 1046534  }
  0x5f   : > { %v616_v11 = vmul.f32 %v2468_v39, %v601_v3  ;;  %v627_v12 = vadd.f32 %v2518_v18, %v615_v4  ;;  %v692_v15 = vunpack.c.l.b16 %v652_v7  ;;  %v704_v19 = vrot.slane %v691_v51, 4 }
  0x60   : > { %v698_v55 = vrot.slane %v689_v2, 6  ;;  %v846_v28 = vpack.c.b16 %v833_v25, %v832_v23  ;;  %vm714_vm8 = vcmask 1047559   ;;  %v638_v32 = vadd.f32 %v1937_v47, %v2439_v9 }
  0x61   : > { %v628_v24 = vadd.f32 %v2518_v18, %v616_v11  ;;  %v653_v21 = vpack.c.bf16 %v627_v12, %v627_v12  ;;  %v707_v37 = vrot.slane %v692_v15, 3  ;;  %v637_v18 = vadd.f32 %v1936_v42, %v2434_v8  ;;  %v1919_v12 = vld [vmem:[%s3016_s11 + $0x8] sm:$0xff] }
  0x62   : > { %v700_v17 = vsel %vm699_vm3, %v698_v55, %v697_v50  ;;  %v662_v44 = vpack.c.bf16 %v638_v32, %v638_v32  ;;  %v639_v29 = vadd.f32 %v1940_v52, %v2434_v8  ;;  %v640_v47 = vadd.f32 %v1941_v53, %v2439_v9  ;;  %1100 = vmatpush.bf16.msrb.mxu2 %v1919_v12 }
  0x63   : > { %v703_v22 = vsel %vm702_vm4, %v701_v13, %v700_v17  ;;  %v654_v39 = vpack.c.bf16 %v628_v24, %v628_v24  ;;  %v693_v26 = vunpack.c.l.b16 %v653_v21  ;;  %v661_v40 = vpack.c.bf16 %v637_v18, %v637_v18  ;;  %v2627_v17 = vld [vmem:[%s3012_s7] ss:$0 sm:$0xff] }
  0x64   : > { %v706_v16 = vsel %vm705_vm5, %v704_v19, %v703_v22  ;;  %1840 = vmatmul.msk.bf16.gmra.mxu3 %vm529_vm0, %v846_v28  ;;  %v835_v42 = vunpack.c.l.b16 %v662_v44  ;;  %v663_v54 = vpack.c.bf16 %v639_v29, %v639_v29  ;;  %v664_v58 = vpack.c.bf16 %v640_v47, %v640_v47 }
  0x65   : > { %v709_v27 = vsel %vm708_vm6, %v707_v37, %v706_v16  ;;  %v694_v30 = vunpack.c.l.b16 %v654_v39  ;;  %v710_v31 = vrot.slane %v693_v26, 2  ;;  %v834_v46 = vunpack.c.l.b16 %v661_v40 }
  0x66   : > { %v641_v62 = vadd.f32 %v1944_v56, %v2434_v8  ;;  %v642_v0 = vadd.f32 %v1945_v57, %v2439_v9  ;;  %v836_v52 = vunpack.c.l.b16 %v663_v54  ;;  %v837_v3 = vunpack.c.l.b16 %v664_v58 }
  0x67   : > { %v712_v33 = vsel %vm711_vm7, %v710_v31, %v709_v27  ;;  %v713_v34 = vrot.slane %v694_v30, 1  ;;  %v847_v50 = vpack.c.b16 %v835_v42, %v834_v46  ;;  %v643_v56 = vadd.f32 %v1948_v59, %v2434_v8 }
  0x68   : > { %v665_v1 = vpack.c.bf16 %v641_v62, %v641_v62  ;;  %v666_v2 = vpack.c.bf16 %v642_v0, %v642_v0  ;;  %v848_v5 = vpack.c.b16 %v837_v3, %v836_v52  ;;  %v644_v43 = vadd.f32 %v1949_v60, %v2439_v9 }
  0x69   : > { %v715_v35 = vsel %vm714_vm8, %v713_v34, %v712_v33  ;;  %v645_v59 = vadd.f32 %v1952_v61, %v2434_v8  ;;  %v646_v48 = vadd.f32 %v1953_v63, %v2439_v9  ;;  %v1918_v9 = vld [vmem:[%s3016_s11] sm:$0xff]  ;;  %vm1151_vm9 = vcmask 31744  }
  0x6a   : > { %v716_v36 = vpack.c.b16 %v715_v35, %v715_v35  ;;  %v838_v4 = vunpack.c.l.b16 %v665_v1  ;;  %v839_v38 = vunpack.c.l.b16 %v666_v2  ;;  %v668_v57 = vpack.c.bf16 %v644_v43, %v644_v43  ;;  %1101 = vmatpush.bf16.msrb.mxu2 %v1918_v9  ;;  %v2033_v63 = vld [vmem:[%s3011_s6] ss:$0 sm:$0xff] }
  0x6b   : > { %v669_v60 = vpack.c.bf16 %v645_v59, %v645_v59  ;;  %vm1409_vm10 = vcmask 1041408   ;;  %vm1690_vm11 = vcmask 130048  }
  0x6c   : > { %1819 = vmatmul.msk.bf16.vlgmr.msra.gmra.mxu0 %vm529_vm0, %v716_v36  ;;  %1828 = vmatmul.msk.bf16.vlgmr.msra.gmra.mxu1 %vm529_vm0, %v716_v36  ;;  %v849_v53 = vpack.c.b16 %v839_v38, %v838_v4  ;;  %v841_v7 = vunpack.c.l.b16 %v668_v57 }
  0x6d   : > { %1837 = vmatmul.msk.bf16.vlgmr.msra.gmra.mxu2 %vm529_vm0, %v716_v36  ;;  %v842_v55 = vunpack.c.l.b16 %v669_v60  ;;  %1000 = vmatpush.bf16.msra.mxu0 %v1919_v12 }
  0x71   : > { %1001 = vmatpush.bf16.msra.mxu0 %v1918_v9 }
  0x74   : > { %1841 = vmatmul.msk.bf16.gmra.mxu3 %vm529_vm0, %v847_v50 }
  0x7c   : > { %1846 = vmatmul.msk.bf16.vlgmr.msrb.gmra.mxu0 %vm529_vm0, %v2474_v45  ;;  %v667_v45 = vpack.c.bf16 %v643_v56, %v643_v56 }
  0x7e   : > { %v840_v6 = vunpack.c.l.b16 %v667_v45 }
  0x80   : > { %v850_v51 = vpack.c.b16 %v841_v7, %v840_v6 }
  0x84   : > { %1842 = vmatmul.msk.bf16.gmra.mxu3 %vm529_vm0, %v848_v5 }
  0x8c   : > { %1847 = vmatmul.msk.bf16.gmra.mxu0 %vm529_vm0, %v2534_v41  ;;  %v670_v41 = vpack.c.bf16 %v646_v48, %v646_v48 }
  0x8e   : > { %v843_v10 = vunpack.c.l.b16 %v670_v41 }
  0x90   : > { %v851_v11 = vpack.c.b16 %v843_v10, %v842_v55 }
  0x94   : > { %1843 = vmatmul.msk.bf16.gmra.mxu3 %vm529_vm0, %v849_v53 }
  0x9c   : > { %1848 = vmatmul.msk.bf16.gmra.mxu0 %vm529_vm0, %v846_v28 }
  0xa4   : > { %1844 = vmatmul.msk.bf16.gmra.mxu3 %vm529_vm0, %v850_v51 }
  0xac   : > { %1849 = vmatmul.msk.bf16.gmra.mxu0 %vm529_vm0, %v847_v50 }
  0xb4   : > { %1845 = vmatmul.msk.bf16.gmra.mxu3 %vm529_vm0, %v851_v11 }
  0xbc   : > { %1850 = vmatmul.msk.bf16.gmra.mxu0 %vm529_vm0, %v848_v5 }
  0xc7   : > { %v885_v8 = vpop.f32.mrf.mxu3 }
  0xc8   : > { %v886_v20 = vadd.f32 %v2627_v17, %v885_v8 }
  0xcc   : > { %1851 = vmatmul.msk.bf16.gmra.mxu0 %vm529_vm0, %v849_v53 }
  0xcf   : > { %v887_v49 = vpop.f32.mrf.mxu3 }
  0xd0   : > { %v888_v25 = vadd.f32 %v2627_v17, %v887_v49 }
  0xd7   : > { %v890_v61 = vpop.f32.mrf.mxu3 }
  0xd8   : > { %v891_v30 = vadd.f32 %v2627_v17, %v890_v61 }
  0xdc   : > { %1852 = vmatmul.msk.bf16.gmra.mxu0 %vm529_vm0, %v850_v51 }
  0xdf   : > { %v892_v13 = vpop.f32.mrf.mxu3 }
  0xe0   : > { %v893_v33 = vadd.f32 %v2627_v17, %v892_v13 }
  0xe7   : > { %v895_v37 = vpop.f32.mrf.mxu3 }
  0xe8   : > { %v896_v40 = vadd.f32 %v2627_v17, %v895_v37 }
  0xe9   : > { %v741_v14 = vpop.f32.mrf.mxu0  ;;  %v775_v15 = vpop.f32.mrf.mxu1 }
  0xea   : > { %v742_v19 = vadd.f32 %v2033_v63, %v741_v14  ;;  %v776_v39 = vadd.f32 %v2627_v17, %v775_v15 }
  0xec   : > { %v2630_v24 = vmul.f32 0.35355338, %v742_v19  ;;  %1853 = vmatmul.msk.bf16.gmra.mxu0 %vm529_vm0, %v851_v11 }
  0xee   : > { %v1014_v21 = vperm.slane %v2630_v24, 0  ;;  %v1007_v26 = vrot.slane %v2630_v24, 1  ;;  %v974_v28 = vmul.f32 %v776_v39, %v2630_v24  ;;  %v1008_v36 = vrot.slane %v2630_v24, 2 }
  0xef   : > { %v897_v18 = vpop.f32.mrf.mxu3  ;;  %v1009_v47 = vrot.slane %v2630_v24, 3  ;;  %v1010_v3 = vrot.slane %v2630_v24, 4  ;;  %v1011_v57 = vrot.slane %v2630_v24, 5  ;;  %v1012_v10 = vrot.slane %v2630_v24, 6 }
  0xf0   : > { %v1030_v22 = vmul.f32 %v1014_v21, %v886_v20  ;;  %v1031_v27 = vmul.f32 %v1014_v21, %v888_v25  ;;  %v1015_v31 = vperm.slane %v1007_v26, 0  ;;  %v1016_v44 = vperm.slane %v1008_v36, 0  ;;  %v2661_v6 = vpop.f32.mrf.mxu2 }
  0xf1   : > { %v743_v23 = vpop.f32.mrf.mxu0  ;;  %v777_v16 = vpop.f32.mrf.mxu1  ;;  %v898_v50 = vadd.f32 %v2627_v17, %v897_v18  ;;  %v1017_v62 = vperm.slane %v1009_v47, 0  ;;  %v1018_v38 = vperm.slane %v1010_v3, 0  ;;  %v1019_v51 = vperm.slane %v1011_v57, 0 }
  0xf2   : > { %1863 = vmatmul.msk.f32.vlgmr.msrb.gmra.mxu2 %vm529_vm0, %v1030_v22  ;;  %v1032_v32 = vmul.f32 %v1015_v31, %v891_v30  ;;  %v1033_v35 = vmul.f32 %v1015_v31, %v893_v33  ;;  %v1034_v46 = vmul.f32 %v1016_v44, %v896_v40  ;;  %v1020_v8 = vperm.slane %v1012_v10, 0 }
  0xf3   : > { %v1035_v29 = vmul.f32 %v1016_v44, %v898_v50  ;;  %v1013_v13 = vrot.slane %v2630_v24, 7 }
  0xf5   : > { %v1021_v19 = vperm.slane %v1013_v13, 0 }
  0xf7   : > { %v900_v34 = vpop.f32.mrf.mxu3 }
  0xf8   : > { %v901_v58 = vadd.f32 %v2627_v17, %v900_v34  ;;  %v810_v48 = vpop.f32.mrf.mxu2 }
  0xf9   : > { %v2674_v15 = vpop.f32.mrf.mxu0 }
  0xfa   : > { %1864 = vmatmul.msk.f32.gmra.mxu2 %vm529_vm0, %v1031_v27  ;;  %v1036_v0 = vmul.f32 %v1017_v62, %v901_v58 }
  0xfc   : > { %1862 = vmatmul.msk.f32.vlgmr.msra.gmra.mxu0 %vm529_vm0, %v974_v28 }
  0xff   : > { %v902_v42 = vpop.f32.mrf.mxu3 }
 0x100   : > { %v903_v1 = vadd.f32 %v2627_v17, %v902_v42 }
 0x101   : > { %v2678_v23 = vpop.f32.mrf.mxu0 }
 0x102   : > { %1865 = vmatmul.msk.f32.gmra.mxu2 %vm529_vm0, %v1032_v32  ;;  %v1037_v52 = vmul.f32 %v1017_v62, %v903_v1 }
 0x107   : > { %v905_v54 = vpop.f32.mrf.mxu3 }
 0x108   : > { %v906_v4 = vadd.f32 %v2627_v17, %v905_v54 }
 0x109   : > { %v2681_v37 = vpop.f32.mrf.mxu0 }
 0x10a   : > { %1866 = vmatmul.msk.f32.gmra.mxu2 %vm529_vm0, %v1033_v35  ;;  %v1038_v5 = vmul.f32 %v1018_v38, %v906_v4 }
 0x10f   : > { %v907_v2 = vpop.f32.mrf.mxu3 }
 0x110   : > { %v908_v56 = vadd.f32 %v2627_v17, %v907_v2 }
 0x111   : > { %v2685_v25 = vpop.f32.mrf.mxu0 }
 0x112   : > { %1867 = vmatmul.msk.f32.gmra.mxu2 %vm529_vm0, %v1034_v46  ;;  %v1039_v43 = vmul.f32 %v1018_v38, %v908_v56 }
 0x117   : > { %v910_v53 = vpop.f32.mrf.mxu3 }
 0x118   : > { %v911_v7 = vadd.f32 %v2627_v17, %v910_v53 }
 0x119   : > { %v2689_v26 = vpop.f32.mrf.mxu0 }
 0x11a   : > { %1868 = vmatmul.msk.f32.gmra.mxu2 %vm529_vm0, %v1035_v29  ;;  %v1040_v59 = vmul.f32 %v1019_v51, %v911_v7 }
 0x11f   : > { %v912_v45 = vpop.f32.mrf.mxu3 }
 0x120   : > { %v913_v41 = vadd.f32 %v2627_v17, %v912_v45 }
 0x122   : > { %1869 = vmatmul.msk.f32.gmra.mxu2 %vm529_vm0, %v1036_v0  ;;  %v1041_v55 = vmul.f32 %v1019_v51, %v913_v41 }
 0x127   : > { %v915_v60 = vpop.f32.mrf.mxu3 }
 0x128   : > { %v916_v11 = vadd.f32 %v2627_v17, %v915_v60 }
 0x12a   : > { %1870 = vmatmul.msk.f32.gmra.mxu2 %vm529_vm0, %v1037_v52  ;;  %v1042_v9 = vmul.f32 %v1020_v8, %v916_v11 }
 0x12f   : > { %v917_v12 = vpop.f32.mrf.mxu3 }
 0x130   : > { %v918_v49 = vadd.f32 %v2627_v17, %v917_v12 }
 0x132   : > { %1871 = vmatmul.msk.f32.gmra.mxu2 %vm529_vm0, %v1038_v5  ;;  %v1043_v63 = vmul.f32 %v1020_v8, %v918_v49 }
 0x137   : > { %v920_v61 = vpop.f32.mrf.mxu3 }
 0x138   : > { %v921_v14 = vadd.f32 %v2627_v17, %v920_v61 }
 0x13a   : > { %1872 = vmatmul.msk.f32.gmra.mxu2 %vm529_vm0, %v1039_v43  ;;  %v1044_v20 = vmul.f32 %v1021_v19, %v921_v14 }
 0x13f   : > { %v922_v21 = vpop.f32.mrf.mxu3 }
 0x140   : > { %v923_v22 = vadd.f32 %v2627_v17, %v922_v21  ;;  %v2695_v17 = vpop.f32.mrf.mxu0 }
 0x142   : > { %1873 = vmatmul.msk.f32.gmra.mxu2 %vm529_vm0, %v1040_v59  ;;  %v1045_v16 = vmul.f32 %v1021_v19, %v923_v22 }
 0x148   : > { %v2699_v31 = vpop.f32.mrf.mxu0 }
 0x14a   : > { %1874 = vmatmul.msk.f32.gmra.mxu2 %vm529_vm0, %v1041_v55 }
 0x150   : > { %v2703_v32 = vpop.f32.mrf.mxu0 }
 0x152   : > { %1875 = vmatmul.msk.f32.gmra.mxu2 %vm529_vm0, %v1042_v9 }
 0x158   : > { %v2707_v34 = vpop.f32.mrf.mxu0 }
 0x15a   : > { %1876 = vmatmul.msk.f32.gmra.mxu2 %vm529_vm0, %v1043_v63 }
 0x160   : > { %v2713_v40 = vpop.f32.mrf.mxu0 }
 0x162   : > { %1877 = vmatmul.msk.f32.gmra.mxu2 %vm529_vm0, %v1044_v20 }
 0x168   : > { %v2717_v46 = vpop.f32.mrf.mxu0 }
 0x16a   : > { %1878 = vmatmul.msk.f32.gmra.mxu2 %vm529_vm0, %v1045_v16 }
 0x170   : > { %v2721_v50 = vpop.f32.mrf.mxu0 }
 0x175   : > { %v2683_v24 = vpop.f32.mrf.mxu2 }
 0x176   : > { %v1152_v38 = vsel %vm1151_vm9, %v2683_v24, -inf }
 0x178   : > { %v2725_v47 = vpop.f32.mrf.mxu0 }
 0x17d   : > { %v2687_v39 = vpop.f32.mrf.mxu2 }
 0x17e   : > { %v1153_v0 = vsel %vm1151_vm9, %v2687_v39, -inf }
 0x17f   : > { %v1154_v43 = vmax.f32 %v1152_v38, %v1153_v0 }
 0x180   : > { %v2757_v60 = vpop.f32.mrf.mxu0 }
 0x181   : > { %v1155_v8 = vrot.slane %v1154_v43, 4 }
 0x183   : > { %v1156_v19 = vmax.f32 %v1154_v43, %v1155_v8 }
 0x185   : > { %v2691_v27 = vpop.f32.mrf.mxu2 }
 0x186   : > { %v1161_v1 = vsel %vm1151_vm9, %v2691_v27, -inf }
 0x18d   : > { %v2693_v28 = vpop.f32.mrf.mxu2 }
 0x18e   : > { %v1162_v58 = vsel %vm1151_vm9, %v2693_v28, -inf }
 0x18f   : > { %v1163_v52 = vmax.f32 %v1161_v1, %v1162_v58  ;;  %v2763_v1 = vpop.f32.mrf.mxu0 }
 0x191   : > { %v1164_v41 = vrot.slane %v1163_v52, 4 }
 0x193   : > { %v1165_v61 = vmax.f32 %v1163_v52, %v1164_v41  ;;  %v1405_v52 = vld [vmem:[%s3017_s12] sm:$0x3] }
 0x195   : > { %v2697_v30 = vpop.f32.mrf.mxu2  ;;  %v1166_v16 = vrot.slane %v1165_v61, 2 }
 0x196   : > { %v1170_v3 = vsel %vm1151_vm9, %v2697_v30, -inf }
 0x197   : > { %v1167_v38 = vmax.f32 %v1165_v61, %v1166_v16 }
 0x19d   : > { %v2701_v18 = vpop.f32.mrf.mxu2 }
 0x19e   : > { %v1171_v62 = vsel %vm1151_vm9, %v2701_v18, -inf }
 0x19f   : > { %v1172_v53 = vmax.f32 %v1170_v3, %v1171_v62 }
 0x1a1   : > { %v1173_v11 = vrot.slane %v1172_v53, 4 }
 0x1a3   : > { %v1174_v13 = vmax.f32 %v1172_v53, %v1173_v11 }
 0x1a5   : > { %v2705_v33 = vpop.f32.mrf.mxu2  ;;  %v1175_v62 = vrot.slane %v1174_v13, 2 }
 0x1a6   : > { %v1179_v5 = vsel %vm1151_vm9, %v2705_v33, -inf }
 0x1ad   : > { %v2709_v35 = vpop.f32.mrf.mxu2 }
 0x1ae   : > { %v1180_v2 = vsel %vm1151_vm9, %v2709_v35, -inf }
 0x1af   : > { %v1181_v45 = vmax.f32 %v1179_v5, %v1180_v2  ;;  %v1157_v2 = vrot.slane %v1156_v19, 2  ;;  %v1411_v5 = vsel %vm1409_vm10, %v1405_v52, 0 }
 0x1b0   : > { %1420 = vmatpush.bf16.msrb.mxu1 %v1411_v5  ;;  %1629 = vmatpush.bf16.msrb.mxu3 %v1411_v5 }
 0x1b1   : > { %v1182_v9 = vrot.slane %v1181_v45, 4 }
 0x1b3   : > { %v1183_v20 = vmax.f32 %v1181_v45, %v1182_v9  ;;  %v1158_v45 = vmax.f32 %v1156_v19, %v1157_v2 }
 0x1b4   : > { %1481 = vmatpush.bf16.msra.mxu1 %v1411_v5 }
 0x1b5   : > { %v2711_v36 = vpop.f32.mrf.mxu2  ;;  %v1184_v3 = vrot.slane %v1183_v20, 2  ;;  %v1159_v9 = vrot.slane %v1158_v45, 1 }
 0x1b6   : > { %v1188_v57 = vsel %vm1151_vm9, %v2711_v36, -inf }
 0x1bd   : > { %v2715_v44 = vpop.f32.mrf.mxu2 }
 0x1be   : > { %v1189_v4 = vsel %vm1151_vm9, %v2715_v44, -inf }
 0x1bf   : > { %v1190_v51 = vmax.f32 %v1188_v57, %v1189_v4  ;;  %v1185_v57 = vmax.f32 %v1183_v20, %v1184_v3 }
 0x1c1   : > { %v1191_v49 = vrot.slane %v1190_v51, 4 }
 0x1c3   : > { %v1192_v22 = vmax.f32 %v1190_v51, %v1191_v49  ;;  %v1186_v49 = vrot.slane %v1185_v57, 1 }
 0x1c5   : > { %v2719_v42 = vpop.f32.mrf.mxu2  ;;  %v1193_v4 = vrot.slane %v1192_v22, 2  ;;  %v1187_v2 = vmax.f32 %v1185_v57, %v1186_v49 }
 0x1c6   : > { %v1197_v59 = vsel %vm1151_vm9, %v2719_v42, -inf }
 0x1cd   : > { %v2723_v29 = vpop.f32.mrf.mxu2 }
 0x1ce   : > { %v1198_v56 = vsel %vm1151_vm9, %v2723_v29, -inf }
 0x1cf   : > { %v1199_v55 = vmax.f32 %v1197_v59, %v1198_v56  ;;  %v1176_v56 = vmax.f32 %v1174_v13, %v1175_v62  ;;  %v1194_v59 = vmax.f32 %v1192_v22, %v1193_v4  ;;  %v2774_v13 = vpop.f32.mrf.mxu0  ;;  %v1160_v62 = vmax.f32 %v1158_v45, %v1159_v9 }
 0x1d1   : > { %v1200_v63 = vrot.slane %v1199_v55, 4 }
 0x1d3   : > { %v1201_v58 = vmax.f32 %v1199_v55, %v1200_v63  ;;  %v1168_v55 = vrot.slane %v1167_v38, 1  ;;  %v1195_v63 = vrot.slane %v1194_v59, 1 }
 0x1d5   : > { %v2727_v54 = vpop.f32.mrf.mxu2  ;;  %v1202_v53 = vrot.slane %v1201_v58, 2  ;;  %v1196_v4 = vmax.f32 %v1194_v59, %v1195_v63 }
 0x1d6   : > { %v1206_v10 = vsel %vm1151_vm9, %v2727_v54, -inf }
 0x1d7   : > { %v1003_v57 = vpop.f32.mrf.mxu0 }
 0x1dd   : > { %v2751_v7 = vpop.f32.mrf.mxu2 }
 0x1de   : > { %v1207_v48 = vsel %vm1151_vm9, %v2751_v7, -inf }
 0x1df   : > { %v1208_v12 = vmax.f32 %v1206_v10, %v1207_v48  ;;  %v1203_v10 = vmax.f32 %v1201_v58, %v1202_v53 }
 0x1e1   : > { %v1209_v14 = vrot.slane %v1208_v12, 4  ;;  %v1204_v19 = vrot.slane %v1203_v10, 1 }
 0x1e3   : > { %v1210_v0 = vmax.f32 %v1208_v12, %v1209_v14  ;;  %v1177_v12 = vrot.slane %v1176_v56, 1  ;;  %v1169_v14 = vmax.f32 %v1167_v38, %v1168_v55  ;;  %v1205_v52 = vmax.f32 %v1203_v10, %v1204_v19 }
 0x1e5   : > { %v2761_v21 = vpop.f32.mrf.mxu2  ;;  %v1211_v43 = vrot.slane %v1210_v0, 2  ;;  %v1178_v22 = vmax.f32 %v1176_v56, %v1177_v12  ;;  %v1232_v58 = vsel %vm696_vm2, %v1169_v14, %v1160_v62 }
 0x1e6   : > { %v1215_v48 = vsel %vm1151_vm9, %v2761_v21, -inf }
 0x1e7   : > { %v1212_v8 = vmax.f32 %v1210_v0, %v1211_v43  ;;  %v1233_v0 = vsel %vm699_vm3, %v1178_v22, %v1232_v58 }
 0x1e8   : > { %v1234_v43 = vsel %vm702_vm4, %v1187_v2, %v1233_v0 }
 0x1e9   : > { %v1213_v16 = vrot.slane %v1212_v8, 1  ;;  %v1235_v38 = vsel %vm705_vm5, %v1196_v4, %v1234_v43 }
 0x1eb   : > { %v1214_v5 = vmax.f32 %v1212_v8, %v1213_v16 }
 0x1ed   : > { %v2768_v51 = vpop.f32.mrf.mxu2 }
 0x1ee   : > { %v1216_v41 = vsel %vm1151_vm9, %v2768_v51, -inf }
 0x1ef   : > { %v1217_v11 = vmax.f32 %v1215_v48, %v1216_v41  ;;  %v1236_v41 = vsel %vm708_vm6, %v1205_v52, %v1235_v38 }
 0x1f0   : > { %v1237_v45 = vsel %vm711_vm7, %v1214_v5, %v1236_v41 }
 0x1f1   : > { %v1218_v61 = vrot.slane %v1217_v11, 4 }
 0x1f3   : > { %v1219_v20 = vmax.f32 %v1217_v11, %v1218_v61 }
 0x1f5   : > { %v1220_v3 = vrot.slane %v1219_v20, 2 }
 0x1f7   : > { %v1221_v53 = vmax.f32 %v1219_v20, %v1220_v3 }
 0x1f9   : > { %v1222_v48 = vrot.slane %v1221_v53, 1 }
 0x1fb   : > { %v1223_v56 = vmax.f32 %v1221_v53, %v1222_v48 }
 0x1fd   : > { %v1238_v59 = vsel %vm714_vm8, %v1223_v56, %v1237_v45 }
 0x1fe   : > { %v1240_v55 = vmax.f32 %v1003_v57, %v1238_v59 }
 0x200   : > { %v1251_v11 = vrot.slane %v1240_v55, 7  ;;  %v1241_v10 = vsub.f32 %v1003_v57, %v1240_v55  ;;  %v1252_v12 = vperm.slane %v1240_v55, 0  ;;  %v1245_v9 = vrot.slane %v1240_v55, 1 }
 0x201   : > { %v1246_v49 = vrot.slane %v1240_v55, 2  ;;  %v1247_v8 = vrot.slane %v1240_v55, 3  ;;  %v1248_v61 = vrot.slane %v1240_v55, 4  ;;  %v1249_v63 = vrot.slane %v1240_v55, 5 }
 0x202   : > { %v1259_v14 = vperm.slane %v1251_v11, 0  ;;  %v1242_v19 = vmul.f32 1.442695, %v1241_v10  ;;  %v1268_v20 = vsub.f32 %v2683_v24, %v1252_v12  ;;  %v1269_v22 = vsub.f32 %v2687_v39, %v1252_v12 }
 0x203   : > { %v1253_v16 = vperm.slane %v1245_v9, 0  ;;  %v1250_v62 = vrot.slane %v1240_v55, 6  ;;  %v1254_v2 = vperm.slane %v1246_v49, 0  ;;  %v1255_v3 = vperm.slane %v1247_v8, 0 }
 0x204   : > { %v1282_v4 = vsub.f32 %v2761_v21, %v1259_v14  ;;  %v1283_v58 = vsub.f32 %v2768_v51, %v1259_v14  ;;  %2038 = vpow2.f32 %v1242_v19  ;;  %v1284_v52 = vmul.f32 1.442695, %v1268_v20 }
 0x205   : > { %v1286_v53 = vmul.f32 1.442695, %v1269_v22  ;;  %v1270_v0 = vsub.f32 %v2691_v27, %v1253_v16  ;;  %v1271_v5 = vsub.f32 %v2693_v28, %v1253_v16  ;;  %v1256_v43 = vperm.slane %v1248_v61, 0 }
 0x206   : > { %v1312_v48 = vmul.f32 1.442695, %v1282_v4  ;;  %v1314_v24 = vmul.f32 1.442695, %v1283_v58  ;;  %2040 = vpow2.f32 %v1284_v52  ;;  %v1257_v41 = vperm.slane %v1249_v63, 0 }
 0x207   : > { %2042 = vpow2.f32 %v1286_v53  ;;  %v1288_v39 = vmul.f32 1.442695, %v1270_v0  ;;  %v1290_v38 = vmul.f32 1.442695, %v1271_v5  ;;  %v1272_v21 = vsub.f32 %v2697_v30, %v1254_v2 }
 0x208   : > { %2044 = vpow2.f32 %v1312_v48  ;;  %v1273_v51 = vsub.f32 %v2701_v18, %v1254_v2  ;;  %v1274_v56 = vsub.f32 %v2705_v33, %v1255_v3  ;;  %v1258_v45 = vperm.slane %v1250_v62, 0 }
 0x209   : > { %2046 = vpow2.f32 %v1314_v24  ;;  %v1275_v27 = vsub.f32 %v2709_v35, %v1255_v3  ;;  %v1276_v28 = vsub.f32 %v2711_v36, %v1256_v43  ;;  %v1277_v59 = vsub.f32 %v2715_v44, %v1256_v43 }
 0x20a   : > { %v2794_v57 = vpop.eup %2038  ;;  %2048 = vpow2.f32 %v1288_v39  ;;  %v1278_v30 = vsub.f32 %v2719_v42, %v1257_v41  ;;  %v1292_v18 = vmul.f32 1.442695, %v1272_v21  ;;  %v1294_v55 = vmul.f32 1.442695, %v1273_v51 }
 0x20b   : > { %1879 = vmatmul.msk.f32.vlgmr.msrb.gmra.mxu1 %vm1151_vm9, %v2794_v57  ;;  %2050 = vpow2.f32 %v1290_v38  ;;  %v1279_v11 = vsub.f32 %v2723_v29, %v1257_v41  ;;  %v1296_v10 = vmul.f32 1.442695, %v1274_v56  ;;  %v1298_v35 = vmul.f32 1.442695, %v1275_v27 }
 0x20c   : > { %v2041_v33 = vpop.eup %2040  ;;  %v1280_v9 = vsub.f32 %v2727_v54, %v1258_v45  ;;  %2052 = vpow2.f32 %v1292_v18  ;;  %v1300_v44 = vmul.f32 1.442695, %v1276_v28  ;;  %v1281_v42 = vsub.f32 %v2751_v7, %v1258_v45 }
 0x20d   : > { %v2043_v12 = vpop.eup %2042  ;;  %v1316_v36 = vsel %vm1151_vm9, %v2041_v33, 0.0  ;;  %2054 = vpow2.f32 %v1294_v55  ;;  %v1302_v61 = vmul.f32 1.442695, %v1277_v59  ;;  %v1304_v14 = vmul.f32 1.442695, %v1278_v30 }
 0x20e   : > { %v2803_v49 = vpop.eup %2044  ;;  %v1317_v8 = vsel %vm1151_vm9, %v2043_v12, 0.0  ;;  %2056 = vpow2.f32 %v1296_v10  ;;  %v1306_v22 = vmul.f32 1.442695, %v1279_v11  ;;  %v1308_v2 = vmul.f32 1.442695, %v1280_v9 }
 0x20f   : > { %v2807_v63 = vpop.eup %2046  ;;  %v1318_v29 = vadd.f32 %v1317_v8, %v1316_v36  ;;  %v1379_v54 = vsel %vm1151_vm9, %v2803_v49, 0.0  ;;  %2058 = vpow2.f32 %v1298_v35  ;;  %v1310_v4 = vmul.f32 1.442695, %v1281_v42 }
 0x210   : > { %v2809_v19 = vpop.eup %2048  ;;  %v1380_v20 = vsel %vm1151_vm9, %v2807_v63, 0.0  ;;  %2060 = vpow2.f32 %v1300_v44 }
 0x211   : > { %v2815_v16 = vpop.eup %2050  ;;  %v1319_v7 = vrot.slane %v1318_v29, 4  ;;  %v1325_v62 = vsel %vm1151_vm9, %v2809_v19, 0.0  ;;  %2062 = vpow2.f32 %v1302_v61  ;;  %v1381_v52 = vadd.f32 %v1380_v20, %v1379_v54 }
 0x212   : > { %v1326_v3 = vsel %vm1151_vm9, %v2815_v16, 0.0  ;;  %v2821_v58 = vpop.eup %2052  ;;  %2064 = vpow2.f32 %v1304_v14 }
 0x213   : > { %1880 = vmatmul.msk.f32.vlgmr.msra.gmra.mxu1 %vm1151_vm9, %v2041_v33  ;;  %v1320_v53 = vadd.f32 %v1319_v7, %v1318_v29  ;;  %v1327_v0 = vadd.f32 %v1326_v3, %v1325_v62  ;;  %v2824_v5 = vpop.eup %2054  ;;  %2066 = vpow2.f32 %v1306_v22  ;;  %v1334_v43 = vsel %vm1151_vm9, %v2821_v58, 0.0 }
 0x214   : > { %v2828_v48 = vpop.eup %2056  ;;  %2068 = vpow2.f32 %v1308_v2  ;;  %v1335_v41 = vsel %vm1151_vm9, %v2824_v5, 0.0  ;;  %v1382_v51 = vrot.slane %v1381_v52, 4 }
 0x215   : > { %v1321_v24 = vrot.slane %v1320_v53, 2  ;;  %v1328_v39 = vrot.slane %v1327_v0, 4  ;;  %v2830_v38 = vpop.eup %2058  ;;  %2070 = vpow2.f32 %v1310_v4  ;;  %v1336_v45 = vadd.f32 %v1335_v41, %v1334_v43 }
 0x216   : > { %v2834_v21 = vpop.eup %2060  ;;  %v1343_v27 = vsel %vm1151_vm9, %v2828_v48, 0.0  ;;  %v1344_v30 = vsel %vm1151_vm9, %v2830_v38, 0.0  ;;  %v1383_v8 = vadd.f32 %v1382_v51, %v1381_v52 }
 0x217   : > { %v1329_v56 = vadd.f32 %v1328_v39, %v1327_v0  ;;  %v2838_v28 = vpop.eup %2062  ;;  %v1322_v59 = vadd.f32 %v1321_v24, %v1320_v53  ;;  %v1352_v18 = vsel %vm1151_vm9, %v2834_v21, 0.0  ;;  %v1337_v11 = vrot.slane %v1336_v45, 4 }
 0x218   : > { %v2844_v55 = vpop.eup %2064  ;;  %v1345_v35 = vadd.f32 %v1344_v30, %v1343_v27  ;;  %v1353_v36 = vsel %vm1151_vm9, %v2838_v28, 0.0 }
 0x219   : > { %v1330_v33 = vrot.slane %v1329_v56, 2  ;;  %v2846_v10 = vpop.eup %2066  ;;  %v1361_v9 = vsel %vm1151_vm9, %v2844_v55, 0.0  ;;  %v1338_v61 = vadd.f32 %v1337_v11, %v1336_v45  ;;  %v1354_v29 = vadd.f32 %v1353_v36, %v1352_v18 }
 0x21a   : > { %v2852_v44 = vpop.eup %2068  ;;  %v1323_v54 = vrot.slane %v1322_v59, 1  ;;  %v1346_v20 = vrot.slane %v1345_v35, 4  ;;  %v1362_v22 = vsel %vm1151_vm9, %v2846_v10, 0.0 }
 0x21b   : > { %1881 = vmatmul.msk.f32.gmra.mxu1 %vm1151_vm9, %v2043_v12  ;;  %v1331_v42 = vadd.f32 %v1330_v33, %v1329_v56  ;;  %v2071_v14 = vpop.eup %2070  ;;  %v1370_v7 = vsel %vm1151_vm9, %v2852_v44, 0.0  ;;  %v1339_v2 = vrot.slane %v1338_v61, 2  ;;  %v1355_v3 = vrot.slane %v1354_v29, 4 }
 0x21c   : > { %v1363_v4 = vadd.f32 %v1362_v22, %v1361_v9  ;;  %v1347_v53 = vadd.f32 %v1346_v20, %v1345_v35  ;;  %v1371_v52 = vsel %vm1151_vm9, %v2071_v14, 0.0  ;;  %v1324_v39 = vadd.f32 %v1323_v54, %v1322_v59 }
 0x21d   : > { %v1332_v62 = vrot.slane %v1331_v42, 1  ;;  %v1340_v0 = vadd.f32 %v1339_v2, %v1338_v61  ;;  %v1356_v43 = vadd.f32 %v1355_v3, %v1354_v29  ;;  %v1372_v51 = vadd.f32 %v1371_v52, %v1370_v7 }
 0x21e   : > { %v1364_v24 = vrot.slane %v1363_v4, 4  ;;  %v1348_v41 = vrot.slane %v1347_v53, 2  ;;  %v1384_v56 = vrot.slane %v1383_v8, 2 }
 0x21f   : > { %v1333_v12 = vadd.f32 %v1332_v62, %v1331_v42  ;;  %v1341_v45 = vrot.slane %v1340_v0, 1  ;;  %v1357_v27 = vrot.slane %v1356_v43, 2  ;;  %v1373_v33 = vrot.slane %v1372_v51, 4 }
 0x220   : > { %v1365_v30 = vadd.f32 %v1364_v24, %v1363_v4  ;;  %v1349_v18 = vadd.f32 %v1348_v41, %v1347_v53  ;;  %v1385_v29 = vadd.f32 %v1384_v56, %v1383_v8 }
 0x221   : > { %v1396_v11 = vsel %vm696_vm2, %v1333_v12, %v1324_v39  ;;  %v1342_v35 = vadd.f32 %v1341_v45, %v1340_v0  ;;  %v1358_v36 = vadd.f32 %v1357_v27, %v1356_v43  ;;  %v1374_v61 = vadd.f32 %v1373_v33, %v1372_v51 }
 0x222   : > { %v1366_v9 = vrot.slane %v1365_v30, 2  ;;  %v1350_v42 = vrot.slane %v1349_v18, 1  ;;  %v1386_v52 = vrot.slane %v1385_v29, 1 }
 0x223   : > { %1882 = vmatmul.msk.f32.gmra.mxu1 %vm1151_vm9, %v2809_v19  ;;  %v1359_v59 = vrot.slane %v1358_v36, 1  ;;  %v1397_v20 = vsel %vm699_vm3, %v1342_v35, %v1396_v11  ;;  %v1375_v7 = vrot.slane %v1374_v61, 2 }
 0x224   : > { %v1367_v54 = vadd.f32 %v1366_v9, %v1365_v30  ;;  %v1351_v22 = vadd.f32 %v1350_v42, %v1349_v18  ;;  %v1387_v43 = vadd.f32 %v1386_v52, %v1385_v29 }
 0x225   : > { %v1360_v62 = vadd.f32 %v1359_v59, %v1358_v36  ;;  %v1376_v3 = vadd.f32 %v1375_v7, %v1374_v61 }
 0x226   : > { %v1368_v2 = vrot.slane %v1367_v54, 1  ;;  %v1398_v4 = vsel %vm702_vm4, %v1351_v22, %v1397_v20 }
 0x227   : > { %v1399_v19 = vsel %vm705_vm5, %v1360_v62, %v1398_v4  ;;  %v1377_v12 = vrot.slane %v1376_v3, 1 }
 0x228   : > { %v1369_v53 = vadd.f32 %v1368_v2, %v1367_v54 }
 0x229   : > { %v1378_v8 = vadd.f32 %v1377_v12, %v1376_v3 }
 0x22a   : > { %v1400_v0 = vsel %vm708_vm6, %v1369_v53, %v1399_v19 }
 0x22b   : > { %1883 = vmatmul.msk.f32.gmra.mxu1 %vm1151_vm9, %v2815_v16  ;;  %v1401_v24 = vsel %vm711_vm7, %v1378_v8, %v1400_v0 }
 0x22c   : > { %v1402_v39 = vsel %vm714_vm8, %v1387_v43, %v1401_v24 }
 0x22d   : > { %v1404_v41 = vadd.f32 %v2794_v57, %v1402_v39  ;;  %v2895_v57 = vld [vmem:[%s3013_s8] ss:$0 sm:$0xff] }
 0x22e   : > { %v809_v16 = vadd.f32 %v2895_v57, %v2661_v6  ;;  %v945_v36 = vadd.f32 %v2895_v57, %v2689_v26  ;;  %v947_v20 = vadd.f32 %v2895_v57, %v2695_v17  ;;  %v950_v19 = vadd.f32 %v2895_v57, %v2699_v31 }
 0x22f   : > { %1896 = vmatmul.msk.f32.vlgmr.msrb.gmra.mxu3 %vm1151_vm9, %v1404_v41  ;;  %v952_v39 = vadd.f32 %v2895_v57, %v2703_v32  ;;  %v957_v32 = vadd.f32 %v2895_v57, %v2713_v40 }
 0x233   : > { %1884 = vmatmul.msk.f32.gmra.mxu1 %vm1151_vm9, %v2821_v58 }
 0x23b   : > { %1885 = vmatmul.msk.f32.gmra.mxu1 %vm1151_vm9, %v2824_v5 }
 0x243   : > { %1886 = vmatmul.msk.f32.gmra.mxu1 %vm1151_vm9, %v2828_v48  ;;  %v935_v48 = vadd.f32 %v2895_v57, %v2674_v15  ;;  %v942_v15 = vadd.f32 %v2895_v57, %v2685_v25 }
 0x24b   : > { %1887 = vmatmul.msk.f32.gmra.mxu1 %vm1151_vm9, %v2830_v38 }
 0x253   : > { %1888 = vmatmul.msk.f32.gmra.mxu1 %vm1151_vm9, %v2834_v21 }
 0x25b   : > { %1889 = vmatmul.msk.f32.gmra.mxu1 %vm1151_vm9, %v2838_v28  ;;  %v937_v28 = vadd.f32 %v2895_v57, %v2678_v23 }
 0x263   : > { %1890 = vmatmul.msk.f32.gmra.mxu1 %vm1151_vm9, %v2844_v55 }
 0x26b   : > { %1891 = vmatmul.msk.f32.gmra.mxu1 %vm1151_vm9, %v2846_v10 }
 0x273   : > { %1892 = vmatmul.msk.f32.gmra.mxu1 %vm1151_vm9, %v2852_v44 }
 0x27b   : > { %1893 = vmatmul.msk.f32.gmra.mxu1 %vm1151_vm9, %v2071_v14  ;;  %v940_v14 = vadd.f32 %v2895_v57, %v2681_v37 }
 0x283   : > { %1894 = vmatmul.msk.f32.gmra.mxu1 %vm1151_vm9, %v2803_v49 }
 0x288   : > { %v1422_v58 = vpop.f32.mrf.mxu1 }
 0x289   : > { %v2901_v5 = vmul.f32 %v1422_v58, %v809_v16 }
 0x28b   : > { %1895 = vmatmul.msk.f32.gmra.mxu1 %vm1151_vm9, %v2807_v63 }
 0x290   : > { %v1483_v38 = vpop.f32.mrf.mxu1 }
 0x291   : > { %v1531_v21 = vmul.f32 %v1483_v38, %v935_v48 }
 0x293   : > { %v1547_v49 = vsel %vm529_vm0, %v1531_v21, 0.0 }
 0x298   : > { %v1486_v55 = vpop.f32.mrf.mxu1 }
 0x299   : > { %v1532_v10 = vmul.f32 %v1486_v55, %v937_v28 }
 0x29b   : > { %v1548_v6 = vsel %vm529_vm0, %v1532_v10, 0.0 }
 0x29c   : > { %v1549_v44 = vadd.f32 %v1548_v6, %v1547_v49 }
 0x29e   : > { %v1550_v56 = vrot.slane %v1549_v44, 4 }
 0x2a0   : > { %v1489_v51 = vpop.f32.mrf.mxu1  ;;  %v1551_v45 = vadd.f32 %v1550_v56, %v1549_v44  ;;  %v955_v44 = vadd.f32 %v2895_v57, %v2707_v34 }
 0x2a1   : > { %v1533_v63 = vmul.f32 %v1489_v51, %v940_v14 }
 0x2a2   : > { %v1552_v33 = vrot.slane %v1551_v45, 2 }
 0x2a3   : > { %v1556_v23 = vsel %vm529_vm0, %v1533_v63, 0.0 }
 0x2a4   : > { %v1553_v37 = vadd.f32 %v1552_v33, %v1551_v45 }
 0x2a6   : > { %v1554_v59 = vrot.slane %v1553_v37, 1 }
 0x2a8   : > { %v1492_v27 = vpop.f32.mrf.mxu1  ;;  %v1555_v22 = vadd.f32 %v1554_v59, %v1553_v37  ;;  %v962_v37 = vadd.f32 %v2895_v57, %v2721_v50 }
 0x2a9   : > { %v1534_v30 = vmul.f32 %v1492_v27, %v942_v15 }
 0x2ab   : > { %v1557_v18 = vsel %vm529_vm0, %v1534_v30, 0.0 }
 0x2ac   : > { %v1558_v11 = vadd.f32 %v1557_v18, %v1556_v23 }
 0x2ae   : > { %v1559_v35 = vrot.slane %v1558_v11, 4 }
 0x2b0   : > { %v1560_v9 = vadd.f32 %v1559_v35, %v1558_v11  ;;  %v1495_v42 = vpop.f32.mrf.mxu1 }
 0x2b1   : > { %v1535_v61 = vmul.f32 %v1495_v42, %v945_v36  ;;  %v960_v36 = vadd.f32 %v2895_v57, %v2717_v46 }
 0x2b2   : > { %v1561_v29 = vrot.slane %v1560_v9, 2 }
 0x2b3   : > { %v1565_v4 = vsel %vm529_vm0, %v1535_v61, 0.0 }
 0x2b4   : > { %v1562_v25 = vadd.f32 %v1561_v29, %v1560_v9 }
 0x2b6   : > { %v1563_v54 = vrot.slane %v1562_v25, 1 }
 0x2b8   : > { %v1564_v7 = vadd.f32 %v1563_v54, %v1562_v25  ;;  %v1498_v62 = vpop.f32.mrf.mxu1 }
 0x2b9   : > { %v1536_v2 = vmul.f32 %v1498_v62, %v947_v20 }
 0x2ba   : > { %v1642_v3 = vsel %vm696_vm2, %v1564_v7, %v1555_v22 }
 0x2bb   : > { %v1566_v26 = vsel %vm529_vm0, %v1536_v2, 0.0 }
 0x2bc   : > { %v1567_v53 = vadd.f32 %v1566_v26, %v1565_v4  ;;  %v967_v4 = vadd.f32 %v2895_v57, %v2757_v60 }
 0x2be   : > { %v1568_v52 = vrot.slane %v1567_v53, 4 }
 0x2c0   : > { %v1569_v12 = vadd.f32 %v1568_v52, %v1567_v53  ;;  %v1501_v0 = vpop.f32.mrf.mxu1 }
 0x2c1   : > { %v1537_v8 = vmul.f32 %v1501_v0, %v950_v19  ;;  %v1921_v0 = vld [vmem:[%s3014_s9 + $0x8] sm:$0xff] }
 0x2c2   : > { %v1570_v43 = vrot.slane %v1569_v12, 2  ;;  %1683 = vmatpush.bf16.msra.mxu3 %v1921_v0 }
 0x2c3   : > { %v1574_v38 = vsel %vm529_vm0, %v1537_v8, 0.0 }
 0x2c4   : > { %v1571_v17 = vadd.f32 %v1570_v43, %v1569_v12 }
 0x2c6   : > { %v1572_v24 = vrot.slane %v1571_v17, 1 }
 0x2c8   : > { %v1573_v41 = vadd.f32 %v1572_v24, %v1571_v17  ;;  %v1504_v16 = vpop.f32.mrf.mxu1 }
 0x2c9   : > { %v1538_v58 = vmul.f32 %v1504_v16, %v952_v39 }
 0x2ca   : > { %v1643_v48 = vsel %vm699_vm3, %v1573_v41, %v1642_v3  ;;  %v965_v3 = vadd.f32 %v2895_v57, %v2725_v47  ;;  %v1920_v47 = vld [vmem:[%s3014_s9] sm:$0xff] }
 0x2cb   : > { %v1575_v21 = vsel %vm529_vm0, %v1538_v58, 0.0  ;;  %1684 = vmatpush.bf16.msra.mxu3 %v1920_v47  ;;  %v970_v58 = vadd.f32 %v2895_v57, %v2763_v1 }
 0x2cc   : > { %v1576_v28 = vadd.f32 %v1575_v21, %v1574_v38  ;;  %v972_v38 = vadd.f32 %v2895_v57, %v2774_v13 }
 0x2ce   : > { %v1577_v31 = vrot.slane %v1576_v28, 4 }
 0x2d0   : > { %v1578_v55 = vadd.f32 %v1577_v31, %v1576_v28  ;;  %v1507_v10 = vpop.f32.mrf.mxu1 }
 0x2d1   : > { %v1539_v51 = vmul.f32 %v1507_v10, %v955_v44 }
 0x2d2   : > { %v1579_v49 = vrot.slane %v1578_v55, 2 }
 0x2d3   : > { %v1583_v27 = vsel %vm529_vm0, %v1539_v51, 0.0  ;;  %v1631_v51 = vpop.f32.mrf.mxu3 }
 0x2d4   : > { %v1580_v6 = vadd.f32 %v1579_v49, %v1578_v55  ;;  %2072 = vrcp.f32 %v1631_v51 }
 0x2d6   : > { %v1581_v14 = vrot.slane %v1580_v6, 1 }
 0x2d8   : > { %v1582_v63 = vadd.f32 %v1581_v14, %v1580_v6  ;;  %v1510_v56 = vpop.f32.mrf.mxu1 }
 0x2d9   : > { %v1540_v15 = vmul.f32 %v1510_v56, %v957_v32 }
 0x2da   : > { %v1644_v45 = vsel %vm702_vm4, %v1582_v63, %v1643_v48 }
 0x2db   : > { %v1584_v30 = vsel %vm529_vm0, %v1540_v15, 0.0 }
 0x2dc   : > { %v1585_v23 = vadd.f32 %v1584_v30, %v1583_v27 }
 0x2de   : > { %v1586_v18 = vrot.slane %v1585_v23, 4 }
 0x2e0   : > { %v1587_v33 = vadd.f32 %v1586_v18, %v1585_v23  ;;  %v1513_v11 = vpop.f32.mrf.mxu1  ;;  %v2035_v23 = vld [vmem:[%s3015_s10] ss:$0 sm:$0xff] }
 0x2e1   : > { %v1541_v9 = vmul.f32 %v1513_v11, %v960_v36 }
 0x2e2   : > { %v1588_v35 = vrot.slane %v1587_v33, 2 }
 0x2e3   : > { %v1592_v25 = vsel %vm529_vm0, %v1541_v9, 0.0 }
 0x2e4   : > { %v1589_v34 = vadd.f32 %v1588_v35, %v1587_v33 }
 0x2e6   : > { %v1590_v40 = vrot.slane %v1589_v34, 1 }
 0x2e8   : > { %v1591_v42 = vadd.f32 %v1590_v40, %v1589_v34  ;;  %v1516_v61 = vpop.f32.mrf.mxu1 }
 0x2e9   : > { %v1542_v29 = vmul.f32 %v1516_v61, %v962_v37 }
 0x2ea   : > { %v1645_v59 = vsel %vm705_vm5, %v1591_v42, %v1644_v45  ;;  %v2073_v45 = vpop.eup %2072 }
 0x2eb   : > { %v1593_v54 = vsel %vm529_vm0, %v1542_v29, 0.0 }
 0x2ec   : > { %v1594_v20 = vadd.f32 %v1593_v54, %v1592_v25 }
 0x2ee   : > { %v1595_v22 = vrot.slane %v1594_v20, 4 }
 0x2f0   : > { %v1596_v7 = vadd.f32 %v1595_v22, %v1594_v20  ;;  %v1519_v62 = vpop.f32.mrf.mxu1 }
 0x2f1   : > { %v1543_v26 = vmul.f32 %v1519_v62, %v965_v3 }
 0x2f2   : > { %v1597_v2 = vrot.slane %v1596_v7, 2 }
 0x2f3   : > { %v1601_v8 = vsel %vm529_vm0, %v1543_v26, 0.0 }
 0x2f4   : > { %v1598_v46 = vadd.f32 %v1597_v2, %v1596_v7 }
 0x2f6   : > { %v1599_v50 = vrot.slane %v1598_v46, 1 }
 0x2f8   : > { %v1600_v53 = vadd.f32 %v1599_v50, %v1598_v46  ;;  %v1522_v52 = vpop.f32.mrf.mxu1 }
 0x2f9   : > { %v1544_v19 = vmul.f32 %v1522_v52, %v967_v4 }
 0x2fa   : > { %v1646_v12 = vsel %vm708_vm6, %v1600_v53, %v1645_v59 }
 0x2fb   : > { %v1602_v43 = vsel %vm529_vm0, %v1544_v19, 0.0 }
 0x2fc   : > { %v1603_v17 = vadd.f32 %v1602_v43, %v1601_v8 }
 0x2fe   : > { %v1604_v60 = vrot.slane %v1603_v17, 4 }
 0x300   : > { %v1605_v24 = vadd.f32 %v1604_v60, %v1603_v17  ;;  %v1525_v39 = vpop.f32.mrf.mxu1 }
 0x301   : > { %v1545_v21 = vmul.f32 %v1525_v39, %v970_v58 }
 0x302   : > { %v1606_v41 = vrot.slane %v1605_v24, 2 }
 0x303   : > { %v1610_v49 = vsel %vm529_vm0, %v1545_v21, 0.0 }
 0x304   : > { %v1607_v16 = vadd.f32 %v1606_v41, %v1605_v24 }
 0x306   : > { %v1608_v48 = vrot.slane %v1607_v16, 1 }
 0x308   : > { %v1609_v28 = vadd.f32 %v1608_v48, %v1607_v16  ;;  %v1528_v31 = vpop.f32.mrf.mxu1 }
 0x309   : > { %v1546_v55 = vmul.f32 %v1528_v31, %v972_v38 }
 0x30a   : > { %v1647_v10 = vsel %vm711_vm7, %v1609_v28, %v1646_v12 }
 0x30b   : > { %v1611_v6 = vsel %vm529_vm0, %v1546_v55, 0.0 }
 0x30c   : > { %v1612_v44 = vadd.f32 %v1611_v6, %v1610_v49 }
 0x30e   : > { %v1613_v14 = vrot.slane %v1612_v44, 4 }
 0x310   : > { %v1614_v32 = vadd.f32 %v1613_v14, %v1612_v44 }
 0x312   : > { %v1615_v1 = vrot.slane %v1614_v32, 2 }
 0x314   : > { %v1616_v63 = vadd.f32 %v1615_v1, %v1614_v32 }
 0x316   : > { %v1617_v13 = vrot.slane %v1616_v63, 1 }
 0x318   : > { %v1618_v57 = vadd.f32 %v1617_v13, %v1616_v63 }
 0x31a   : > { %v1648_v56 = vsel %vm714_vm8, %v1618_v57, %v1647_v10 }
 0x31b   : > { %v1650_v15 = vadd.f32 %v1648_v56, %v2901_v5 }
 0x31d   : > { %v1652_v27 = vmul.f32 %v2073_v45, %v1650_v15 }
 0x31f   : > { %v1653_v30 = vpack.c.bf16 %v1652_v27, %v1652_v27 }
 0x321   : > { %1905 = vmatmul.msk.bf16.vlgmr.msra.gmra.mxu3 %vm529_vm0, %v1653_v30 }
 0x3a4   : > { %v1686_v5 = vpop.f32.mrf.mxu3 }
 0x3a5   : > { %v1687_v18 = vadd.f32 %v2035_v23, %v1686_v5 }
 0x3a7   : > { %1691 = vst.msk [vmem:[%s494_s23] sm:$0xff] %vm1690_vm11, %v1687_v18 }
 0x3a8   : > { %2191 = shalt.err (!%p2188_p10)
}
 0x3a9   : > { %1971 = dma.vmem_to_hbm [thread:$0]  (%p2383_p3), %s1706_s16, 128, %s1708_s22, %s1693_s29  }
 0x3ac   : > { %v1688_v33 = vpop.f32.mrf.mxu3 }
 0x3ad PF: > { %s3042_s30 = sld [smem:[#allocation12_spill]]  ;;  %p3044_p12 = scmp.ge.s32.totalorder %s2234_s28, 2 }
 0x3af   : > { %p1985_p13 = pnand %p3044_p12, %p2346_p6 }
 0x3b1   : > { %p1986_p0 = pneg %p1985_p13 }
 0x3b3   : > { %s1719_s15 = sand.u32 1, %s3042_s30  }
 0x3b4   : > { %s1720_s19 = scalar_lea.sflag [#allocation4], %s1719_s15 }
 0x3b5   : > { %2217 = dma.done.wait (%p1986_p0), %s1720_s19, 128  }
 0x3b6   : > { %2219 = vsyncadd (%p1986_p0), %s1720_s19, 4294967168  ;;  %s3045_s28 = sld [smem:[#allocation15_spill]]  ;;  %s3048_s25 = smov %s2226_s26 }
 0x3b7   : > { %s3046_s4 = sld [smem:[#allocation13_spill]] }
 0x3b8   : > { %s3047_s27 = sld [smem:[#allocation16_spill]] }
 0x3bc   : > { %p27_p5 = scmp.ge.s32.totalorder %s3045_s28, 4  }
 0x3bd   : > { %s3049_s26 = smov %s3046_s4 }
 0x3be   :  { %29 = sbr.rel (!%p27_p5) target bundleno = 9 (0x9), region = 125 }
 0x3c3   :  { %1726 = vsyncpa [#allocation3], 1 }
 0x3c4   :  { %1728 = vsyncpa [#allocation3 + $0x1], 1 }
 0x3c5   :  { %1729 = vsyncpa [#allocation6], 1 }
 0x3c6   :  { %1730 = vsyncpa [#allocation4], 1 }
 0x3c7   :  { %1732 = vsyncpa [#allocation4 + $0x1], 1 }

// kernel: tpu_custom_call.1
= control target key start
LH: loop header
LB: loop body
LE: loop exit
PB: predicated region body
PF: predicated region fallthrough
CT: control target
= control target key end

     0   :  { %s3005_s0 = inlined_call_operand.hbm [shape: bf16[16,16,32], index: 0, kind: input, shape index: {}]   ;;  %s3006_s1 = inlined_call_operand.vmem [shape: f32[1,32], index: 1, kind: input, shape index: {}]   ;;  %s3007_s2 = inlined_call_operand.vmem [shape: f32[16,32], index: 2, kind: input, shape index: {}]   ;;  %s3008_s3 = inlined_call_operand.vmem [shape: bf16[32,32], index: 3, kind: input, shape index: {}]   ;;  %s3009_s4 = inlined_call_operand.hbm [shape: bf16[32,32], index: 4, kind: input, shape index: {}]   ;;  %s3010_s5 = inlined_call_operand.hbm [shape: bf16[32,32], index: 5, kind: input, shape index: {}]   ;;  %s3011_s6 = inlined_call_operand.vmem [shape: f32[1,32], index: 6, kind: input, shape index: {}]   ;;  %s3012_s7 = inlined_call_operand.vmem [shape: f32[1,32], index: 7, kind: input, shape index: {}]   ;;  %s3013_s8 = inlined_call_operand.vmem [shape: f32[1,32], index: 8, kind: input, shape index: {}]   ;;  %s3014_s9 = inlined_call_operand.vmem [shape: bf16[32,16], index: 9, kind: input, shape index: {}]   ;;  %s3015_s10 = inlined_call_operand.vmem [shape: f32[1,16], index: 10, kind: input, shape index: {}]   ;;  %s3016_s11 = inlined_call_operand.vmem [shape: bf16[32,4], index: 11, kind: input, shape index: {}]   ;;  %s3017_s12 = inlined_call_operand.vmem [shape: bf16[4,32], index: 12, kind: input, shape index: {}]   ;;  %s3018_s13 = inlined_call_operand.hbm [shape: f32[16,16], index: 13, kind: output, shape index: {}]  }
   0x1   :  { %3026 = sst [smem:[#allocation17_spill]] %s3009_s4 }
   0x2   :  { %3027 = sst [smem:[#allocation18_spill]] %s3010_s5 }
   0x3   :  { %18 = vsyncpa [#allocation3], 0 }
   0x4   :  { %20 = vsyncpa [#allocation3 + $0x1], 0 }
   0x5   :  { %21 = vsyncpa [#allocation6], 0 }
   0x6   :  { %22 = vsyncpa [#allocation4], 0 }
   0x7   :  { %24 = vsyncpa [#allocation4 + $0x1], 0  ;;  %s2311_s25 = smov 0   ;;  %s2313_s26 = smov 0  }
   0x8   :  { %s2315_s27 = smov 0   ;;  %s2317_s28 = smov 0  }
   0x9 LB: > { %3028 = sst [smem:[#allocation12_spill]] %s2222_s25  ;;  %s2332_s29 = sadd.s32 4294967295, %s2234_s28   ;;  %s2234_s28 = sphi %s2317_s28, %s3045_s28   ;;  %s2230_s27 = sphi %s2315_s27, %s3047_s27   ;;  %s2226_s26 = sphi %s2313_s26, %s3049_s26   ;;  %s2222_s25 = sphi %s2311_s25, %s3048_s25  }
   0xa   : > { %3029 = sst [smem:[#allocation13_spill]] %s2230_s27  ;;  %s1797_s30 = sadd.s32 4294967294, %s2234_s28  }
   0xb   : > { %p50_p0 = scmp.ne.s32.totalorder %s2226_s26, %s2222_s25  ;;  %p51_p1 = scmp.eq.s32.totalorder %s2332_s29, 0 }
   0xc   : > { %p326_p2 = scmp.eq.s32.totalorder %s2332_s29, 1  ;;  %p332_p3 = scmp.eq.s32.totalorder %s1797_s30, 1 }
   0xd   : > { %p2341_p4 = por %p51_p1, %p50_p0  ;;  %p1798_p5 = scmp.ge.s32.totalorder %s2234_s28, 1 }
   0xe   : > { %p2346_p6 = por %p332_p3, %p50_p0  ;;  %p339_p7 = scmp.lt.s32.totalorder %s2234_s28, 3 }
   0xf   : > { %s3033_s4 = sld [smem:[#allocation17_spill]]  ;;  %s2236_s20 = smov [#allocation5]  }
  0x10   : > { %s3031_s15 = scalar_select %p2346_p6, 1, 0 }
  0x11   : > { %p2354_p8 = pnand %p1798_p5, %p339_p7  ;;  %s361_s21 = sshll.u32 %s2236_s20, 4  ;;  %s362_s21 = int_to_ptr.vmem [resolvable:$true] %s361_s21 }
  0x12   : > { %3032 = sst [smem:[#allocation14_spill]] %s3031_s15  ;;  %s3019_s30 = smov 64  }
  0x13   : > { %p1973_p9 = pneg %p2354_p8  ;;  %s3035_s5 = sld [smem:[#allocation18_spill]] }
  0x14   : > { %s3020_s16 = smov 4   ;;  %s2239_s17 = smov [#allocation7]  }
  0x15   : > { %s359_s18 = sshll.u32 %s3033_s4, 4  ;;  %p1974_p10 = pnand %p1973_p9, %p51_p1  ;;  %s360_s18 = int_to_ptr.hbm [resolvable:$true] %s359_s18 }
  0x16   : > { %s375_s20 = sshll.u32 %s2239_s17, 4  ;;  %s2373_s22 = sadd.s32 1, %s2234_s28   ;;  %s376_s20 = int_to_ptr.vmem [resolvable:$true] %s375_s20 }
  0x17   : > { %1976 = dma.hbm_to_vmem [thread:$0]  (!%p1974_p10), %s360_s18, 256, %s362_s21, [#allocation6], %s3019_s30, %s3019_s30, %s3020_s16  }
  0x18   : > { %3036 = sst [smem:[#allocation15_spill]] %s2373_s22  ;;  %s37_s23 = sadd.s32 1, %s2230_s27 }
  0x19   : > { %s373_s24 = sshll.u32 %s3035_s5, 4  ;;  %s34_s4 = ssub.s32 %s2234_s28, %s2373_s22  ;;  %s374_s24 = int_to_ptr.hbm [resolvable:$true] %s373_s24 }
  0x1a   : > { %1979 = dma.hbm_to_vmem [thread:$0]  (!%p1974_p10), %s374_s24, 256, %s376_s20, [#allocation6], %s3019_s30, %s3019_s30, %s3020_s16  }
  0x1b   : > { %p44_p12 = scmp.ne.s32.totalorder %s2230_s27, %s2226_s26  ;;  %p35_p13 = scmp.eq.s32.totalorder %s34_s4, 0 }
  0x1c   : > { %p45_p0 = scmp.eq.s32.totalorder %s2234_s28, 0  ;;  %p1990_p5 = scmp.lt.s32.totalorder %s2234_s28, 2 }
  0x1d   : > { %p2383_p3 = por %p326_p2, %p44_p12  ;;  %s410_s21 = sand.u32 1, %s2230_s27  }
  0x1e   : > { %s2389_s18 = scalar_select %p35_p13, %s2230_s27, %s37_s23  }
  0x1f   : > { %p46_p7 = por %p45_p0, %p44_p12  ;;  %s1802_s17 = sshll.u32 %s410_s21, 6 }
  0x20   : > { %3038 = sst [smem:[#allocation16_spill]] %s2389_s18  ;;  %s1911_s24 = sshll.u32 %s2234_s28, 6 }
  0x21   : > { %s420_s16 = scalar_lea.hbm %s3005_s0, %s1911_s24  ;;  %s414_s22 = scalar_lea.vmem [#allocation2], %s1802_s17 }
  0x22   : > { %s423_s15 = sshll.u32 %s414_s22, 4  ;;  %s421_s4 = sshll.u32 %s420_s16, 4  ;;  %s424_s15 = int_to_ptr.vmem [resolvable:$true] %s423_s15  ;;  %s422_s4 = int_to_ptr.hbm [resolvable:$true] %s421_s4 }
  0x23   : > { %p2396_p2 = pnand %p1990_p5, %p46_p7  ;;  %s411_s23 = scalar_lea.sflag [#allocation3], %s410_s21 }
  0x24   : > { %s2134_s18 = sshra.s32 %s422_s4, 4  ;;  %s2141_s16 = scalar_lea.hbm %s3005_s0, 128  ;;  %s2135_s18 = int_to_ptr.hbm [resolvable:$true] %s2134_s18 }
  0x25   : > { %s2136_s27 = scalar_lea.hbm %s2135_s18, 64  ;;  %p2138_p10 = pneg %p2396_p2 }
  0x26   : > { %p2137_p9 = scmp.ne.s32.totalorder %s2135_s18, %s2136_s27  ;;  %p2142_p0 = scmp.lt.s32.totalorder %s2135_s18, %s3005_s0 }
  0x27   : > { %p2143_p5 = scmp.lt.s32.totalorder %s2141_s16, %s2136_s27 }
  0x28   : > { %p2139_p12 = pnand %p2138_p10, %p2137_p9 }
  0x29   : > { %p2144_p7 = por %p2143_p5, %p2142_p0 }
  0x2a   : > { %p2140_p13 = pneg %p2139_p12 }
  0x2c   : > { %p2145_p11 = pnand %p2144_p7, %p2140_p13 }
  0x2e   : > { %2148 = shalt.err (!%p2145_p11)
}
  0x2f   : > { %s3040_s21 = smov 4   ;;  %s3041_s20 = smov 64  }
  0x30   : > { %1983 = dma.hbm_to_vmem [thread:$0]  (!%p2396_p2), %s422_s4, 1024, %s424_s15, %s411_s23, %s3041_s20, %s3041_s20, %s3040_s21  }
  0x31   : > { %435 = sbr.rel (%p2354_p8) target bundleno = 941 (0x3ad), region = 72  ;;  %s2416_s30 = sand.u32 (!%p2354_p8), 1, %s2226_s26  }
  0x32   : > { %s1807_s18 = sshll.u32 (!%p2354_p8), %s2416_s30, 6  ;;  %s438_s27 = scalar_lea.sflag (!%p2354_p8), [#allocation3], %s2416_s30 }
  0x33   : > { %s2420_s17 = scalar_lea.vmem (!%p2354_p8), [#allocation2], %s1807_s18 }
  0x36   : > { %2209 = dma.done.wait (%p2341_p4), %s438_s27, 1024  }
  0x37   : > { %2211 = vsyncadd (%p2341_p4), %s438_s27, 4294966272 }
  0x38   : > { %2213 = dma.done.wait (%p51_p1), [#allocation6], 512  }
  0x39   : > { %2215 = vsyncadd (%p51_p1), [#allocation6], 4294966784  ;;  %v2240_v0 = vmov 16.0   ;;  %v1915_v2 = vld [vmem:[#allocation5 + $0x8] sm:$0xff]  ;;  %v1923_v3 = vld [vmem:[%s2420_s17] sm:$0xff]   ;;  %vm529_vm0 = vcmask 261120  }
  0x3a   : > { %2036 = vrcp.f32 %v2240_v0  ;;  %v1914_v4 = vld [vmem:[#allocation5] sm:$0xff]  ;;  %v1924_v5 = vunpack.c.l.bf16 %v1923_v3  ;;  %v1925_v6 = vunpack.c.h.bf16 %v1923_v3  ;;  %882 = vmatpush.bf16.msra.mxu3 %v1915_v2  ;;  %v2439_v9 = vld [vmem:[%s3007_s2 + $0x8] sm:$0xff]  ;;  %772 = vmatpush.bf16.msra.mxu1 %v1915_v2  ;;  %v2449_v16 = vld [vmem:[%s2420_s17 + $0x10] sm:$0xff]   ;;  %vm696_vm2 = vcmask 1041409   ;;  %s1907_s27 = sshll.u32 %s2332_s29, 3  ;;  %s1693_s29 = scalar_lea.sflag [#allocation4], %s2416_s30 }
  0x3b   : > { %v2434_v8 = vld [vmem:[%s3007_s2] sm:$0xff]  ;;  %v1954_v10 = vld [vmem:[%s2420_s17 + $0x8] sm:$0xff]   ;;  %v1932_v24 = vunpack.c.l.bf16 %v2449_v16  ;;  %v2459_v29 = vld [vmem:[%s2420_s17 + $0x18] sm:$0xff]   ;;  %v1933_v37 = vunpack.c.h.bf16 %v2449_v16  ;;  %vm699_vm3 = vcmask 1042434   ;;  %vm702_vm4 = vcmask 1043459   ;;  %s1703_s15 = scalar_lea.hbm %s3018_s13, %s1907_s27  ;;  %s2184_s27 = scalar_lea.hbm %s3018_s13, 16 }
  0x3c   : > { %v1913_v11 = vld [vmem:[%s3008_s3 + $0x8] sm:$0xff]  ;;  %v530_v12 = vsel %vm529_vm0, %v1924_v5, 0.0  ;;  %v531_v13 = vsel %vm529_vm0, %v1925_v6, 0.0  ;;  %v631_v15 = vadd.f32 %v1924_v5, %v2434_v8  ;;  %v632_v18 = vadd.f32 %v1925_v6, %v2439_v9  ;;  %v1912_v21 = vld [vmem:[%s3008_s3] sm:$0xff]  ;;  %v2478_v48 = vld [vmem:[%s2420_s17 + $0x30] sm:$0xff]   ;;  %s1707_s22 = sshll.u32 %s1703_s15, 4  ;;  %s1708_s22 = int_to_ptr.hbm [resolvable:$true] %s1707_s22 }
  0x3d   : > { %v532_v17 = vadd.f32 %v531_v13, %v530_v12  ;;  %v1928_v19 = vunpack.c.l.bf16 %v1954_v10  ;;  %v1929_v20 = vunpack.c.h.bf16 %v1954_v10  ;;  %738 = vmatpush.bf16.msra.mxu0 %v1913_v11  ;;  %v2465_v38 = vld [vmem:[%s2420_s17 + $0x20] sm:$0xff]   ;;  %v1936_v42 = vunpack.c.l.bf16 %v2459_v29  ;;  %v2472_v43 = vld [vmem:[%s2420_s17 + $0x28] sm:$0xff]   ;;  %v2481_v49 = vld [vmem:[%s2420_s17 + $0x38] sm:$0xff]   ;;  %s1810_s17 = sshll.u32 %s2416_s30, 3  ;;  %s2178_s24 = sshra.s32 %s1708_s22, 4  ;;  %s2179_s24 = int_to_ptr.hbm [resolvable:$true] %s2178_s24 }
  0x3e   : > { %v655_v23 = vpack.c.bf16 %v631_v15, %v631_v15  ;;  %883 = vmatpush.bf16.msra.mxu3 %v1914_v4  ;;  %v656_v26 = vpack.c.bf16 %v632_v18, %v632_v18  ;;  %773 = vmatpush.bf16.msra.mxu1 %v1914_v4  ;;  %v1937_v47 = vunpack.c.h.bf16 %v2459_v29  ;;  %v1940_v52 = vunpack.c.l.bf16 %v2465_v38  ;;  %v2518_v18 = vld [vmem:[%s3006_s1] ss:$0 sm:$0xff]  ;;  %s494_s23 = scalar_lea.vmem [#allocation8], %s1810_s17  ;;  %s2180_s21 = scalar_lea.hbm %s2179_s24, 8 }
  0x3f   : > { %v533_v25 = vrot.slane %v532_v17, 4  ;;  %v539_v27 = vsel %vm529_vm0, %v1928_v19, 0.0  ;;  %v540_v28 = vsel %vm529_vm0, %v1929_v20, 0.0  ;;  %v633_v33 = vadd.f32 %v1928_v19, %v2434_v8  ;;  %s1705_s16 = sshll.u32 %s494_s23, 4  ;;  %p2181_p1 = scmp.ne.s32.totalorder %s2179_s24, %s2180_s21  ;;  %s1706_s16 = int_to_ptr.vmem [resolvable:$true] %s1705_s16 }
  0x40   : > { %v2037_v1 = vpop.eup %2036  ;;  %v828_v31 = vunpack.c.l.b16 %v655_v23  ;;  %v541_v32 = vadd.f32 %v540_v28, %v539_v27  ;;  %v829_v35 = vunpack.c.l.b16 %v656_v26  ;;  %v634_v36 = vadd.f32 %v1929_v20, %v2439_v9  ;;  %v1917_v27 = vld [vmem:[#allocation7 + $0x8] sm:$0xff]  ;;  %p2185_p11 = scmp.lt.s32.totalorder %s2179_s24, %s3018_s13  ;;  %p2186_p2 = scmp.lt.s32.totalorder %s2184_s27, %s2180_s21 }
  0x41   : > { %v603_v7 = vmul.f32 16.0, %v2037_v1  ;;  %vm607_vm1 = vweird.f32 %v2037_v1  ;;  %v534_v34 = vadd.f32 %v533_v25, %v532_v17  ;;  %739 = vmatpush.bf16.msra.mxu0 %v1912_v21  ;;  %v657_v41 = vpack.c.bf16 %v633_v33, %v633_v33  ;;  %805 = vmatpush.bf16.msra.mxu2 %v1917_v27  ;;  %p2182_p4 = pnand %p2181_p1, %p2383_p3 }
  0x42   : > { %v542_v40 = vrot.slane %v541_v32, 4  ;;  %v2474_v45 = vpack.c.b16 %v829_v35, %v828_v31  ;;  %v658_v46 = vpack.c.bf16 %v634_v36, %v634_v36  ;;  %v1941_v53 = vunpack.c.h.bf16 %v2465_v38  ;;  %p2187_p9 = por %p2186_p2, %p2185_p11 }
  0x43   : > { %v604_v14 = vsub.f32 1.0, %v603_v7  ;;  %v535_v44 = vrot.slane %v534_v34, 2  ;;  %v830_v51 = vunpack.c.l.b16 %v657_v41  ;;  %v1944_v56 = vunpack.c.l.bf16 %v2472_v43  ;;  %p2183_p8 = pneg %p2182_p4 }
  0x44   : > { %v543_v50 = vadd.f32 %v542_v40, %v541_v32  ;;  %1838 = vmatmul.msk.bf16.vlgmr.msra.gmra.mxu3 %vm529_vm0, %v2474_v45  ;;  %v831_v55 = vunpack.c.l.b16 %v658_v46  ;;  %v1945_v57 = vunpack.c.h.bf16 %v2472_v43  ;;  %v1948_v59 = vunpack.c.l.bf16 %v2478_v48  ;;  %v1916_v40 = vld [vmem:[#allocation7] sm:$0xff] }
  0x45   : > { %v605_v22 = vmul.f32 %v2037_v1, %v604_v14  ;;  %v536_v54 = vadd.f32 %v535_v44, %v534_v34  ;;  %v1949_v60 = vunpack.c.h.bf16 %v2478_v48  ;;  %v1952_v61 = vunpack.c.l.bf16 %v2481_v49  ;;  %931 = vmatpush.bf16.msrb.mxu0 %v1917_v27  ;;  %806 = vmatpush.bf16.msra.mxu2 %v1916_v40  ;;  %p2188_p10 = pnand %p2187_p9, %p2183_p8 }
  0x46   : > { %v544_v58 = vrot.slane %v543_v50, 2  ;;  %v1953_v63 = vunpack.c.h.bf16 %v2481_v49  ;;  %v548_v0 = vsel %vm529_vm0, %v1932_v24, 0.0  ;;  %v557_v4 = vsel %vm529_vm0, %v1936_v42, 0.0 }
  0x47   : > { %v606_v30 = vadd.f32 %v2037_v1, %v605_v22  ;;  %v537_v62 = vrot.slane %v536_v54, 1  ;;  %v558_v5 = vsel %vm529_vm0, %v1937_v47, 0.0  ;;  %v566_v10 = vsel %vm529_vm0, %v1940_v52, 0.0 }
  0x48   : > { %v545_v2 = vadd.f32 %v544_v58, %v543_v50  ;;  %v559_v7 = vadd.f32 %v558_v5, %v557_v4  ;;  %v567_v11 = vsel %vm529_vm0, %v1941_v53, 0.0  ;;  %v575_v15 = vsel %vm529_vm0, %v1944_v56, 0.0 }
  0x49   : > { %v2468_v39 = vsel %vm607_vm1, %v2037_v1, %v606_v30  ;;  %v549_v1 = vsel %vm529_vm0, %v1933_v37, 0.0  ;;  %v538_v6 = vadd.f32 %v537_v62, %v536_v54  ;;  %v568_v14 = vadd.f32 %v567_v11, %v566_v10  ;;  %932 = vmatpush.bf16.msrb.mxu0 %v1916_v40 }
  0x4a   : > { %v550_v3 = vadd.f32 %v549_v1, %v548_v0  ;;  %v546_v12 = vrot.slane %v545_v2, 1  ;;  %v560_v19 = vrot.slane %v559_v7, 4  ;;  %v576_v20 = vsel %vm529_vm0, %v1945_v57, 0.0 }
  0x4b   : > { %v609_v17 = vmul.f32 %v2468_v39, %v538_v6  ;;  %v584_v21 = vsel %vm529_vm0, %v1948_v59, 0.0  ;;  %v569_v25 = vrot.slane %v568_v14, 4  ;;  %v577_v26 = vadd.f32 %v576_v20, %v575_v15 }
  0x4c   : > { %v551_v13 = vrot.slane %v550_v3, 4  ;;  %v547_v22 = vadd.f32 %v546_v12, %v545_v2  ;;  %v561_v30 = vadd.f32 %v560_v19, %v559_v7  ;;  %v585_v31 = vsel %vm529_vm0, %v1949_v60, 0.0 }
  0x4d   : > { %v621_v28 = vadd.f32 %v2518_v18, %v609_v17  ;;  %v593_v32 = vsel %vm529_vm0, %v1952_v61, 0.0  ;;  %v570_v35 = vadd.f32 %v569_v25, %v568_v14  ;;  %v578_v36 = vrot.slane %v577_v26, 4 }
  0x4e   : > { %v552_v23 = vadd.f32 %v551_v13, %v550_v3  ;;  %v610_v33 = vmul.f32 %v2468_v39, %v547_v22  ;;  %v2534_v41 = vpack.c.b16 %v831_v55, %v830_v51  ;;  %v562_v44 = vrot.slane %v561_v30, 2 }
  0x4f   : > { %v586_v46 = vadd.f32 %v585_v31, %v584_v21  ;;  %v594_v50 = vsel %vm529_vm0, %v1953_v63, 0.0  ;;  %v571_v62 = vrot.slane %v570_v35, 2  ;;  %v579_v0 = vadd.f32 %v578_v36, %v577_v26 }
  0x50   : > { %v553_v34 = vrot.slane %v552_v23, 2  ;;  %v622_v54 = vadd.f32 %v2518_v18, %v610_v33  ;;  %v647_v1 = vpack.c.bf16 %v621_v28, %v621_v28  ;;  %v563_v2 = vadd.f32 %v562_v44, %v561_v30 }
  0x51   : > { %v587_v3 = vrot.slane %v586_v46, 4  ;;  %v595_v4 = vadd.f32 %v594_v50, %v593_v32  ;;  %v572_v7 = vadd.f32 %v571_v62, %v570_v35  ;;  %v580_v51 = vrot.slane %v579_v0, 2 }
  0x52   : > { %v554_v58 = vadd.f32 %v553_v34, %v552_v23  ;;  %v648_v5 = vpack.c.bf16 %v622_v54, %v622_v54  ;;  %v564_v55 = vrot.slane %v563_v2, 1  ;;  %v687_v21 = vunpack.c.l.b16 %v647_v1 }
  0x53   : > { %v588_v10 = vadd.f32 %v587_v3, %v586_v46  ;;  %v596_v11 = vrot.slane %v595_v4, 4  ;;  %v573_v13 = vrot.slane %v572_v7, 1  ;;  %v581_v14 = vadd.f32 %v580_v51, %v579_v0 }
  0x54   : > { %v555_v6 = vrot.slane %v554_v58, 1  ;;  %v688_v15 = vunpack.c.l.b16 %v648_v5  ;;  %1839 = vmatmul.msk.bf16.gmra.mxu3 %vm529_vm0, %v2534_v41  ;;  %v565_v17 = vadd.f32 %v564_v55, %v563_v2  ;;  %vm705_vm5 = vcmask 1044484  }
  0x55   : > { %v589_v19 = vrot.slane %v588_v10, 2  ;;  %v597_v20 = vadd.f32 %v596_v11, %v595_v4  ;;  %v574_v22 = vadd.f32 %v573_v13, %v572_v7  ;;  %v582_v23 = vrot.slane %v581_v14, 1 }
  0x56   : > { %v556_v12 = vadd.f32 %v555_v6, %v554_v58  ;;  %v695_v26 = vrot.slane %v688_v15, 7  ;;  %v612_v30 = vmul.f32 %v2468_v39, %v565_v17  ;;  %vm708_vm6 = vcmask 1045509  }
  0x57   : > { %v590_v27 = vadd.f32 %v589_v19, %v588_v10  ;;  %v598_v28 = vrot.slane %v597_v20, 2  ;;  %v583_v31 = vadd.f32 %v582_v23, %v581_v14  ;;  %v613_v32 = vmul.f32 %v2468_v39, %v574_v22 }
  0x58   : > { %v611_v25 = vmul.f32 %v2468_v39, %v556_v12  ;;  %v624_v36 = vadd.f32 %v2518_v18, %v612_v30  ;;  %v697_v50 = vsel %vm696_vm2, %v695_v26, %v687_v21  ;;  %v635_v6 = vadd.f32 %v1932_v24, %v2434_v8 }
  0x59   : > { %v591_v34 = vrot.slane %v590_v27, 1  ;;  %v599_v35 = vadd.f32 %v598_v28, %v597_v20  ;;  %v614_v40 = vmul.f32 %v2468_v39, %v583_v31  ;;  %v625_v44 = vadd.f32 %v2518_v18, %v613_v32 }
  0x5a   : > { %v623_v33 = vadd.f32 %v2518_v18, %v611_v25  ;;  %v650_v62 = vpack.c.bf16 %v624_v36, %v624_v36  ;;  %v636_v10 = vadd.f32 %v1933_v37, %v2439_v9  ;;  %v659_v14 = vpack.c.bf16 %v635_v6, %v635_v6 }
  0x5b   : > { %v592_v54 = vadd.f32 %v591_v34, %v590_v27  ;;  %v600_v58 = vrot.slane %v599_v35, 1  ;;  %v626_v0 = vadd.f32 %v2518_v18, %v614_v40  ;;  %v651_v1 = vpack.c.bf16 %v625_v44, %v625_v44 }
  0x5c   : > { %v649_v46 = vpack.c.bf16 %v623_v33, %v623_v33  ;;  %v690_v5 = vunpack.c.l.b16 %v650_v62  ;;  %v660_v20 = vpack.c.bf16 %v636_v10, %v636_v10  ;;  %v832_v23 = vunpack.c.l.b16 %v659_v14 }
  0x5d   : > { %v601_v3 = vadd.f32 %v600_v58, %v599_v35  ;;  %v615_v4 = vmul.f32 %v2468_v39, %v592_v54  ;;  %v652_v7 = vpack.c.bf16 %v626_v0, %v626_v0  ;;  %v691_v51 = vunpack.c.l.b16 %v651_v1 }
  0x5e   : > { %v689_v2 = vunpack.c.l.b16 %v649_v46  ;;  %v701_v13 = vrot.slane %v690_v5, 5  ;;  %v833_v25 = vunpack.c.l.b16 %v660_v20  ;;  %vm711_vm7 = vcmask 1046534  }
  0x5f   : > { %v616_v11 = vmul.f32 %v2468_v39, %v601_v3  ;;  %v627_v12 = vadd.f32 %v2518_v18, %v615_v4  ;;  %v692_v15 = vunpack.c.l.b16 %v652_v7  ;;  %v704_v19 = vrot.slane %v691_v51, 4 }
  0x60   : > { %v698_v55 = vrot.slane %v689_v2, 6  ;;  %v846_v28 = vpack.c.b16 %v833_v25, %v832_v23  ;;  %vm714_vm8 = vcmask 1047559   ;;  %v638_v32 = vadd.f32 %v1937_v47, %v2439_v9 }
  0x61   : > { %v628_v24 = vadd.f32 %v2518_v18, %v616_v11  ;;  %v653_v21 = vpack.c.bf16 %v627_v12, %v627_v12  ;;  %v707_v37 = vrot.slane %v692_v15, 3  ;;  %v637_v18 = vadd.f32 %v1936_v42, %v2434_v8  ;;  %v1919_v12 = vld [vmem:[%s3016_s11 + $0x8] sm:$0xff] }
  0x62   : > { %v700_v17 = vsel %vm699_vm3, %v698_v55, %v697_v50  ;;  %v662_v44 = vpack.c.bf16 %v638_v32, %v638_v32  ;;  %v639_v29 = vadd.f32 %v1940_v52, %v2434_v8  ;;  %v640_v47 = vadd.f32 %v1941_v53, %v2439_v9  ;;  %1100 = vmatpush.bf16.msrb.mxu2 %v1919_v12 }
  0x63   : > { %v703_v22 = vsel %vm702_vm4, %v701_v13, %v700_v17  ;;  %v654_v39 = vpack.c.bf16 %v628_v24, %v628_v24  ;;  %v693_v26 = vunpack.c.l.b16 %v653_v21  ;;  %v661_v40 = vpack.c.bf16 %v637_v18, %v637_v18  ;;  %v2627_v17 = vld [vmem:[%s3012_s7] ss:$0 sm:$0xff] }
  0x64   : > { %v706_v16 = vsel %vm705_vm5, %v704_v19, %v703_v22  ;;  %1840 = vmatmul.msk.bf16.gmra.mxu3 %vm529_vm0, %v846_v28  ;;  %v835_v42 = vunpack.c.l.b16 %v662_v44  ;;  %v663_v54 = vpack.c.bf16 %v639_v29, %v639_v29  ;;  %v664_v58 = vpack.c.bf16 %v640_v47, %v640_v47 }
  0x65   : > { %v709_v27 = vsel %vm708_vm6, %v707_v37, %v706_v16  ;;  %v694_v30 = vunpack.c.l.b16 %v654_v39  ;;  %v710_v31 = vrot.slane %v693_v26, 2  ;;  %v834_v46 = vunpack.c.l.b16 %v661_v40 }
  0x66   : > { %v641_v62 = vadd.f32 %v1944_v56, %v2434_v8  ;;  %v642_v0 = vadd.f32 %v1945_v57, %v2439_v9  ;;  %v836_v52 = vunpack.c.l.b16 %v663_v54  ;;  %v837_v3 = vunpack.c.l.b16 %v664_v58 }
  0x67   : > { %v712_v33 = vsel %vm711_vm7, %v710_v31, %v709_v27  ;;  %v713_v34 = vrot.slane %v694_v30, 1  ;;  %v847_v50 = vpack.c.b16 %v835_v42, %v834_v46  ;;  %v643_v56 = vadd.f32 %v1948_v59, %v2434_v8 }
  0x68   : > { %v665_v1 = vpack.c.bf16 %v641_v62, %v641_v62  ;;  %v666_v2 = vpack.c.bf16 %v642_v0, %v642_v0  ;;  %v848_v5 = vpack.c.b16 %v837_v3, %v836_v52  ;;  %v644_v43 = vadd.f32 %v1949_v60, %v2439_v9 }
  0x69   : > { %v715_v35 = vsel %vm714_vm8, %v713_v34, %v712_v33  ;;  %v645_v59 = vadd.f32 %v1952_v61, %v2434_v8  ;;  %v646_v48 = vadd.f32 %v1953_v63, %v2439_v9  ;;  %v1918_v9 = vld [vmem:[%s3016_s11] sm:$0xff]  ;;  %vm1151_vm9 = vcmask 31744  }
  0x6a   : > { %v716_v36 = vpack.c.b16 %v715_v35, %v715_v35  ;;  %v838_v4 = vunpack.c.l.b16 %v665_v1  ;;  %v839_v38 = vunpack.c.l.b16 %v666_v2  ;;  %v668_v57 = vpack.c.bf16 %v644_v43, %v644_v43  ;;  %1101 = vmatpush.bf16.msrb.mxu2 %v1918_v9  ;;  %v2033_v63 = vld [vmem:[%s3011_s6] ss:$0 sm:$0xff] }
  0x6b   : > { %v669_v60 = vpack.c.bf16 %v645_v59, %v645_v59  ;;  %vm1409_vm10 = vcmask 1041408   ;;  %vm1690_vm11 = vcmask 130048  }
  0x6c   : > { %1819 = vmatmul.msk.bf16.vlgmr.msra.gmra.mxu0 %vm529_vm0, %v716_v36  ;;  %1828 = vmatmul.msk.bf16.vlgmr.msra.gmra.mxu1 %vm529_vm0, %v716_v36  ;;  %v849_v53 = vpack.c.b16 %v839_v38, %v838_v4  ;;  %v841_v7 = vunpack.c.l.b16 %v668_v57 }
  0x6d   : > { %1837 = vmatmul.msk.bf16.vlgmr.msra.gmra.mxu2 %vm529_vm0, %v716_v36  ;;  %v842_v55 = vunpack.c.l.b16 %v669_v60  ;;  %1000 = vmatpush.bf16.msra.mxu0 %v1919_v12 }
  0x71   : > { %1001 = vmatpush.bf16.msra.mxu0 %v1918_v9 }
  0x74   : > { %1841 = vmatmul.msk.bf16.gmra.mxu3 %vm529_vm0, %v847_v50 }
  0x7c   : > { %1846 = vmatmul.msk.bf16.vlgmr.msrb.gmra.mxu0 %vm529_vm0, %v2474_v45  ;;  %v667_v45 = vpack.c.bf16 %v643_v56, %v643_v56 }
  0x7e   : > { %v840_v6 = vunpack.c.l.b16 %v667_v45 }
  0x80   : > { %v850_v51 = vpack.c.b16 %v841_v7, %v840_v6 }
  0x84   : > { %1842 = vmatmul.msk.bf16.gmra.mxu3 %vm529_vm0, %v848_v5 }
  0x8c   : > { %1847 = vmatmul.msk.bf16.gmra.mxu0 %vm529_vm0, %v2534_v41  ;;  %v670_v41 = vpack.c.bf16 %v646_v48, %v646_v48 }
  0x8e   : > { %v843_v10 = vunpack.c.l.b16 %v670_v41 }
  0x90   : > { %v851_v11 = vpack.c.b16 %v843_v10, %v842_v55 }
  0x94   : > { %1843 = vmatmul.msk.bf16.gmra.mxu3 %vm529_vm0, %v849_v53 }
  0x9c   : > { %1848 = vmatmul.msk.bf16.gmra.mxu0 %vm529_vm0, %v846_v28 }
  0xa4   : > { %1844 = vmatmul.msk.bf16.gmra.mxu3 %vm529_vm0, %v850_v51 }
  0xac   : > { %1849 = vmatmul.msk.bf16.gmra.mxu0 %vm529_vm0, %v847_v50 }
  0xb4   : > { %1845 = vmatmul.msk.bf16.gmra.mxu3 %vm529_vm0, %v851_v11 }
  0xbc   : > { %1850 = vmatmul.msk.bf16.gmra.mxu0 %vm529_vm0, %v848_v5 }
  0xc7   : > { %v885_v8 = vpop.f32.mrf.mxu3 }
  0xc8   : > { %v886_v20 = vadd.f32 %v2627_v17, %v885_v8 }
  0xcc   : > { %1851 = vmatmul.msk.bf16.gmra.mxu0 %vm529_vm0, %v849_v53 }
  0xcf   : > { %v887_v49 = vpop.f32.mrf.mxu3 }
  0xd0   : > { %v888_v25 = vadd.f32 %v2627_v17, %v887_v49 }
  0xd7   : > { %v890_v61 = vpop.f32.mrf.mxu3 }
  0xd8   : > { %v891_v30 = vadd.f32 %v2627_v17, %v890_v61 }
  0xdc   : > { %1852 = vmatmul.msk.bf16.gmra.mxu0 %vm529_vm0, %v850_v51 }
  0xdf   : > { %v892_v13 = vpop.f32.mrf.mxu3 }
  0xe0   : > { %v893_v33 = vadd.f32 %v2627_v17, %v892_v13 }
  0xe7   : > { %v895_v37 = vpop.f32.mrf.mxu3 }
  0xe8   : > { %v896_v40 = vadd.f32 %v2627_v17, %v895_v37 }
  0xe9   : > { %v741_v14 = vpop.f32.mrf.mxu0  ;;  %v775_v15 = vpop.f32.mrf.mxu1 }
  0xea   : > { %v742_v19 = vadd.f32 %v2033_v63, %v741_v14  ;;  %v776_v39 = vadd.f32 %v2627_v17, %v775_v15 }
  0xec   : > { %v2630_v24 = vmul.f32 0.35355338, %v742_v19  ;;  %1853 = vmatmul.msk.bf16.gmra.mxu0 %vm529_vm0, %v851_v11 }
  0xee   : > { %v1014_v21 = vperm.slane %v2630_v24, 0  ;;  %v1007_v26 = vrot.slane %v2630_v24, 1  ;;  %v974_v28 = vmul.f32 %v776_v39, %v2630_v24  ;;  %v1008_v36 = vrot.slane %v2630_v24, 2 }
  0xef   : > { %v897_v18 = vpop.f32.mrf.mxu3  ;;  %v1009_v47 = vrot.slane %v2630_v24, 3  ;;  %v1010_v3 = vrot.slane %v2630_v24, 4  ;;  %v1011_v57 = vrot.slane %v2630_v24, 5  ;;  %v1012_v10 = vrot.slane %v2630_v24, 6 }
  0xf0   : > { %v1030_v22 = vmul.f32 %v1014_v21, %v886_v20  ;;  %v1031_v27 = vmul.f32 %v1014_v21, %v888_v25  ;;  %v1015_v31 = vperm.slane %v1007_v26, 0  ;;  %v1016_v44 = vperm.slane %v1008_v36, 0  ;;  %v2661_v6 = vpop.f32.mrf.mxu2 }
  0xf1   : > { %v743_v23 = vpop.f32.mrf.mxu0  ;;  %v777_v16 = vpop.f32.mrf.mxu1  ;;  %v898_v50 = vadd.f32 %v2627_v17, %v897_v18  ;;  %v1017_v62 = vperm.slane %v1009_v47, 0  ;;  %v1018_v38 = vperm.slane %v1010_v3, 0  ;;  %v1019_v51 = vperm.slane %v1011_v57, 0 }
  0xf2   : > { %1863 = vmatmul.msk.f32.vlgmr.msrb.gmra.mxu2 %vm529_vm0, %v1030_v22  ;;  %v1032_v32 = vmul.f32 %v1015_v31, %v891_v30  ;;  %v1033_v35 = vmul.f32 %v1015_v31, %v893_v33  ;;  %v1034_v46 = vmul.f32 %v1016_v44, %v896_v40  ;;  %v1020_v8 = vperm.slane %v1012_v10, 0 }
  0xf3   : > { %v1035_v29 = vmul.f32 %v1016_v44, %v898_v50  ;;  %v1013_v13 = vrot.slane %v2630_v24, 7 }
  0xf5   : > { %v1021_v19 = vperm.slane %v1013_v13, 0 }
  0xf7   : > { %v900_v34 = vpop.f32.mrf.mxu3 }
  0xf8   : > { %v901_v58 = vadd.f32 %v2627_v17, %v900_v34  ;;  %v810_v48 = vpop.f32.mrf.mxu2 }
  0xf9   : > { %v2674_v15 = vpop.f32.mrf.mxu0 }
  0xfa   : > { %1864 = vmatmul.msk.f32.gmra.mxu2 %vm529_vm0, %v1031_v27  ;;  %v1036_v0 = vmul.f32 %v1017_v62, %v901_v58 }
  0xfc   : > { %1862 = vmatmul.msk.f32.vlgmr.msra.gmra.mxu0 %vm529_vm0, %v974_v28 }
  0xff   : > { %v902_v42 = vpop.f32.mrf.mxu3 }
 0x100   : > { %v903_v1 = vadd.f32 %v2627_v17, %v902_v42 }
 0x101   : > { %v2678_v23 = vpop.f32.mrf.mxu0 }
 0x102   : > { %1865 = vmatmul.msk.f32.gmra.mxu2 %vm529_vm0, %v1032_v32  ;;  %v1037_v52 = vmul.f32 %v1017_v62, %v903_v1 }
 0x107   : > { %v905_v54 = vpop.f32.mrf.mxu3 }
 0x108   : > { %v906_v4 = vadd.f32 %v2627_v17, %v905_v54 }
 0x109   : > { %v2681_v37 = vpop.f32.mrf.mxu0 }
 0x10a   : > { %1866 = vmatmul.msk.f32.gmra.mxu2 %vm529_vm0, %v1033_v35  ;;  %v1038_v5 = vmul.f32 %v1018_v38, %v906_v4 }
 0x10f   : > { %v907_v2 = vpop.f32.mrf.mxu3 }
 0x110   : > { %v908_v56 = vadd.f32 %v2627_v17, %v907_v2 }
 0x111   : > { %v2685_v25 = vpop.f32.mrf.mxu0 }
 0x112   : > { %1867 = vmatmul.msk.f32.gmra.mxu2 %vm529_vm0, %v1034_v46  ;;  %v1039_v43 = vmul.f32 %v1018_v38, %v908_v56 }
 0x117   : > { %v910_v53 = vpop.f32.mrf.mxu3 }
 0x118   : > { %v911_v7 = vadd.f32 %v2627_v17, %v910_v53 }
 0x119   : > { %v2689_v26 = vpop.f32.mrf.mxu0 }
 0x11a   : > { %1868 = vmatmul.msk.f32.gmra.mxu2 %vm529_vm0, %v1035_v29  ;;  %v1040_v59 = vmul.f32 %v1019_v51, %v911_v7 }
 0x11f   : > { %v912_v45 = vpop.f32.mrf.mxu3 }
 0x120   : > { %v913_v41 = vadd.f32 %v2627_v17, %v912_v45 }
 0x122   : > { %1869 = vmatmul.msk.f32.gmra.mxu2 %vm529_vm0, %v1036_v0  ;;  %v1041_v55 = vmul.f32 %v1019_v51, %v913_v41 }
 0x127   : > { %v915_v60 = vpop.f32.mrf.mxu3 }
 0x128   : > { %v916_v11 = vadd.f32 %v2627_v17, %v915_v60 }
 0x12a   : > { %1870 = vmatmul.msk.f32.gmra.mxu2 %vm529_vm0, %v1037_v52  ;;  %v1042_v9 = vmul.f32 %v1020_v8, %v916_v11 }
 0x12f   : > { %v917_v12 = vpop.f32.mrf.mxu3 }
 0x130   : > { %v918_v49 = vadd.f32 %v2627_v17, %v917_v12 }
 0x132   : > { %1871 = vmatmul.msk.f32.gmra.mxu2 %vm529_vm0, %v1038_v5  ;;  %v1043_v63 = vmul.f32 %v1020_v8, %v918_v49 }
 0x137   : > { %v920_v61 = vpop.f32.mrf.mxu3 }
 0x138   : > { %v921_v14 = vadd.f32 %v2627_v17, %v920_v61 }
 0x13a   : > { %1872 = vmatmul.msk.f32.gmra.mxu2 %vm529_vm0, %v1039_v43  ;;  %v1044_v20 = vmul.f32 %v1021_v19, %v921_v14 }
 0x13f   : > { %v922_v21 = vpop.f32.mrf.mxu3 }
 0x140   : > { %v923_v22 = vadd.f32 %v2627_v17, %v922_v21  ;;  %v2695_v17 = vpop.f32.mrf.mxu0 }
 0x142   : > { %1873 = vmatmul.msk.f32.gmra.mxu2 %vm529_vm0, %v1040_v59  ;;  %v1045_v16 = vmul.f32 %v1021_v19, %v923_v22 }
 0x148   : > { %v2699_v31 = vpop.f32.mrf.mxu0 }
 0x14a   : > { %1874 = vmatmul.msk.f32.gmra.mxu2 %vm529_vm0, %v1041_v55 }
 0x150   : > { %v2703_v32 = vpop.f32.mrf.mxu0 }
 0x152   : > { %1875 = vmatmul.msk.f32.gmra.mxu2 %vm529_vm0, %v1042_v9 }
 0x158   : > { %v2707_v34 = vpop.f32.mrf.mxu0 }
 0x15a   : > { %1876 = vmatmul.msk.f32.gmra.mxu2 %vm529_vm0, %v1043_v63 }
 0x160   : > { %v2713_v40 = vpop.f32.mrf.mxu0 }
 0x162   : > { %1877 = vmatmul.msk.f32.gmra.mxu2 %vm529_vm0, %v1044_v20 }
 0x168   : > { %v2717_v46 = vpop.f32.mrf.mxu0 }
 0x16a   : > { %1878 = vmatmul.msk.f32.gmra.mxu2 %vm529_vm0, %v1045_v16 }
 0x170   : > { %v2721_v50 = vpop.f32.mrf.mxu0 }
 0x175   : > { %v2683_v24 = vpop.f32.mrf.mxu2 }
 0x176   : > { %v1152_v38 = vsel %vm1151_vm9, %v2683_v24, -inf }
 0x178   : > { %v2725_v47 = vpop.f32.mrf.mxu0 }
 0x17d   : > { %v2687_v39 = vpop.f32.mrf.mxu2 }
 0x17e   : > { %v1153_v0 = vsel %vm1151_vm9, %v2687_v39, -inf }
 0x17f   : > { %v1154_v43 = vmax.f32 %v1152_v38, %v1153_v0 }
 0x180   : > { %v2757_v60 = vpop.f32.mrf.mxu0 }
 0x181   : > { %v1155_v8 = vrot.slane %v1154_v43, 4 }
 0x183   : > { %v1156_v19 = vmax.f32 %v1154_v43, %v1155_v8 }
 0x185   : > { %v2691_v27 = vpop.f32.mrf.mxu2 }
 0x186   : > { %v1161_v1 = vsel %vm1151_vm9, %v2691_v27, -inf }
 0x18d   : > { %v2693_v28 = vpop.f32.mrf.mxu2 }
 0x18e   : > { %v1162_v58 = vsel %vm1151_vm9, %v2693_v28, -inf }
 0x18f   : > { %v1163_v52 = vmax.f32 %v1161_v1, %v1162_v58  ;;  %v2763_v1 = vpop.f32.mrf.mxu0 }
 0x191   : > { %v1164_v41 = vrot.slane %v1163_v52, 4 }
 0x193   : > { %v1165_v61 = vmax.f32 %v1163_v52, %v1164_v41  ;;  %v1405_v52 = vld [vmem:[%s3017_s12] sm:$0x3] }
 0x195   : > { %v2697_v30 = vpop.f32.mrf.mxu2  ;;  %v1166_v16 = vrot.slane %v1165_v61, 2 }
 0x196   : > { %v1170_v3 = vsel %vm1151_vm9, %v2697_v30, -inf }
 0x197   : > { %v1167_v38 = vmax.f32 %v1165_v61, %v1166_v16 }
 0x19d   : > { %v2701_v18 = vpop.f32.mrf.mxu2 }
 0x19e   : > { %v1171_v62 = vsel %vm1151_vm9, %v2701_v18, -inf }
 0x19f   : > { %v1172_v53 = vmax.f32 %v1170_v3, %v1171_v62 }
 0x1a1   : > { %v1173_v11 = vrot.slane %v1172_v53, 4 }
 0x1a3   : > { %v1174_v13 = vmax.f32 %v1172_v53, %v1173_v11 }
 0x1a5   : > { %v2705_v33 = vpop.f32.mrf.mxu2  ;;  %v1175_v62 = vrot.slane %v1174_v13, 2 }
 0x1a6   : > { %v1179_v5 = vsel %vm1151_vm9, %v2705_v33, -inf }
 0x1ad   : > { %v2709_v35 = vpop.f32.mrf.mxu2 }
 0x1ae   : > { %v1180_v2 = vsel %vm1151_vm9, %v2709_v35, -inf }
 0x1af   : > { %v1181_v45 = vmax.f32 %v1179_v5, %v1180_v2  ;;  %v1157_v2 = vrot.slane %v1156_v19, 2  ;;  %v1411_v5 = vsel %vm1409_vm10, %v1405_v52, 0 }
 0x1b0   : > { %1420 = vmatpush.bf16.msrb.mxu1 %v1411_v5  ;;  %1629 = vmatpush.bf16.msrb.mxu3 %v1411_v5 }
 0x1b1   : > { %v1182_v9 = vrot.slane %v1181_v45, 4 }
 0x1b3   : > { %v1183_v20 = vmax.f32 %v1181_v45, %v1182_v9  ;;  %v1158_v45 = vmax.f32 %v1156_v19, %v1157_v2 }
 0x1b4   : > { %1481 = vmatpush.bf16.msra.mxu1 %v1411_v5 }
 0x1b5   : > { %v2711_v36 = vpop.f32.mrf.mxu2  ;;  %v1184_v3 = vrot.slane %v1183_v20, 2  ;;  %v1159_v9 = vrot.slane %v1158_v45, 1 }
 0x1b6   : > { %v1188_v57 = vsel %vm1151_vm9, %v2711_v36, -inf }
 0x1bd   : > { %v2715_v44 = vpop.f32.mrf.mxu2 }
 0x1be   : > { %v1189_v4 = vsel %vm1151_vm9, %v2715_v44, -inf }
 0x1bf   : > { %v1190_v51 = vmax.f32 %v1188_v57, %v1189_v4  ;;  %v1185_v57 = vmax.f32 %v1183_v20, %v1184_v3 }
 0x1c1   : > { %v1191_v49 = vrot.slane %v1190_v51, 4 }
 0x1c3   : > { %v1192_v22 = vmax.f32 %v1190_v51, %v1191_v49  ;;  %v1186_v49 = vrot.slane %v1185_v57, 1 }
 0x1c5   : > { %v2719_v42 = vpop.f32.mrf.mxu2  ;;  %v1193_v4 = vrot.slane %v1192_v22, 2  ;;  %v1187_v2 = vmax.f32 %v1185_v57, %v1186_v49 }
 0x1c6   : > { %v1197_v59 = vsel %vm1151_vm9, %v2719_v42, -inf }
 0x1cd   : > { %v2723_v29 = vpop.f32.mrf.mxu2 }
 0x1ce   : > { %v1198_v56 = vsel %vm1151_vm9, %v2723_v29, -inf }
 0x1cf   : > { %v1199_v55 = vmax.f32 %v1197_v59, %v1198_v56  ;;  %v1176_v56 = vmax.f32 %v1174_v13, %v1175_v62  ;;  %v1194_v59 = vmax.f32 %v1192_v22, %v1193_v4  ;;  %v2774_v13 = vpop.f32.mrf.mxu0  ;;  %v1160_v62 = vmax.f32 %v1158_v45, %v1159_v9 }
 0x1d1   : > { %v1200_v63 = vrot.slane %v1199_v55, 4 }
 0x1d3   : > { %v1201_v58 = vmax.f32 %v1199_v55, %v1200_v63  ;;  %v1168_v55 = vrot.slane %v1167_v38, 1  ;;  %v1195_v63 = vrot.slane %v1194_v59, 1 }
 0x1d5   : > { %v2727_v54 = vpop.f32.mrf.mxu2  ;;  %v1202_v53 = vrot.slane %v1201_v58, 2  ;;  %v1196_v4 = vmax.f32 %v1194_v59, %v1195_v63 }
 0x1d6   : > { %v1206_v10 = vsel %vm1151_vm9, %v2727_v54, -inf }
 0x1d7   : > { %v1003_v57 = vpop.f32.mrf.mxu0 }
 0x1dd   : > { %v2751_v7 = vpop.f32.mrf.mxu2 }
 0x1de   : > { %v1207_v48 = vsel %vm1151_vm9, %v2751_v7, -inf }
 0x1df   : > { %v1208_v12 = vmax.f32 %v1206_v10, %v1207_v48  ;;  %v1203_v10 = vmax.f32 %v1201_v58, %v1202_v53 }
 0x1e1   : > { %v1209_v14 = vrot.slane %v1208_v12, 4  ;;  %v1204_v19 = vrot.slane %v1203_v10, 1 }
 0x1e3   : > { %v1210_v0 = vmax.f32 %v1208_v12, %v1209_v14  ;;  %v1177_v12 = vrot.slane %v1176_v56, 1  ;;  %v1169_v14 = vmax.f32 %v1167_v38, %v1168_v55  ;;  %v1205_v52 = vmax.f32 %v1203_v10, %v1204_v19 }
 0x1e5   : > { %v2761_v21 = vpop.f32.mrf.mxu2  ;;  %v1211_v43 = vrot.slane %v1210_v0, 2  ;;  %v1178_v22 = vmax.f32 %v1176_v56, %v1177_v12  ;;  %v1232_v58 = vsel %vm696_vm2, %v1169_v14, %v1160_v62 }
 0x1e6   : > { %v1215_v48 = vsel %vm1151_vm9, %v2761_v21, -inf }
 0x1e7   : > { %v1212_v8 = vmax.f32 %v1210_v0, %v1211_v43  ;;  %v1233_v0 = vsel %vm699_vm3, %v1178_v22, %v1232_v58 }
 0x1e8   : > { %v1234_v43 = vsel %vm702_vm4, %v1187_v2, %v1233_v0 }
 0x1e9   : > { %v1213_v16 = vrot.slane %v1212_v8, 1  ;;  %v1235_v38 = vsel %vm705_vm5, %v1196_v4, %v1234_v43 }
 0x1eb   : > { %v1214_v5 = vmax.f32 %v1212_v8, %v1213_v16 }
 0x1ed   : > { %v2768_v51 = vpop.f32.mrf.mxu2 }
 0x1ee   : > { %v1216_v41 = vsel %vm1151_vm9, %v2768_v51, -inf }
 0x1ef   : > { %v1217_v11 = vmax.f32 %v1215_v48, %v1216_v41  ;;  %v1236_v41 = vsel %vm708_vm6, %v1205_v52, %v1235_v38 }
 0x1f0   : > { %v1237_v45 = vsel %vm711_vm7, %v1214_v5, %v1236_v41 }
 0x1f1   : > { %v1218_v61 = vrot.slane %v1217_v11, 4 }
 0x1f3   : > { %v1219_v20 = vmax.f32 %v1217_v11, %v1218_v61 }
 0x1f5   : > { %v1220_v3 = vrot.slane %v1219_v20, 2 }
 0x1f7   : > { %v1221_v53 = vmax.f32 %v1219_v20, %v1220_v3 }
 0x1f9   : > { %v1222_v48 = vrot.slane %v1221_v53, 1 }
 0x1fb   : > { %v1223_v56 = vmax.f32 %v1221_v53, %v1222_v48 }
 0x1fd   : > { %v1238_v59 = vsel %vm714_vm8, %v1223_v56, %v1237_v45 }
 0x1fe   : > { %v1240_v55 = vmax.f32 %v1003_v57, %v1238_v59 }
 0x200   : > { %v1251_v11 = vrot.slane %v1240_v55, 7  ;;  %v1241_v10 = vsub.f32 %v1003_v57, %v1240_v55  ;;  %v1252_v12 = vperm.slane %v1240_v55, 0  ;;  %v1245_v9 = vrot.slane %v1240_v55, 1 }
 0x201   : > { %v1246_v49 = vrot.slane %v1240_v55, 2  ;;  %v1247_v8 = vrot.slane %v1240_v55, 3  ;;  %v1248_v61 = vrot.slane %v1240_v55, 4  ;;  %v1249_v63 = vrot.slane %v1240_v55, 5 }
 0x202   : > { %v1259_v14 = vperm.slane %v1251_v11, 0  ;;  %v1242_v19 = vmul.f32 1.442695, %v1241_v10  ;;  %v1268_v20 = vsub.f32 %v2683_v24, %v1252_v12  ;;  %v1269_v22 = vsub.f32 %v2687_v39, %v1252_v12 }
 0x203   : > { %v1253_v16 = vperm.slane %v1245_v9, 0  ;;  %v1250_v62 = vrot.slane %v1240_v55, 6  ;;  %v1254_v2 = vperm.slane %v1246_v49, 0  ;;  %v1255_v3 = vperm.slane %v1247_v8, 0 }
 0x204   : > { %v1282_v4 = vsub.f32 %v2761_v21, %v1259_v14  ;;  %v1283_v58 = vsub.f32 %v2768_v51, %v1259_v14  ;;  %2038 = vpow2.f32 %v1242_v19  ;;  %v1284_v52 = vmul.f32 1.442695, %v1268_v20 }
 0x205   : > { %v1286_v53 = vmul.f32 1.442695, %v1269_v22  ;;  %v1270_v0 = vsub.f32 %v2691_v27, %v1253_v16  ;;  %v1271_v5 = vsub.f32 %v2693_v28, %v1253_v16  ;;  %v1256_v43 = vperm.slane %v1248_v61, 0 }
 0x206   : > { %v1312_v48 = vmul.f32 1.442695, %v1282_v4  ;;  %v1314_v24 = vmul.f32 1.442695, %v1283_v58  ;;  %2040 = vpow2.f32 %v1284_v52  ;;  %v1257_v41 = vperm.slane %v1249_v63, 0 }
 0x207   : > { %2042 = vpow2.f32 %v1286_v53  ;;  %v1288_v39 = vmul.f32 1.442695, %v1270_v0  ;;  %v1290_v38 = vmul.f32 1.442695, %v1271_v5  ;;  %v1272_v21 = vsub.f32 %v2697_v30, %v1254_v2 }
 0x208   : > { %2044 = vpow2.f32 %v1312_v48  ;;  %v1273_v51 = vsub.f32 %v2701_v18, %v1254_v2  ;;  %v1274_v56 = vsub.f32 %v2705_v33, %v1255_v3  ;;  %v1258_v45 = vperm.slane %v1250_v62, 0 }
 0x209   : > { %2046 = vpow2.f32 %v1314_v24  ;;  %v1275_v27 = vsub.f32 %v2709_v35, %v1255_v3  ;;  %v1276_v28 = vsub.f32 %v2711_v36, %v1256_v43  ;;  %v1277_v59 = vsub.f32 %v2715_v44, %v1256_v43 }
 0x20a   : > { %v2794_v57 = vpop.eup %2038  ;;  %2048 = vpow2.f32 %v1288_v39  ;;  %v1278_v30 = vsub.f32 %v2719_v42, %v1257_v41  ;;  %v1292_v18 = vmul.f32 1.442695, %v1272_v21  ;;  %v1294_v55 = vmul.f32 1.442695, %v1273_v51 }
 0x20b   : > { %1879 = vmatmul.msk.f32.vlgmr.msrb.gmra.mxu1 %vm1151_vm9, %v2794_v57  ;;  %2050 = vpow2.f32 %v1290_v38  ;;  %v1279_v11 = vsub.f32 %v2723_v29, %v1257_v41  ;;  %v1296_v10 = vmul.f32 1.442695, %v1274_v56  ;;  %v1298_v35 = vmul.f32 1.442695, %v1275_v27 }
 0x20c   : > { %v2041_v33 = vpop.eup %2040  ;;  %v1280_v9 = vsub.f32 %v2727_v54, %v1258_v45  ;;  %2052 = vpow2.f32 %v1292_v18  ;;  %v1300_v44 = vmul.f32 1.442695, %v1276_v28  ;;  %v1281_v42 = vsub.f32 %v2751_v7, %v1258_v45 }
 0x20d   : > { %v2043_v12 = vpop.eup %2042  ;;  %v1316_v36 = vsel %vm1151_vm9, %v2041_v33, 0.0  ;;  %2054 = vpow2.f32 %v1294_v55  ;;  %v1302_v61 = vmul.f32 1.442695, %v1277_v59  ;;  %v1304_v14 = vmul.f32 1.442695, %v1278_v30 }
 0x20e   : > { %v2803_v49 = vpop.eup %2044  ;;  %v1317_v8 = vsel %vm1151_vm9, %v2043_v12, 0.0  ;;  %2056 = vpow2.f32 %v1296_v10  ;;  %v1306_v22 = vmul.f32 1.442695, %v1279_v11  ;;  %v1308_v2 = vmul.f32 1.442695, %v1280_v9 }
 0x20f   : > { %v2807_v63 = vpop.eup %2046  ;;  %v1318_v29 = vadd.f32 %v1317_v8, %v1316_v36  ;;  %v1379_v54 = vsel %vm1151_vm9, %v2803_v49, 0.0  ;;  %2058 = vpow2.f32 %v1298_v35  ;;  %v1310_v4 = vmul.f32 1.442695, %v1281_v42 }
 0x210   : > { %v2809_v19 = vpop.eup %2048  ;;  %v1380_v20 = vsel %vm1151_vm9, %v2807_v63, 0.0  ;;  %2060 = vpow2.f32 %v1300_v44 }
 0x211   : > { %v2815_v16 = vpop.eup %2050  ;;  %v1319_v7 = vrot.slane %v1318_v29, 4  ;;  %v1325_v62 = vsel %vm1151_vm9, %v2809_v19, 0.0  ;;  %2062 = vpow2.f32 %v1302_v61  ;;  %v1381_v52 = vadd.f32 %v1380_v20, %v1379_v54 }
 0x212   : > { %v1326_v3 = vsel %vm1151_vm9, %v2815_v16, 0.0  ;;  %v2821_v58 = vpop.eup %2052  ;;  %2064 = vpow2.f32 %v1304_v14 }
 0x213   : > { %1880 = vmatmul.msk.f32.vlgmr.msra.gmra.mxu1 %vm1151_vm9, %v2041_v33  ;;  %v1320_v53 = vadd.f32 %v1319_v7, %v1318_v29  ;;  %v1327_v0 = vadd.f32 %v1326_v3, %v1325_v62  ;;  %v2824_v5 = vpop.eup %2054  ;;  %2066 = vpow2.f32 %v1306_v22  ;;  %v1334_v43 = vsel %vm1151_vm9, %v2821_v58, 0.0 }
 0x214   : > { %v2828_v48 = vpop.eup %2056  ;;  %2068 = vpow2.f32 %v1308_v2  ;;  %v1335_v41 = vsel %vm1151_vm9, %v2824_v5, 0.0  ;;  %v1382_v51 = vrot.slane %v1381_v52, 4 }
 0x215   : > { %v1321_v24 = vrot.slane %v1320_v53, 2  ;;  %v1328_v39 = vrot.slane %v1327_v0, 4  ;;  %v2830_v38 = vpop.eup %2058  ;;  %2070 = vpow2.f32 %v1310_v4  ;;  %v1336_v45 = vadd.f32 %v1335_v41, %v1334_v43 }
 0x216   : > { %v2834_v21 = vpop.eup %2060  ;;  %v1343_v27 = vsel %vm1151_vm9, %v2828_v48, 0.0  ;;  %v1344_v30 = vsel %vm1151_vm9, %v2830_v38, 0.0  ;;  %v1383_v8 = vadd.f32 %v1382_v51, %v1381_v52 }
 0x217   : > { %v1329_v56 = vadd.f32 %v1328_v39, %v1327_v0  ;;  %v2838_v28 = vpop.eup %2062  ;;  %v1322_v59 = vadd.f32 %v1321_v24, %v1320_v53  ;;  %v1352_v18 = vsel %vm1151_vm9, %v2834_v21, 0.0  ;;  %v1337_v11 = vrot.slane %v1336_v45, 4 }
 0x218   : > { %v2844_v55 = vpop.eup %2064  ;;  %v1345_v35 = vadd.f32 %v1344_v30, %v1343_v27  ;;  %v1353_v36 = vsel %vm1151_vm9, %v2838_v28, 0.0 }
 0x219   : > { %v1330_v33 = vrot.slane %v1329_v56, 2  ;;  %v2846_v10 = vpop.eup %2066  ;;  %v1361_v9 = vsel %vm1151_vm9, %v2844_v55, 0.0  ;;  %v1338_v61 = vadd.f32 %v1337_v11, %v1336_v45  ;;  %v1354_v29 = vadd.f32 %v1353_v36, %v1352_v18 }
 0x21a   : > { %v2852_v44 = vpop.eup %2068  ;;  %v1323_v54 = vrot.slane %v1322_v59, 1  ;;  %v1346_v20 = vrot.slane %v1345_v35, 4  ;;  %v1362_v22 = vsel %vm1151_vm9, %v2846_v10, 0.0 }
 0x21b   : > { %1881 = vmatmul.msk.f32.gmra.mxu1 %vm1151_vm9, %v2043_v12  ;;  %v1331_v42 = vadd.f32 %v1330_v33, %v1329_v56  ;;  %v2071_v14 = vpop.eup %2070  ;;  %v1370_v7 = vsel %vm1151_vm9, %v2852_v44, 0.0  ;;  %v1339_v2 = vrot.slane %v1338_v61, 2  ;;  %v1355_v3 = vrot.slane %v1354_v29, 4 }
 0x21c   : > { %v1363_v4 = vadd.f32 %v1362_v22, %v1361_v9  ;;  %v1347_v53 = vadd.f32 %v1346_v20, %v1345_v35  ;;  %v1371_v52 = vsel %vm1151_vm9, %v2071_v14, 0.0  ;;  %v1324_v39 = vadd.f32 %v1323_v54, %v1322_v59 }
 0x21d   : > { %v1332_v62 = vrot.slane %v1331_v42, 1  ;;  %v1340_v0 = vadd.f32 %v1339_v2, %v1338_v61  ;;  %v1356_v43 = vadd.f32 %v1355_v3, %v1354_v29  ;;  %v1372_v51 = vadd.f32 %v1371_v52, %v1370_v7 }
 0x21e   : > { %v1364_v24 = vrot.slane %v1363_v4, 4  ;;  %v1348_v41 = vrot.slane %v1347_v53, 2  ;;  %v1384_v56 = vrot.slane %v1383_v8, 2 }
 0x21f   : > { %v1333_v12 = vadd.f32 %v1332_v62, %v1331_v42  ;;  %v1341_v45 = vrot.slane %v1340_v0, 1  ;;  %v1357_v27 = vrot.slane %v1356_v43, 2  ;;  %v1373_v33 = vrot.slane %v1372_v51, 4 }
 0x220   : > { %v1365_v30 = vadd.f32 %v1364_v24, %v1363_v4  ;;  %v1349_v18 = vadd.f32 %v1348_v41, %v1347_v53  ;;  %v1385_v29 = vadd.f32 %v1384_v56, %v1383_v8 }
 0x221   : > { %v1396_v11 = vsel %vm696_vm2, %v1333_v12, %v1324_v39  ;;  %v1342_v35 = vadd.f32 %v1341_v45, %v1340_v0  ;;  %v1358_v36 = vadd.f32 %v1357_v27, %v1356_v43  ;;  %v1374_v61 = vadd.f32 %v1373_v33, %v1372_v51 }
 0x222   : > { %v1366_v9 = vrot.slane %v1365_v30, 2  ;;  %v1350_v42 = vrot.slane %v1349_v18, 1  ;;  %v1386_v52 = vrot.slane %v1385_v29, 1 }
 0x223   : > { %1882 = vmatmul.msk.f32.gmra.mxu1 %vm1151_vm9, %v2809_v19  ;;  %v1359_v59 = vrot.slane %v1358_v36, 1  ;;  %v1397_v20 = vsel %vm699_vm3, %v1342_v35, %v1396_v11  ;;  %v1375_v7 = vrot.slane %v1374_v61, 2 }
 0x224   : > { %v1367_v54 = vadd.f32 %v1366_v9, %v1365_v30  ;;  %v1351_v22 = vadd.f32 %v1350_v42, %v1349_v18  ;;  %v1387_v43 = vadd.f32 %v1386_v52, %v1385_v29 }
 0x225   : > { %v1360_v62 = vadd.f32 %v1359_v59, %v1358_v36  ;;  %v1376_v3 = vadd.f32 %v1375_v7, %v1374_v61 }
 0x226   : > { %v1368_v2 = vrot.slane %v1367_v54, 1  ;;  %v1398_v4 = vsel %vm702_vm4, %v1351_v22, %v1397_v20 }
 0x227   : > { %v1399_v19 = vsel %vm705_vm5, %v1360_v62, %v1398_v4  ;;  %v1377_v12 = vrot.slane %v1376_v3, 1 }
 0x228   : > { %v1369_v53 = vadd.f32 %v1368_v2, %v1367_v54 }
 0x229   : > { %v1378_v8 = vadd.f32 %v1377_v12, %v1376_v3 }
 0x22a   : > { %v1400_v0 = vsel %vm708_vm6, %v1369_v53, %v1399_v19 }
 0x22b   : > { %1883 = vmatmul.msk.f32.gmra.mxu1 %vm1151_vm9, %v2815_v16  ;;  %v1401_v24 = vsel %vm711_vm7, %v1378_v8, %v1400_v0 }
 0x22c   : > { %v1402_v39 = vsel %vm714_vm8, %v1387_v43, %v1401_v24 }
 0x22d   : > { %v1404_v41 = vadd.f32 %v2794_v57, %v1402_v39  ;;  %v2895_v57 = vld [vmem:[%s3013_s8] ss:$0 sm:$0xff] }
 0x22e   : > { %v809_v16 = vadd.f32 %v2895_v57, %v2661_v6  ;;  %v945_v36 = vadd.f32 %v2895_v57, %v2689_v26  ;;  %v947_v20 = vadd.f32 %v2895_v57, %v2695_v17  ;;  %v950_v19 = vadd.f32 %v2895_v57, %v2699_v31 }
 0x22f   : > { %1896 = vmatmul.msk.f32.vlgmr.msrb.gmra.mxu3 %vm1151_vm9, %v1404_v41  ;;  %v952_v39 = vadd.f32 %v2895_v57, %v2703_v32  ;;  %v957_v32 = vadd.f32 %v2895_v57, %v2713_v40 }
 0x233   : > { %1884 = vmatmul.msk.f32.gmra.mxu1 %vm1151_vm9, %v2821_v58 }
 0x23b   : > { %1885 = vmatmul.msk.f32.gmra.mxu1 %vm1151_vm9, %v2824_v5 }
 0x243   : > { %1886 = vmatmul.msk.f32.gmra.mxu1 %vm1151_vm9, %v2828_v48  ;;  %v935_v48 = vadd.f32 %v2895_v57, %v2674_v15  ;;  %v942_v15 = vadd.f32 %v2895_v57, %v2685_v25 }
 0x24b   : > { %1887 = vmatmul.msk.f32.gmra.mxu1 %vm1151_vm9, %v2830_v38 }
 0x253   : > { %1888 = vmatmul.msk.f32.gmra.mxu1 %vm1151_vm9, %v2834_v21 }
 0x25b   : > { %1889 = vmatmul.msk.f32.gmra.mxu1 %vm1151_vm9, %v2838_v28  ;;  %v937_v28 = vadd.f32 %v2895_v57, %v2678_v23 }
 0x263   : > { %1890 = vmatmul.msk.f32.gmra.mxu1 %vm1151_vm9, %v2844_v55 }
 0x26b   : > { %1891 = vmatmul.msk.f32.gmra.mxu1 %vm1151_vm9, %v2846_v10 }
 0x273   : > { %1892 = vmatmul.msk.f32.gmra.mxu1 %vm1151_vm9, %v2852_v44 }
 0x27b   : > { %1893 = vmatmul.msk.f32.gmra.mxu1 %vm1151_vm9, %v2071_v14  ;;  %v940_v14 = vadd.f32 %v2895_v57, %v2681_v37 }
 0x283   : > { %1894 = vmatmul.msk.f32.gmra.mxu1 %vm1151_vm9, %v2803_v49 }
 0x288   : > { %v1422_v58 = vpop.f32.mrf.mxu1 }
 0x289   : > { %v2901_v5 = vmul.f32 %v1422_v58, %v809_v16 }
 0x28b   : > { %1895 = vmatmul.msk.f32.gmra.mxu1 %vm1151_vm9, %v2807_v63 }
 0x290   : > { %v1483_v38 = vpop.f32.mrf.mxu1 }
 0x291   : > { %v1531_v21 = vmul.f32 %v1483_v38, %v935_v48 }
 0x293   : > { %v1547_v49 = vsel %vm529_vm0, %v1531_v21, 0.0 }
 0x298   : > { %v1486_v55 = vpop.f32.mrf.mxu1 }
 0x299   : > { %v1532_v10 = vmul.f32 %v1486_v55, %v937_v28 }
 0x29b   : > { %v1548_v6 = vsel %vm529_vm0, %v1532_v10, 0.0 }
 0x29c   : > { %v1549_v44 = vadd.f32 %v1548_v6, %v1547_v49 }
 0x29e   : > { %v1550_v56 = vrot.slane %v1549_v44, 4 }
 0x2a0   : > { %v1489_v51 = vpop.f32.mrf.mxu1  ;;  %v1551_v45 = vadd.f32 %v1550_v56, %v1549_v44  ;;  %v955_v44 = vadd.f32 %v2895_v57, %v2707_v34 }
 0x2a1   : > { %v1533_v63 = vmul.f32 %v1489_v51, %v940_v14 }
 0x2a2   : > { %v1552_v33 = vrot.slane %v1551_v45, 2 }
 0x2a3   : > { %v1556_v23 = vsel %vm529_vm0, %v1533_v63, 0.0 }
 0x2a4   : > { %v1553_v37 = vadd.f32 %v1552_v33, %v1551_v45 }
 0x2a6   : > { %v1554_v59 = vrot.slane %v1553_v37, 1 }
 0x2a8   : > { %v1492_v27 = vpop.f32.mrf.mxu1  ;;  %v1555_v22 = vadd.f32 %v1554_v59, %v1553_v37  ;;  %v962_v37 = vadd.f32 %v2895_v57, %v2721_v50 }
 0x2a9   : > { %v1534_v30 = vmul.f32 %v1492_v27, %v942_v15 }
 0x2ab   : > { %v1557_v18 = vsel %vm529_vm0, %v1534_v30, 0.0 }
 0x2ac   : > { %v1558_v11 = vadd.f32 %v1557_v18, %v1556_v23 }
 0x2ae   : > { %v1559_v35 = vrot.slane %v1558_v11, 4 }
 0x2b0   : > { %v1560_v9 = vadd.f32 %v1559_v35, %v1558_v11  ;;  %v1495_v42 = vpop.f32.mrf.mxu1 }
 0x2b1   : > { %v1535_v61 = vmul.f32 %v1495_v42, %v945_v36  ;;  %v960_v36 = vadd.f32 %v2895_v57, %v2717_v46 }
 0x2b2   : > { %v1561_v29 = vrot.slane %v1560_v9, 2 }
 0x2b3   : > { %v1565_v4 = vsel %vm529_vm0, %v1535_v61, 0.0 }
 0x2b4   : > { %v1562_v25 = vadd.f32 %v1561_v29, %v1560_v9 }
 0x2b6   : > { %v1563_v54 = vrot.slane %v1562_v25, 1 }
 0x2b8   : > { %v1564_v7 = vadd.f32 %v1563_v54, %v1562_v25  ;;  %v1498_v62 = vpop.f32.mrf.mxu1 }
 0x2b9   : > { %v1536_v2 = vmul.f32 %v1498_v62, %v947_v20 }
 0x2ba   : > { %v1642_v3 = vsel %vm696_vm2, %v1564_v7, %v1555_v22 }
 0x2bb   : > { %v1566_v26 = vsel %vm529_vm0, %v1536_v2, 0.0 }
 0x2bc   : > { %v1567_v53 = vadd.f32 %v1566_v26, %v1565_v4  ;;  %v967_v4 = vadd.f32 %v2895_v57, %v2757_v60 }
 0x2be   : > { %v1568_v52 = vrot.slane %v1567_v53, 4 }
 0x2c0   : > { %v1569_v12 = vadd.f32 %v1568_v52, %v1567_v53  ;;  %v1501_v0 = vpop.f32.mrf.mxu1 }
 0x2c1   : > { %v1537_v8 = vmul.f32 %v1501_v0, %v950_v19  ;;  %v1921_v0 = vld [vmem:[%s3014_s9 + $0x8] sm:$0xff] }
 0x2c2   : > { %v1570_v43 = vrot.slane %v1569_v12, 2  ;;  %1683 = vmatpush.bf16.msra.mxu3 %v1921_v0 }
 0x2c3   : > { %v1574_v38 = vsel %vm529_vm0, %v1537_v8, 0.0 }
 0x2c4   : > { %v1571_v17 = vadd.f32 %v1570_v43, %v1569_v12 }
 0x2c6   : > { %v1572_v24 = vrot.slane %v1571_v17, 1 }
 0x2c8   : > { %v1573_v41 = vadd.f32 %v1572_v24, %v1571_v17  ;;  %v1504_v16 = vpop.f32.mrf.mxu1 }
 0x2c9   : > { %v1538_v58 = vmul.f32 %v1504_v16, %v952_v39 }
 0x2ca   : > { %v1643_v48 = vsel %vm699_vm3, %v1573_v41, %v1642_v3  ;;  %v965_v3 = vadd.f32 %v2895_v57, %v2725_v47  ;;  %v1920_v47 = vld [vmem:[%s3014_s9] sm:$0xff] }
 0x2cb   : > { %v1575_v21 = vsel %vm529_vm0, %v1538_v58, 0.0  ;;  %1684 = vmatpush.bf16.msra.mxu3 %v1920_v47  ;;  %v970_v58 = vadd.f32 %v2895_v57, %v2763_v1 }
 0x2cc   : > { %v1576_v28 = vadd.f32 %v1575_v21, %v1574_v38  ;;  %v972_v38 = vadd.f32 %v2895_v57, %v2774_v13 }
 0x2ce   : > { %v1577_v31 = vrot.slane %v1576_v28, 4 }
 0x2d0   : > { %v1578_v55 = vadd.f32 %v1577_v31, %v1576_v28  ;;  %v1507_v10 = vpop.f32.mrf.mxu1 }
 0x2d1   : > { %v1539_v51 = vmul.f32 %v1507_v10, %v955_v44 }
 0x2d2   : > { %v1579_v49 = vrot.slane %v1578_v55, 2 }
 0x2d3   : > { %v1583_v27 = vsel %vm529_vm0, %v1539_v51, 0.0  ;;  %v1631_v51 = vpop.f32.mrf.mxu3 }
 0x2d4   : > { %v1580_v6 = vadd.f32 %v1579_v49, %v1578_v55  ;;  %2072 = vrcp.f32 %v1631_v51 }
 0x2d6   : > { %v1581_v14 = vrot.slane %v1580_v6, 1 }
 0x2d8   : > { %v1582_v63 = vadd.f32 %v1581_v14, %v1580_v6  ;;  %v1510_v56 = vpop.f32.mrf.mxu1 }
 0x2d9   : > { %v1540_v15 = vmul.f32 %v1510_v56, %v957_v32 }
 0x2da   : > { %v1644_v45 = vsel %vm702_vm4, %v1582_v63, %v1643_v48 }
 0x2db   : > { %v1584_v30 = vsel %vm529_vm0, %v1540_v15, 0.0 }
 0x2dc   : > { %v1585_v23 = vadd.f32 %v1584_v30, %v1583_v27 }
 0x2de   : > { %v1586_v18 = vrot.slane %v1585_v23, 4 }
 0x2e0   : > { %v1587_v33 = vadd.f32 %v1586_v18, %v1585_v23  ;;  %v1513_v11 = vpop.f32.mrf.mxu1  ;;  %v2035_v23 = vld [vmem:[%s3015_s10] ss:$0 sm:$0xff] }
 0x2e1   : > { %v1541_v9 = vmul.f32 %v1513_v11, %v960_v36 }
 0x2e2   : > { %v1588_v35 = vrot.slane %v1587_v33, 2 }
 0x2e3   : > { %v1592_v25 = vsel %vm529_vm0, %v1541_v9, 0.0 }
 0x2e4   : > { %v1589_v34 = vadd.f32 %v1588_v35, %v1587_v33 }
 0x2e6   : > { %v1590_v40 = vrot.slane %v1589_v34, 1 }
 0x2e8   : > { %v1591_v42 = vadd.f32 %v1590_v40, %v1589_v34  ;;  %v1516_v61 = vpop.f32.mrf.mxu1 }
 0x2e9   : > { %v1542_v29 = vmul.f32 %v1516_v61, %v962_v37 }
 0x2ea   : > { %v1645_v59 = vsel %vm705_vm5, %v1591_v42, %v1644_v45  ;;  %v2073_v45 = vpop.eup %2072 }
 0x2eb   : > { %v1593_v54 = vsel %vm529_vm0, %v1542_v29, 0.0 }
 0x2ec   : > { %v1594_v20 = vadd.f32 %v1593_v54, %v1592_v25 }
 0x2ee   : > { %v1595_v22 = vrot.slane %v1594_v20, 4 }
 0x2f0   : > { %v1596_v7 = vadd.f32 %v1595_v22, %v1594_v20  ;;  %v1519_v62 = vpop.f32.mrf.mxu1 }
 0x2f1   : > { %v1543_v26 = vmul.f32 %v1519_v62, %v965_v3 }
 0x2f2   : > { %v1597_v2 = vrot.slane %v1596_v7, 2 }
 0x2f3   : > { %v1601_v8 = vsel %vm529_vm0, %v1543_v26, 0.0 }
 0x2f4   : > { %v1598_v46 = vadd.f32 %v1597_v2, %v1596_v7 }
 0x2f6   : > { %v1599_v50 = vrot.slane %v1598_v46, 1 }
 0x2f8   : > { %v1600_v53 = vadd.f32 %v1599_v50, %v1598_v46  ;;  %v1522_v52 = vpop.f32.mrf.mxu1 }
 0x2f9   : > { %v1544_v19 = vmul.f32 %v1522_v52, %v967_v4 }
 0x2fa   : > { %v1646_v12 = vsel %vm708_vm6, %v1600_v53, %v1645_v59 }
 0x2fb   : > { %v1602_v43 = vsel %vm529_vm0, %v1544_v19, 0.0 }
 0x2fc   : > { %v1603_v17 = vadd.f32 %v1602_v43, %v1601_v8 }
 0x2fe   : > { %v1604_v60 = vrot.slane %v1603_v17, 4 }
 0x300   : > { %v1605_v24 = vadd.f32 %v1604_v60, %v1603_v17  ;;  %v1525_v39 = vpop.f32.mrf.mxu1 }
 0x301   : > { %v1545_v21 = vmul.f32 %v1525_v39, %v970_v58 }
 0x302   : > { %v1606_v41 = vrot.slane %v1605_v24, 2 }
 0x303   : > { %v1610_v49 = vsel %vm529_vm0, %v1545_v21, 0.0 }
 0x304   : > { %v1607_v16 = vadd.f32 %v1606_v41, %v1605_v24 }
 0x306   : > { %v1608_v48 = vrot.slane %v1607_v16, 1 }
 0x308   : > { %v1609_v28 = vadd.f32 %v1608_v48, %v1607_v16  ;;  %v1528_v31 = vpop.f32.mrf.mxu1 }
 0x309   : > { %v1546_v55 = vmul.f32 %v1528_v31, %v972_v38 }
 0x30a   : > { %v1647_v10 = vsel %vm711_vm7, %v1609_v28, %v1646_v12 }
 0x30b   : > { %v1611_v6 = vsel %vm529_vm0, %v1546_v55, 0.0 }
 0x30c   : > { %v1612_v44 = vadd.f32 %v1611_v6, %v1610_v49 }
 0x30e   : > { %v1613_v14 = vrot.slane %v1612_v44, 4 }
 0x310   : > { %v1614_v32 = vadd.f32 %v1613_v14, %v1612_v44 }
 0x312   : > { %v1615_v1 = vrot.slane %v1614_v32, 2 }
 0x314   : > { %v1616_v63 = vadd.f32 %v1615_v1, %v1614_v32 }
 0x316   : > { %v1617_v13 = vrot.slane %v1616_v63, 1 }
 0x318   : > { %v1618_v57 = vadd.f32 %v1617_v13, %v1616_v63 }
 0x31a   : > { %v1648_v56 = vsel %vm714_vm8, %v1618_v57, %v1647_v10 }
 0x31b   : > { %v1650_v15 = vadd.f32 %v1648_v56, %v2901_v5 }
 0x31d   : > { %v1652_v27 = vmul.f32 %v2073_v45, %v1650_v15 }
 0x31f   : > { %v1653_v30 = vpack.c.bf16 %v1652_v27, %v1652_v27 }
 0x321   : > { %1905 = vmatmul.msk.bf16.vlgmr.msra.gmra.mxu3 %vm529_vm0, %v1653_v30 }
 0x3a4   : > { %v1686_v5 = vpop.f32.mrf.mxu3 }
 0x3a5   : > { %v1687_v18 = vadd.f32 %v2035_v23, %v1686_v5 }
 0x3a7   : > { %1691 = vst.msk [vmem:[%s494_s23] sm:$0xff] %vm1690_vm11, %v1687_v18 }
 0x3a8   : > { %2191 = shalt.err (!%p2188_p10)
}
 0x3a9   : > { %1971 = dma.vmem_to_hbm [thread:$0]  (%p2383_p3), %s1706_s16, 128, %s1708_s22, %s1693_s29  }
 0x3ac   : > { %v1688_v33 = vpop.f32.mrf.mxu3 }
 0x3ad PF: > { %s3042_s30 = sld [smem:[#allocation12_spill]]  ;;  %p3044_p12 = scmp.ge.s32.totalorder %s2234_s28, 2 }
 0x3af   : > { %p1985_p13 = pnand %p3044_p12, %p2346_p6 }
 0x3b1   : > { %p1986_p0 = pneg %p1985_p13 }
 0x3b3   : > { %s1719_s15 = sand.u32 1, %s3042_s30  }
 0x3b4   : > { %s1720_s19 = scalar_lea.sflag [#allocation4], %s1719_s15 }
 0x3b5   : > { %2217 = dma.done.wait (%p1986_p0), %s1720_s19, 128  }
 0x3b6   : > { %2219 = vsyncadd (%p1986_p0), %s1720_s19, 4294967168  ;;  %s3045_s28 = sld [smem:[#allocation15_spill]]  ;;  %s3048_s25 = smov %s2226_s26 }
 0x3b7   : > { %s3046_s4 = sld [smem:[#allocation13_spill]] }
 0x3b8   : > { %s3047_s27 = sld [smem:[#allocation16_spill]] }
 0x3bc   : > { %p27_p5 = scmp.ge.s32.totalorder %s3045_s28, 4  }
 0x3bd   : > { %s3049_s26 = smov %s3046_s4 }
 0x3be   :  { %29 = sbr.rel (!%p27_p5) target bundleno = 9 (0x9), region = 125 }
 0x3c3   :  { %1726 = vsyncpa [#allocation3], 1 }
 0x3c4   :  { %1728 = vsyncpa [#allocation3 + $0x1], 1 }
 0x3c5   :  { %1729 = vsyncpa [#allocation6], 1 }
 0x3c6   :  { %1730 = vsyncpa [#allocation4], 1 }
 0x3c7   :  { %1732 = vsyncpa [#allocation4 + $0x1], 1 }

</bundles_post_ra>
